<compile_context>
chip_gen: v5e
topology: v5e:2x2
jax: 0.10.0
libtpu: 0.0.40
codegen_flags: <defaults>
</compile_context>

<pallas_src>
import functools

import jax
import jax.numpy as jnp
import numpy as np
from jax import lax
from jax.experimental import pallas as pl
from jax.experimental.pallas import tpu as pltpu


_VMEM_LIMIT_BYTES = 48 * 1024 * 1024   # safe on v5e/v6e (128 MiB) and v7x (64 MiB)


def _compiler_params():
    return pltpu.CompilerParams(
        dimension_semantics=("parallel",),      # batch tiles -> 2 TCs on v7x
        vmem_limit_bytes=_VMEM_LIMIT_BYTES)


# ----------------------------------------------------------------------------
# Kernel A: ConvTranspose2d(k=4, s=2, p=1) via 4-phase (pixel shuffle) decomposition
# ----------------------------------------------------------------------------
def _upsample4_kernel(x_ref, w_ref, xup_ref, st_ref):
    """x_ref: (tn,H,W,Cin) f32, w_ref: (4, 4*Cin, Cout) bf16 per-phase im2col weights.

    xup_ref: (tn,2H,2W,Cout) f32 (spatially interleaved), st_ref: (1,2,Cout) f32
    holding this tile's [sum; sum of squares] of x_up (for bn1 / upBN stats).
    """
    tn, h, w, cin = x_ref.shape
    cout = w_ref.shape[-1]

    x = x_ref[...].astype(jnp.bfloat16)                 # bf16 operands for the MXU
    # 1-pixel zero halo applied in VMEM (covers taps reading outside the input).
    zr = jnp.zeros((tn, 1, w, cin), x.dtype)
    xp = jnp.concatenate([zr, x, zr], axis=1)
    zc = jnp.zeros((tn, h + 2, 1, cin), x.dtype)
    xp = jnp.concatenate([zc, xp, zc], axis=2)          # (tn, H+2, W+2, Cin)

    phase_out = []
    for ph in range(2):
        for pw in range(2):
            cols = []
            for di in range(2):
                for dj in range(2):
                    cols.append(xp[:, ph + di:ph + di + h, pw + dj:pw + dj + w, :])
            patch = jnp.concatenate(cols, axis=-1).reshape(tn * h * w, 4 * cin)
            acc = jnp.dot(patch, w_ref[2 * ph + pw],
                          preferred_element_type=jnp.float32)
            phase_out.append(acc.reshape(tn, h, w, cout))
    p00, p01, p10, p11 = phase_out

    # Pixel-shuffle interleave: out[:, 2r+ph, 2c+pw, :] = p{ph}{pw}[:, r, c, :]
    # (only minor-dim-preserving reshapes / concats).
    r0 = jnp.concatenate([p00[:, :, :, None, :], p01[:, :, :, None, :]],
                         axis=3).reshape(tn, h, 2 * w, cout)
    r1 = jnp.concatenate([p10[:, :, :, None, :], p11[:, :, :, None, :]],
                         axis=3).reshape(tn, h, 2 * w, cout)
    xup = jnp.concatenate([r0[:, :, None, :, :], r1[:, :, None, :, :]],
                          axis=2).reshape(tn, 2 * h, 2 * w, cout)
    xup_ref[...] = xup

    flat = xup.reshape(tn * 4 * h * w, cout)
    st_ref[...] = jnp.concatenate(
        [jnp.sum(flat, axis=0, keepdims=True),
         jnp.sum(flat * flat, axis=0, keepdims=True)],
        axis=0).reshape(1, 2, cout)


# ----------------------------------------------------------------------------
# Kernels B / C: fused (affine BN + swish) -> 3x3 'same' conv (+ residual)
# ----------------------------------------------------------------------------
def _affine_swish_conv(x, scale, shift, w_col, k):
    """swish(x*scale + shift) followed by a k x k 'same' conv as ONE im2col matmul.

    x: (tn,H,W,C) f32; scale/shift: (tn,C) f32; w_col: (k*k*C, Cout) bf16.
    Returns the conv output flattened to (tn*H*W, Cout) in f32.
    """
    tn, hh, ww, c = x.shape
    h = x * scale[:, None, None, :] + shift[:, None, None, :]
    h = h * jax.nn.sigmoid(h)                      # swish in f32 (VPU/EUP)
    h = h.astype(jnp.bfloat16)                     # bf16 operands for the MXU
    p = (k - 1) // 2
    zr = jnp.zeros((tn, p, ww, c), h.dtype)
    hp = jnp.concatenate([zr, h, zr], axis=1)
    zc = jnp.zeros((tn, hh + 2 * p, p, c), h.dtype)
    hp = jnp.concatenate([zc, hp, zc], axis=2)     # (tn, H+2p, W+2p, C)
    cols = [hp[:, di:di + hh, dj:dj + ww, :]
            for di in range(k) for dj in range(k)]
    patch = jnp.concatenate(cols, axis=-1).reshape(tn * hh * ww, k * k * c)
    return jnp.dot(patch, w_col, preferred_element_type=jnp.float32)


def _bnswish_conv_kernel(x_ref, s_ref, t_ref, w_ref, o_ref, st_ref, *, k):
    """o = conv_k(swish(x*s + t)); also emit per-tile sum/sumsq of o."""
    tn, hh, ww, _ = x_ref.shape
    cout = w_ref.shape[-1]
    out = _affine_swish_conv(x_ref[...], s_ref[0], t_ref[0], w_ref[...], k)
    o_ref[...] = out.reshape(tn, hh, ww, cout)
    st_ref[...] = jnp.concatenate(
        [jnp.sum(out, axis=0, keepdims=True),
         jnp.sum(out * out, axis=0, keepdims=True)],
        axis=0).reshape(1, 2, cout)


def _bnswish_conv_residual_kernel(x_ref, s_ref, t_ref, w_ref, xup_ref,
                                  su_ref, tu_ref, o_ref, *, k):
    """o = conv_k(swish(x*s + t)) + (x_up*su + tu)   (upBN fused residual)."""
    tn, hh, ww, _ = x_ref.shape
    cout = w_ref.shape[-1]
    conv = _affine_swish_conv(x_ref[...], s_ref[0], t_ref[0], w_ref[...], k)
    conv = conv.reshape(tn, hh, ww, cout)
    su = su_ref[...].reshape(1, 1, 1, cout)
    tu = tu_ref[...].reshape(1, 1, 1, cout)
    o_ref[...] = conv + xup_ref[...] * su + tu


# ----------------------------------------------------------------------------
# Tiny (XLA) helpers: weight re-layouts, stat reduction, CCBN folding
# ----------------------------------------------------------------------------
def _build_upsample_phase_weights(w_up):
    """(Cin, Cout, 4, 4) ConvTranspose2d weight -> (4, 4*Cin, Cout) per-phase
    im2col weights.  Output parity ph uses kernel taps kh=(3,1) for ph=0 and
    (2,0) for ph=1 (same rule along W), matching out[2*ih - 1 + kh] += x[ih]*w[kh].
    Phase index = 2*ph + pw; row order within a phase = (di, dj, cin).
    """
    cin, cout = w_up.shape[0], w_up.shape[1]
    taps = ((3, 1), (2, 0))
    phases = []
    for ph in range(2):
        for pw in range(2):
            rows = []
            for di in range(2):
                for dj in range(2):
                    rows.append(w_up[:, :, taps[ph][di], taps[pw][dj]])  # (cin,cout)
            phases.append(jnp.stack(rows, axis=0).reshape(4 * cin, cout))
    return jnp.stack(phases, axis=0)


def _im2col_weight(w_oihw):
    """(Cout, Cin, kh, kw) -> (kh*kw*Cin, Cout), tap order (kh, kw, cin)."""
    co, ci, kh, kw = w_oihw.shape
    return jnp.transpose(w_oihw, (2, 3, 1, 0)).reshape(kh * kw * ci, co)


def _finalize_stats(partial, count):
    """partial: (grid_n, 2, C) per-tile [sum; sumsq] -> (mean, biased var)."""
    total = jnp.sum(partial, axis=0)              # (2, C)
    mean = total[0] / count
    var = jnp.maximum(total[1] / count - mean * mean, 0.0)
    return mean, var


def _ccbn_scale_shift(y, wg, bg, wb, bb, mean, var, eps):
    """Fold CCBN (batch-stat normalize + per-sample gain/bias) into x*s + t."""
    gain = 1.0 + y @ wg + bg                      # (N, C)
    bias = y @ wb + bb                            # (N, C)
    inv = lax.rsqrt(var + eps)                    # (C,)
    scale = gain * inv[None, :]
    shift = bias - mean[None, :] * scale
    return scale, shift


def _pick_tile_n(n, ho, wo, c):
    # Rough per-sample VMEM footprint of the fused bn+swish+3x3-conv step:
    # f32 input + bf16 padded + 9x bf16 im2col patch + f32 output, 2x slack.
    per_sample = ho * wo * c * (4 + 2 + 18 + 4) * 2
    budget = 8 * 1024 * 1024
    t = int(max(1, min(n, budget // max(per_sample, 1))))
    while n % t:
        t -= 1
    return t


# ----------------------------------------------------------------------------
# GBlock forward (Pallas path)
# ----------------------------------------------------------------------------
def gblock_forward(x_nchw, y, p, *, tile_n=None):
    x = jnp.transpose(x_nchw, (0, 2, 3, 1)).astype(jnp.float32)   # NCHW -> NHWC
    n, h, w, cin = x.shape
    cout = p["w_up"].shape[1]
    ho, wo = 2 * h, 2 * w

    if tile_n is None:
        tile_n = _pick_tile_n(n, ho, wo, cout)
    assert n % tile_n == 0, "batch must be divisible by tile_n"
    gn = n // tile_n
    cp = _compiler_params()

    # Tiny weight re-layouts (bf16 MXU operands, f32 accumulation in-kernel).
    w_up4 = _build_upsample_phase_weights(p["w_up"]).astype(jnp.bfloat16)
    w1 = _im2col_weight(p["w_c1"]).astype(jnp.bfloat16)
    w2 = _im2col_weight(p["w_c2"]).astype(jnp.bfloat16)

    act_spec = pl.BlockSpec((tile_n, ho, wo, cout), lambda i: (i, 0, 0, 0))
    per_sample_spec = pl.BlockSpec((1, tile_n, cout), lambda i: (i, 0, 0))
    stat_spec = pl.BlockSpec((1, 2, cout), lambda i: (i, 0, 0))
    act_shape = jax.ShapeDtypeStruct((n, ho, wo, cout), jnp.float32)
    stat_shape = jax.ShapeDtypeStruct((gn, 2, cout), jnp.float32)

    # --- A) 4-phase transposed conv + x_up batch statistics -------------------
    x_up, st1 = pl.pallas_call(
        _upsample4_kernel,
        grid=(gn,),
        in_specs=[pl.BlockSpec((tile_n, h, w, cin), lambda i: (i, 0, 0, 0)),
                  pl.BlockSpec((4, 4 * cin, cout), lambda i: (0, 0, 0))],
        out_specs=[act_spec, stat_spec],
        out_shape=[act_shape, stat_shape],
        compiler_params=cp,
    )(x, w_up4)

    count = float(n * ho * wo)
    mean1, var1 = _finalize_stats(st1, count)

    # bn1 (CCBN, eps=1e-5) folded into per-sample scale/shift.
    s1, t1 = _ccbn_scale_shift(y, p["wg1"], p["bg1"], p["wb1"], p["bb1"],
                               mean1, var1, 1e-5)
    # upBN (BatchNorm2d, eps=1e-3) on x_up reuses the same batch statistics.
    inv_u = lax.rsqrt(var1 + 1e-3)
    su = p["gamma_up"] * inv_u[None, :]                 # (1, C)
    tu = p["beta_up"] - mean1[None, :] * su             # (1, C)

    # --- B) swish(bn1(x_up, y)) -> conv1 3x3, + h2 batch statistics -----------
    h2, st2 = pl.pallas_call(
        functools.partial(_bnswish_conv_kernel, k=3),
        grid=(gn,),
        in_specs=[act_spec, per_sample_spec, per_sample_spec,
                  pl.BlockSpec((9 * cout, cout), lambda i: (0, 0))],
        out_specs=[act_spec, stat_spec],
        out_shape=[act_shape, stat_shape],
        compiler_params=cp,
    )(x_up, s1.reshape(gn, tile_n, cout), t1.reshape(gn, tile_n, cout), w1)

    mean2, var2 = _finalize_stats(st2, count)
    s2, t2 = _ccbn_scale_shift(y, p["wg2"], p["bg2"], p["wb2"], p["bb2"],
                               mean2, var2, 1e-5)

    # --- C) swish(bn2(h2, y)) -> conv2 3x3, + upBN(x_up) residual --------------
    out = pl.pallas_call(
        functools.partial(_bnswish_conv_residual_kernel, k=3),
        grid=(gn,),
        in_specs=[act_spec, per_sample_spec, per_sample_spec,
                  pl.BlockSpec((9 * cout, cout), lambda i: (0, 0)),
                  act_spec,
                  pl.BlockSpec((1, cout), lambda i: (0, 0)),
                  pl.BlockSpec((1, cout), lambda i: (0, 0))],
        out_specs=act_spec,
        out_shape=act_shape,
        compiler_params=cp,
    )(h2, s2.reshape(gn, tile_n, cout), t2.reshape(gn, tile_n, cout), w2,
      x_up, su, tu)

    return jnp.transpose(out, (0, 3, 1, 2))             # back to NCHW


# ----------------------------------------------------------------------------
# Pure-JAX (XLA) reference mirroring the PyTorch forward, for verification
# ----------------------------------------------------------------------------
def gblock_reference(x, y, p):
    def swish(t):
        return t * jax.nn.sigmoid(t)

    def bn_stats(t):
        m = jnp.mean(t, axis=(0, 2, 3), keepdims=True)
        v = jnp.mean((t - m) ** 2, axis=(0, 2, 3), keepdims=True)
        return m, v

    w_eq = jnp.transpose(jnp.flip(p["w_up"], (2, 3)), (1, 0, 2, 3))  # (Cout,Cin,4,4)
    x_up = lax.conv_general_dilated(
        x, w_eq, window_strides=(1, 1), padding=((2, 2), (2, 2)),
        lhs_dilation=(2, 2), dimension_numbers=("NCHW", "OIHW", "NCHW"))

    m, v = bn_stats(x_up)
    gain = 1.0 + y @ p["wg1"] + p["bg1"][0]
    bias = y @ p["wb1"] + p["bb1"][0]
    h = swish((x_up - m) / jnp.sqrt(v + 1e-5)
              * gain[:, :, None, None] + bias[:, :, None, None])

    h = lax.conv_general_dilated(h, p["w_c1"], (1, 1), ((1, 1), (1, 1)),
                                 dimension_numbers=("NCHW", "OIHW", "NCHW"))
    m, v = bn_stats(h)
    gain = 1.0 + y @ p["wg2"] + p["bg2"][0]
    bias = y @ p["wb2"] + p["bb2"][0]
    h = swish((h - m) / jnp.sqrt(v + 1e-5)
              * gain[:, :, None, None] + bias[:, :, None, None])

    h = lax.conv_general_dilated(h, p["w_c2"], (1, 1), ((1, 1), (1, 1)),
                                 dimension_numbers=("NCHW", "OIHW", "NCHW"))

    m, v = bn_stats(x_up)
    xbn = ((x_up - m) / jnp.sqrt(v + 1e-3)
           * p["gamma_up"][0][:, None, None] + p["beta_up"][0][:, None, None])
    return h + xbn


# ----------------------------------------------------------------------------
# Deterministic parameter init (shapes from the module's __init__)
# ----------------------------------------------------------------------------
def init_params(key, cin, cout, emb):
    ks = jax.random.split(key, 11)
    f32 = jnp.float32
    return {
        "w_up": 0.1 * jax.random.normal(ks[0], (cin, cout, 4, 4), f32),   # ConvTranspose2d
        "w_c1": 0.1 * jax.random.normal(ks[1], (cout, cout, 3, 3), f32),  # conv1 (OIHW)
        "w_c2": 0.1 * jax.random.normal(ks[2], (cout, cout, 3, 3), f32),  # conv2 (OIHW)
        # ClassConditionalBatchNorm 1: gain/bias Linear(emb -> cout), stored as (E, C)
        "wg1": 0.1 * jax.random.normal(ks[3], (emb, cout), f32),
        "bg1": 0.1 * jax.random.normal(ks[4], (1, cout), f32),
        "wb1": 0.1 * jax.random.normal(ks[5], (emb, cout), f32),
        "bb1": 0.1 * jax.random.normal(ks[6], (1, cout), f32),
        # ClassConditionalBatchNorm 2
        "wg2": 0.1 * jax.random.normal(ks[7], (emb, cout), f32),
        "bg2": 0.1 * jax.random.normal(ks[8], (1, cout), f32),
        "wb2": 0.1 * jax.random.normal(ks[9], (emb, cout), f32),
        "bb2": 0.1 * jax.random.normal(ks[10], (1, cout), f32),
        # upBN (BatchNorm2d) affine params, PyTorch default init
        "gamma_up": jnp.ones((1, cout), f32),
        "beta_up": jnp.zeros((1, cout), f32),
    }


if __name__ == "__main__":
    key = jax.random.PRNGKey(0)
    kx, ky, kp = jax.random.split(key, 3)

    N, CIN, COUT, H, W, EMB = 2, 4, 16, 8, 8, 8
    x = jax.random.normal(kx, (N, CIN, H, W), jnp.float32)
    y = jax.random.normal(ky, (N, EMB), jnp.float32)
    params = init_params(kp, CIN, COUT, EMB)

    out = gblock_forward(x, y, params, tile_n=1)   # grid of N batch tiles
    out = jax.block_until_ready(out)
    assert out.shape == (N, COUT, 2 * H, 2 * W)

    ref = gblock_reference(x, y, params)
    # bf16 MXU operands (f32 accumulation) -> compare at bf16-level tolerance.
    np.testing.assert_allclose(np.asarray(out), np.asarray(ref),
                               rtol=2e-2, atol=2e-2)
    print("KERNEL_OK")
</pallas_src>

<mosaic_0001>
module attributes {stable_mosaic.version = 11 : i64} {
  func.func @_upsample4_kernel(%arg0: i32, %arg1: memref<1x8x8x4xf32, #tpu.memory_space<vmem>>, %arg2: memref<4x16x16xbf16, #tpu.memory_space<vmem>>, %arg3: memref<1x16x16x16xf32, #tpu.memory_space<vmem>>, %arg4: memref<1x2x16xf32, #tpu.memory_space<vmem>>) attributes {dimension_semantics = [#tpu.dimension_semantics<parallel>], iteration_bounds = array<i64: 2>, scalar_prefetch = 0 : i64, scratch_operands = 0 : i64, tpu.core_type = #tpu.core_type<tc>, window_params = [{transform_indices = @transform_0, window_bounds = array<i64: 1, 8, 8, 4>}, {pipeline_mode = #tpu.pipeline_mode<synchronous>, transform_indices = @transform_1, window_bounds = array<i64: 4, 16, 16>}, {transform_indices = @transform_2, window_bounds = array<i64: 1, 16, 16, 16>}, {transform_indices = @transform_3, window_bounds = array<i64: 1, 2, 16>}]} {
    %c0 = arith.constant 0 : index
    %c0_0 = arith.constant 0 : index
    %c0_1 = arith.constant 0 : index
    %c0_2 = arith.constant 0 : index
    %0 = vector.load %arg1[%c0, %c0_0, %c0_1, %c0_2] : memref<1x8x8x4xf32, #tpu.memory_space<vmem>>, vector<1x8x8x4xf32>
    %1 = arith.truncf %0 : vector<1x8x8x4xf32> to vector<1x8x8x4xbf16>
    %cst = arith.constant 0.000000e+00 : bf16
    %2 = vector.broadcast %cst : bf16 to vector<1x1x8x4xbf16>
    %3 = tpu.concatenate %2, %1, %2 in 1 : vector<1x1x8x4xbf16>, vector<1x8x8x4xbf16>, vector<1x1x8x4xbf16> -> vector<1x10x8x4xbf16>
    %cst_3 = arith.constant 0.000000e+00 : bf16
    %4 = vector.broadcast %cst_3 : bf16 to vector<1x10x1x4xbf16>
    %5 = tpu.concatenate %4, %3, %4 in 2 : vector<1x10x1x4xbf16>, vector<1x10x8x4xbf16>, vector<1x10x1x4xbf16> -> vector<1x10x10x4xbf16>
    %6 = vector.extract_strided_slice %5 {offsets = [0, 0, 0, 0], sizes = [1, 8, 8, 4], strides = [1, 1, 1, 1]} : vector<1x10x10x4xbf16> to vector<1x8x8x4xbf16>
    %7 = vector.extract_strided_slice %5 {offsets = [0, 0, 1, 0], sizes = [1, 8, 8, 4], strides = [1, 1, 1, 1]} : vector<1x10x10x4xbf16> to vector<1x8x8x4xbf16>
    %8 = vector.extract_strided_slice %5 {offsets = [0, 1, 0, 0], sizes = [1, 8, 8, 4], strides = [1, 1, 1, 1]} : vector<1x10x10x4xbf16> to vector<1x8x8x4xbf16>
    %9 = vector.extract_strided_slice %5 {offsets = [0, 1, 1, 0], sizes = [1, 8, 8, 4], strides = [1, 1, 1, 1]} : vector<1x10x10x4xbf16> to vector<1x8x8x4xbf16>
    %10 = tpu.concatenate %6, %7, %8, %9 in 3 : vector<1x8x8x4xbf16>, vector<1x8x8x4xbf16>, vector<1x8x8x4xbf16>, vector<1x8x8x4xbf16> -> vector<1x8x8x16xbf16>
    %11 = vector.shape_cast %10 : vector<1x8x8x16xbf16> to vector<64x16xbf16>
    %c0_4 = arith.constant 0 : index
    %c0_5 = arith.constant 0 : index
    %c0_6 = arith.constant 0 : index
    %12 = vector.load %arg2[%c0_4, %c0_5, %c0_6] : memref<4x16x16xbf16, #tpu.memory_space<vmem>>, vector<1x16x16xbf16>
    %13 = vector.shape_cast %12 : vector<1x16x16xbf16> to vector<16x16xbf16>
    %cst_7 = arith.constant dense<0.000000e+00> : vector<64x16xf32>
    %14 = tpu.matmul %11, %13, %cst_7 {dimension_numbers = #tpu.dot_dimension_numbers<[1], [0], [0], [1], [0, 0, 1, 1], [], []>} : vector<64x16xbf16>, vector<16x16xbf16>, vector<64x16xf32> -> vector<64x16xf32>
    %15 = vector.shape_cast %14 : vector<64x16xf32> to vector<1x8x8x16xf32>
    %16 = vector.extract_strided_slice %5 {offsets = [0, 0, 1, 0], sizes = [1, 8, 8, 4], strides = [1, 1, 1, 1]} : vector<1x10x10x4xbf16> to vector<1x8x8x4xbf16>
    %17 = vector.extract_strided_slice %5 {offsets = [0, 0, 2, 0], sizes = [1, 8, 8, 4], strides = [1, 1, 1, 1]} : vector<1x10x10x4xbf16> to vector<1x8x8x4xbf16>
    %18 = vector.extract_strided_slice %5 {offsets = [0, 1, 1, 0], sizes = [1, 8, 8, 4], strides = [1, 1, 1, 1]} : vector<1x10x10x4xbf16> to vector<1x8x8x4xbf16>
    %19 = vector.extract_strided_slice %5 {offsets = [0, 1, 2, 0], sizes = [1, 8, 8, 4], strides = [1, 1, 1, 1]} : vector<1x10x10x4xbf16> to vector<1x8x8x4xbf16>
    %20 = tpu.concatenate %16, %17, %18, %19 in 3 : vector<1x8x8x4xbf16>, vector<1x8x8x4xbf16>, vector<1x8x8x4xbf16>, vector<1x8x8x4xbf16> -> vector<1x8x8x16xbf16>
    %21 = vector.shape_cast %20 : vector<1x8x8x16xbf16> to vector<64x16xbf16>
    %c1 = arith.constant 1 : index
    %c0_8 = arith.constant 0 : index
    %c0_9 = arith.constant 0 : index
    %22 = vector.load %arg2[%c1, %c0_8, %c0_9] : memref<4x16x16xbf16, #tpu.memory_space<vmem>>, vector<1x16x16xbf16>
    %23 = vector.shape_cast %22 : vector<1x16x16xbf16> to vector<16x16xbf16>
    %cst_10 = arith.constant dense<0.000000e+00> : vector<64x16xf32>
    %24 = tpu.matmul %21, %23, %cst_10 {dimension_numbers = #tpu.dot_dimension_numbers<[1], [0], [0], [1], [0, 0, 1, 1], [], []>} : vector<64x16xbf16>, vector<16x16xbf16>, vector<64x16xf32> -> vector<64x16xf32>
    %25 = vector.shape_cast %24 : vector<64x16xf32> to vector<1x8x8x16xf32>
    %26 = vector.extract_strided_slice %5 {offsets = [0, 1, 0, 0], sizes = [1, 8, 8, 4], strides = [1, 1, 1, 1]} : vector<1x10x10x4xbf16> to vector<1x8x8x4xbf16>
    %27 = vector.extract_strided_slice %5 {offsets = [0, 1, 1, 0], sizes = [1, 8, 8, 4], strides = [1, 1, 1, 1]} : vector<1x10x10x4xbf16> to vector<1x8x8x4xbf16>
    %28 = vector.extract_strided_slice %5 {offsets = [0, 2, 0, 0], sizes = [1, 8, 8, 4], strides = [1, 1, 1, 1]} : vector<1x10x10x4xbf16> to vector<1x8x8x4xbf16>
    %29 = vector.extract_strided_slice %5 {offsets = [0, 2, 1, 0], sizes = [1, 8, 8, 4], strides = [1, 1, 1, 1]} : vector<1x10x10x4xbf16> to vector<1x8x8x4xbf16>
    %30 = tpu.concatenate %26, %27, %28, %29 in 3 : vector<1x8x8x4xbf16>, vector<1x8x8x4xbf16>, vector<1x8x8x4xbf16>, vector<1x8x8x4xbf16> -> vector<1x8x8x16xbf16>
    %31 = vector.shape_cast %30 : vector<1x8x8x16xbf16> to vector<64x16xbf16>
    %c2 = arith.constant 2 : index
    %c0_11 = arith.constant 0 : index
    %c0_12 = arith.constant 0 : index
    %32 = vector.load %arg2[%c2, %c0_11, %c0_12] : memref<4x16x16xbf16, #tpu.memory_space<vmem>>, vector<1x16x16xbf16>
    %33 = vector.shape_cast %32 : vector<1x16x16xbf16> to vector<16x16xbf16>
    %cst_13 = arith.constant dense<0.000000e+00> : vector<64x16xf32>
    %34 = tpu.matmul %31, %33, %cst_13 {dimension_numbers = #tpu.dot_dimension_numbers<[1], [0], [0], [1], [0, 0, 1, 1], [], []>} : vector<64x16xbf16>, vector<16x16xbf16>, vector<64x16xf32> -> vector<64x16xf32>
    %35 = vector.shape_cast %34 : vector<64x16xf32> to vector<1x8x8x16xf32>
    %36 = vector.extract_strided_slice %5 {offsets = [0, 1, 1, 0], sizes = [1, 8, 8, 4], strides = [1, 1, 1, 1]} : vector<1x10x10x4xbf16> to vector<1x8x8x4xbf16>
    %37 = vector.extract_strided_slice %5 {offsets = [0, 1, 2, 0], sizes = [1, 8, 8, 4], strides = [1, 1, 1, 1]} : vector<1x10x10x4xbf16> to vector<1x8x8x4xbf16>
    %38 = vector.extract_strided_slice %5 {offsets = [0, 2, 1, 0], sizes = [1, 8, 8, 4], strides = [1, 1, 1, 1]} : vector<1x10x10x4xbf16> to vector<1x8x8x4xbf16>
    %39 = vector.extract_strided_slice %5 {offsets = [0, 2, 2, 0], sizes = [1, 8, 8, 4], strides = [1, 1, 1, 1]} : vector<1x10x10x4xbf16> to vector<1x8x8x4xbf16>
    %40 = tpu.concatenate %36, %37, %38, %39 in 3 : vector<1x8x8x4xbf16>, vector<1x8x8x4xbf16>, vector<1x8x8x4xbf16>, vector<1x8x8x4xbf16> -> vector<1x8x8x16xbf16>
    %41 = vector.shape_cast %40 : vector<1x8x8x16xbf16> to vector<64x16xbf16>
    %c3 = arith.constant 3 : index
    %c0_14 = arith.constant 0 : index
    %c0_15 = arith.constant 0 : index
    %42 = vector.load %arg2[%c3, %c0_14, %c0_15] : memref<4x16x16xbf16, #tpu.memory_space<vmem>>, vector<1x16x16xbf16>
    %43 = vector.shape_cast %42 : vector<1x16x16xbf16> to vector<16x16xbf16>
    %cst_16 = arith.constant dense<0.000000e+00> : vector<64x16xf32>
    %44 = tpu.matmul %41, %43, %cst_16 {dimension_numbers = #tpu.dot_dimension_numbers<[1], [0], [0], [1], [0, 0, 1, 1], [], []>} : vector<64x16xbf16>, vector<16x16xbf16>, vector<64x16xf32> -> vector<64x16xf32>
    %45 = vector.shape_cast %44 : vector<64x16xf32> to vector<1x8x8x16xf32>
    %46 = vector.shape_cast %15 : vector<1x8x8x16xf32> to vector<1x8x8x1x16xf32>
    %47 = vector.shape_cast %25 : vector<1x8x8x16xf32> to vector<1x8x8x1x16xf32>
    %48 = tpu.concatenate %46, %47 in 3 : vector<1x8x8x1x16xf32>, vector<1x8x8x1x16xf32> -> vector<1x8x8x2x16xf32>
    %49 = vector.shape_cast %48 : vector<1x8x8x2x16xf32> to vector<1x8x16x16xf32>
    %50 = vector.shape_cast %35 : vector<1x8x8x16xf32> to vector<1x8x8x1x16xf32>
    %51 = vector.shape_cast %45 : vector<1x8x8x16xf32> to vector<1x8x8x1x16xf32>
    %52 = tpu.concatenate %50, %51 in 3 : vector<1x8x8x1x16xf32>, vector<1x8x8x1x16xf32> -> vector<1x8x8x2x16xf32>
    %53 = vector.shape_cast %52 : vector<1x8x8x2x16xf32> to vector<1x8x16x16xf32>
    %54 = vector.shape_cast %49 : vector<1x8x16x16xf32> to vector<1x8x1x16x16xf32>
    %55 = vector.shape_cast %53 : vector<1x8x16x16xf32> to vector<1x8x1x16x16xf32>
    %56 = tpu.concatenate %54, %55 in 2 : vector<1x8x1x16x16xf32>, vector<1x8x1x16x16xf32> -> vector<1x8x2x16x16xf32>
    %57 = vector.shape_cast %56 : vector<1x8x2x16x16xf32> to vector<1x16x16x16xf32>
    %c0_17 = arith.constant 0 : index
    %c0_18 = arith.constant 0 : index
    %c0_19 = arith.constant 0 : index
    %c0_20 = arith.constant 0 : index
    %58 = vector.load %arg3[%c0_17, %c0_18, %c0_19, %c0_20] : memref<1x16x16x16xf32, #tpu.memory_space<vmem>>, vector<1x16x16x16xf32>
    tpu.vector_store %arg3[%c0_17, %c0_18, %c0_19, %c0_20], %57 {strides = array<i32>} : memref<1x16x16x16xf32, #tpu.memory_space<vmem>>, vector<1x16x16x16xf32>,
    %59 = vector.shape_cast %57 : vector<1x16x16x16xf32> to vector<256x16xf32>
    %cst_21 = arith.constant dense<0.000000e+00> : vector<16xf32>
    %60 = vector.multi_reduction <add>, %59, %cst_21 [0] : vector<256x16xf32> to vector<16xf32>
    %61 = vector.shape_cast %60 : vector<16xf32> to vector<1x16xf32>
    %62 = arith.mulf %59, %59 : vector<256x16xf32>
    %cst_22 = arith.constant dense<0.000000e+00> : vector<16xf32>
    %63 = vector.multi_reduction <add>, %62, %cst_22 [0] : vector<256x16xf32> to vector<16xf32>
    %64 = vector.shape_cast %63 : vector<16xf32> to vector<1x16xf32>
    %65 = tpu.concatenate %61, %64 in 0 : vector<1x16xf32>, vector<1x16xf32> -> vector<2x16xf32>
    %66 = vector.shape_cast %65 : vector<2x16xf32> to vector<1x2x16xf32>
    %c0_23 = arith.constant 0 : index
    %c0_24 = arith.constant 0 : index
    %c0_25 = arith.constant 0 : index
    %67 = vector.load %arg4[%c0_23, %c0_24, %c0_25] : memref<1x2x16xf32, #tpu.memory_space<vmem>>, vector<1x2x16xf32>
    tpu.vector_store %arg4[%c0_23, %c0_24, %c0_25], %66 {strides = array<i32>} : memref<1x2x16xf32, #tpu.memory_space<vmem>>, vector<1x2x16xf32>,
    return
  }
  func.func @transform_0(%arg0: i32) -> (i32, i32, i32, i32) {
    %c0_i32 = arith.constant 0 : i32
    %c0_i32_0 = arith.constant 0 : i32
    %c0_i32_1 = arith.constant 0 : i32
    %c0_i32_2 = arith.constant 0 : i32
    return %arg0, %c0_i32, %c0_i32_0, %c0_i32_1 : i32, i32, i32, i32
  }
  func.func @transform_1(%arg0: i32) -> (i32, i32, i32) {
    %c0_i32 = arith.constant 0 : i32
    %c0_i32_0 = arith.constant 0 : i32
    %c0_i32_1 = arith.constant 0 : i32
    %c0_i32_2 = arith.constant 0 : i32
    return %c0_i32, %c0_i32_0, %c0_i32_1 : i32, i32, i32
  }
  func.func @transform_2(%arg0: i32) -> (i32, i32, i32, i32) {
    %c0_i32 = arith.constant 0 : i32
    %c0_i32_0 = arith.constant 0 : i32
    %c0_i32_1 = arith.constant 0 : i32
    %c0_i32_2 = arith.constant 0 : i32
    return %arg0, %c0_i32, %c0_i32_0, %c0_i32_1 : i32, i32, i32, i32
  }
  func.func @transform_3(%arg0: i32) -> (i32, i32, i32) {
    %c0_i32 = arith.constant 0 : i32
    %c0_i32_0 = arith.constant 0 : i32
    %c0_i32_1 = arith.constant 0 : i32
    return %arg0, %c0_i32, %c0_i32_0 : i32, i32, i32
  }
}

</mosaic_0001>

<bundles_post_ra>
// kernel: tpu_custom_call.1
= control target key start
LH: loop header
LB: loop body
LE: loop exit
PB: predicated region body
PF: predicated region fallthrough
CT: control target
= control target key end

     0   :  { %9 = vsyncpa [#allocation3], 0  ;;  %s4655_s0 = inlined_call_operand.vmem [shape: f32[2,8,8,4], index: 0, kind: input, shape index: {}]   ;;  %s4656_s1 = inlined_call_operand.vmem [shape: bf16[4,16,16], index: 1, kind: input, shape index: {}]   ;;  %s4657_s2 = inlined_call_operand.hbm [shape: f32[2,16,16,16], index: 2, kind: output, shape index: {0}]   ;;  %s4658_s3 = inlined_call_operand.hbm [shape: f32[2,2,16], index: 3, kind: output, shape index: {1}]  }
   0x1   :  { %11 = vsyncpa [#allocation3 + $0x1], 0 }
   0x2   :  { %12 = vsyncpa [#allocation5], 0 }
   0x3   :  { %14 = vsyncpa [#allocation5 + $0x1], 0  ;;  %s3141_s12 = smov 0   ;;  %s3143_s13 = smov 0  }
   0x4   :  { %s3145_s14 = smov 0   ;;  %s3147_s15 = smov 0  }
   0x5 LB: > { %s3162_s16 = sadd.s32 4294967295, %s3114_s15   ;;  %s2912_s17 = sadd.s32 4294967294, %s3114_s15   ;;  %s3114_s15 = sphi %s3147_s15, %s5131_s15   ;;  %s3110_s14 = sphi %s3145_s14, %s5130_s14   ;;  %s3106_s13 = sphi %s3143_s13, %s5129_s13   ;;  %s3102_s12 = sphi %s3141_s12, %s5128_s12  }
   0x6   : > { %s3166_s18 = sadd.s32 1, %s3114_s15   ;;  %s74_s19 = sadd.s32 1, %s3110_s14 }
   0x7   : > { %s71_s20 = ssub.s32 %s3114_s15, %s3166_s18  ;;  %p84_p0 = scmp.ne.s32.totalorder %s3110_s14, %s3106_s13 }
   0x8   : > { %p72_p1 = scmp.eq.s32.totalorder %s71_s20, 0  ;;  %p85_p2 = scmp.eq.s32.totalorder %s3162_s16, 1 }
   0x9   : > { %p90_p3 = scmp.ne.s32.totalorder %s3106_s13, %s3102_s12  ;;  %p91_p4 = scmp.eq.s32.totalorder %s2912_s17, 1 }
   0xa   : > { %s3177_s21 = scalar_select %p72_p1, %s3110_s14, %s74_s19  }
   0xb   : > { %p3179_p5 = por %p85_p2, %p84_p0  ;;  %p3183_p6 = por %p91_p4, %p90_p3 }
   0xc   : > { %p2915_p7 = scmp.ge.s32.totalorder %s3114_s15, 1  ;;  %p146_p8 = scmp.lt.s32.totalorder %s3114_s15, 3 }
   0xe   : > { %p147_p9 = pnand %p2915_p7, %p146_p8 }
  0x10   : > { %150 = sbr.rel (%p147_p9) target bundleno = 958 (0x3be), region = 28 }
  0x15   : > { %vm269_vm0 = vcmask 1040384   ;;  %vm270_vm1 = vsmask.f32 256  ;;  %vm281_vm2 = vcmask 1044480   ;;  %v3116_v0 = vmov 0   ;;  %p175_p10 = scmp.lt.s32.totalorder %s3162_s16, 1 }
  0x16   : > { %v200_v1 = vrot.slane %v3116_v0, 7  ;;  %vm3190_vm3 = vmand %vm269_vm0, %vm270_vm1  ;;  %vm282_vm4 = vsmask.f32 4352  ;;  %s3117_s29 = smov 4   ;;  %s3118_s30 = smov 8   ;;  %vm412_vm6 = vcmask 31744  }
  0x17   : > { %vm3195_vm5 = vmand %vm281_vm2, %vm282_vm4  ;;  %s176_s24 = scalar_select %p175_p10, %s3162_s16, 1  ;;  %vm429_vm7 = vcmask 64512   ;;  %vm446_vm8 = vcmask 97280   ;;  %vm491_vm9 = vcmask 130048   ;;  %vm557_vm10 = vsmask.f32 3328 }
  0x18   : > { %v272_v4 = vsel %vm3190_vm3, 0, %v200_v1  ;;  %s3119_s4 = smov 12   ;;  %vm558_vm11 = vsmask.f32 7440  ;;  %s3434_s19 = sand.u32 1, %s3106_s13  }
  0x19   : > { %v3204_v5 = vsel %vm3195_vm5, %v272_v4, 0  ;;  %s2965_s25 = sshll.u32 %s176_s24, 6  ;;  %vm3352_vm12 = vmor %vm557_vm10, %vm558_vm11  ;;  %s2916_s20 = sshll.u32 %s3434_s19, 8 }
  0x1a   : > { %v294_v6 = vshrl.u32 %v3204_v5, 16  ;;  %v296_v7 = vshll.u32 %v3204_v5, 16  ;;  %s3211_s28 = scalar_lea.vmem %s4655_s0, %s2965_s25  ;;  %s3448_s24 = scalar_lea.vmem [#allocation2], %s2916_s20 }
  0x1b   : > { %v181_v9 = vld [vmem:[%s3211_s28] sm:$0xff]  ;;  %v182_v10 = vld [vmem:[%s3211_s28 + $0x8] sm:$0xff]  ;;  %v183_v11 = vld [vmem:[%s3211_s28 + $0x10] sm:$0xff]  ;;  %s2970_s25 = sshll.u32 %s3162_s16, 8  ;;  %s2783_s5 = scalar_lea.sflag [#allocation3], %s3434_s19 }
  0x1c   : > { %v298_v8 = vrot.slane %v296_v7, 1  ;;  %v189_v12 = vpack.c.bf16 %v181_v9, %v181_v9  ;;  %v190_v13 = vpack.c.bf16 %v182_v10, %v182_v10  ;;  %v191_v14 = vpack.c.bf16 %v183_v11, %v183_v11  ;;  %v184_v20 = vld [vmem:[%s3211_s28 + $0x18] sm:$0xff]  ;;  %v185_v39 = vld [vmem:[%s3211_s28 + $0x20] sm:$0xff]  ;;  %v186_v51 = vld [vmem:[%s3211_s28 + $0x28] sm:$0xff]  ;;  %s3040_s10 = scalar_lea.hbm %s4657_s2, 512 }
  0x1d   : > { %v192_v26 = vpack.c.bf16 %v184_v20, %v184_v20  ;;  %v193_v43 = vpack.c.bf16 %v185_v39, %v185_v39  ;;  %v194_v56 = vpack.c.bf16 %v186_v51, %v186_v51  ;;  %v188_v0 = vld [vmem:[%s3211_s28 + $0x38] sm:$0xff]  ;;  %v187_v1 = vld [vmem:[%s3211_s28 + $0x30] sm:$0xff]  ;;  %s2799_s28 = scalar_lea.hbm %s4657_s2, %s2970_s25 }
  0x1e   : > { %v3216_v15 = vor.u32 %v298_v8, %v294_v6  ;;  %v205_v16 = vshrl.u32 %v189_v12, 16  ;;  %v208_v17 = vshll.u32 %v189_v12, 16  ;;  %v212_v18 = vshrl.u32 %v190_v13, 16 }
  0x1f   : > { %v215_v19 = vshll.u32 %v190_v13, 16  ;;  %v219_v21 = vshrl.u32 %v191_v14, 16  ;;  %v222_v25 = vshll.u32 %v191_v14, 16  ;;  %v226_v34 = vshrl.u32 %v192_v26, 16 }
  0x20   : > { %349 = vrot.lane.b32.xlu0 %v3216_v15, %s3117_s29  ;;  %v207_v22 = vrot.slane %v205_v16, 7  ;;  %v214_v23 = vrot.slane %v212_v18, 7  ;;  %v229_v42 = vshll.u32 %v192_v26, 16  ;;  %v233_v50 = vshrl.u32 %v193_v43, 16 }
  0x21   : > { %v221_v24 = vrot.slane %v219_v21, 7  ;;  %v228_v47 = vrot.slane %v226_v34, 7  ;;  %v236_v55 = vshll.u32 %v193_v43, 16  ;;  %v240_v61 = vshrl.u32 %v194_v56, 16 }
  0x22   : > { %v210_v27 = vor.u32 %v208_v17, %v207_v22  ;;  %v217_v28 = vor.u32 %v215_v19, %v214_v23  ;;  %v235_v54 = vrot.slane %v233_v50, 7  ;;  %v196_v4 = vpack.c.bf16 %v188_v0, %v188_v0  ;;  %v2967_v50 = vld [vmem:[%s4656_s1 + $0x8] sm:$0xff] }
  0x23   : > { %v224_v33 = vor.u32 %v222_v25, %v221_v24  ;;  %v231_v49 = vor.u32 %v229_v42, %v228_v47  ;;  %v242_v7 = vrot.slane %v240_v61, 7  ;;  %v243_v8 = vshll.u32 %v194_v56, 16  ;;  %v2968_v47 = vld [vmem:[%s4656_s1 + $0x10] sm:$0xff]  ;;  %712 = vmatpush.bf16.msra.mxu1 %v2967_v50 }
  0x24   : > { %v273_v29 = vsel %vm3190_vm3, 0, %v210_v27  ;;  %v274_v30 = vsel %vm3190_vm3, 0, %v217_v28  ;;  %v238_v60 = vor.u32 %v236_v55, %v235_v54  ;;  %v254_v9 = vshrl.u32 %v196_v4, 16  ;;  %781 = vmatpush.bf16.msra.mxu2 %v2968_v47 }
  0x25   : > { %v3227_v31 = vsel %vm3195_vm5, %v273_v29, 0  ;;  %v3231_v32 = vsel %vm3195_vm5, %v274_v30, 0  ;;  %v275_v46 = vsel %vm3190_vm3, 0, %v224_v33  ;;  %v276_v53 = vsel %vm3190_vm3, 0, %v231_v49 }
  0x26   : > { %373 = vrot.lane.b32.xlu1 %v3227_v31, %s3118_s30  ;;  %v301_v35 = vshrl.u32 %v3227_v31, 16  ;;  %v303_v36 = vshll.u32 %v3227_v31, 16  ;;  %v308_v37 = vshrl.u32 %v3231_v32, 16  ;;  %v310_v38 = vshll.u32 %v3231_v32, 16 }
  0x27   : > { %v3246_v48 = vsel %vm3195_vm5, %v275_v46, 0  ;;  %v3259_v59 = vsel %vm3195_vm5, %v276_v53, 0  ;;  %v277_v6 = vsel %vm3190_vm3, 0, %v238_v60  ;;  %v195_v12 = vpack.c.bf16 %v187_v1, %v187_v1  ;;  %v2966_v46 = vld [vmem:[%s4656_s1] sm:$0xff]  ;;  %v2969_v53 = vld [vmem:[%s4656_s1 + $0x18] sm:$0xff] }
  0x28   : > { %v305_v40 = vrot.slane %v303_v36, 1  ;;  %v312_v41 = vrot.slane %v310_v38, 1  ;;  %v317_v52 = vshll.u32 %v3246_v48, 16  ;;  %v315_v57 = vshrl.u32 %v3246_v48, 16  ;;  %511 = vmatpush.bf16.msra.mxu0 %v2966_v46  ;;  %853 = vmatpush.bf16.msra.mxu3 %v2969_v53 }
  0x29   : > { %v324_v63 = vshll.u32 %v3259_v59, 16  ;;  %v322_v10 = vshrl.u32 %v3259_v59, 16  ;;  %v257_v13 = vshll.u32 %v196_v4, 16  ;;  %v3273_v14 = vsel %vm3195_vm5, %v277_v6, 0 }
  0x2a   : > { %v306_v44 = vor.u32 %v305_v40, %v301_v35  ;;  %v313_v45 = vor.u32 %v312_v41, %v308_v37  ;;  %v319_v58 = vrot.slane %v317_v52, 1  ;;  %v256_v16 = vrot.slane %v254_v9, 7 }
  0x2b   : > { %v326_v11 = vrot.slane %v324_v63, 1  ;;  %v245_v17 = vor.u32 %v243_v8, %v242_v7  ;;  %v331_v20 = vshll.u32 %v3273_v14, 16  ;;  %v247_v21 = vshrl.u32 %v195_v12, 16 }
  0x2c   : > { %351 = vrot.lane.b32.xlu0 %v306_v44, %s3117_s29  ;;  %353 = vrot.lane.b32.xlu2 %v313_v45, %s3117_s29  ;;  %v320_v62 = vor.u32 %v319_v58, %v315_v57  ;;  %v259_v18 = vor.u32 %v257_v13, %v256_v16  ;;  %v329_v25 = vshrl.u32 %v3273_v14, 16  ;;  %v250_v28 = vshll.u32 %v195_v12, 16 }
  0x2d   : > { %v327_v19 = vor.u32 %v326_v11, %v322_v10  ;;  %v278_v23 = vsel %vm3190_vm3, 0, %v245_v17  ;;  %v333_v26 = vrot.slane %v331_v20, 1  ;;  %v249_v27 = vrot.slane %v247_v21, 7 }
  0x2e   : > { %375 = vrot.lane.b32.xlu1 %v3231_v32, %s3118_s30  ;;  %v280_v22 = vsel %vm3190_vm3, 0, %v259_v18  ;;  %v3291_v29 = vsel %vm3195_vm5, %v278_v23, 0 }
  0x2f   : > { %v3284_v24 = vsel %vm3195_vm5, %v280_v22, 0  ;;  %v334_v30 = vor.u32 %v333_v26, %v329_v25  ;;  %v338_v33 = vshll.u32 %v3291_v29, 16  ;;  %v252_v34 = vor.u32 %v250_v28, %v249_v27 }
  0x30   : > { %v336_v35 = vshrl.u32 %v3291_v29, 16  ;;  %v392_v43 = vshll.u32 %v3284_v24, 16  ;;  %v390_v3 = vshrl.u32 %v3284_v24, 16 }
  0x31   : > { %v340_v36 = vrot.slane %v338_v33, 1  ;;  %v279_v37 = vsel %vm3190_vm3, 0, %v252_v34 }
  0x32   : > { %v3305_v38 = vsel %vm3195_vm5, %v279_v37, 0 }
  0x33   : > { %v341_v39 = vor.u32 %v340_v36, %v336_v35  ;;  %v345_v40 = vshll.u32 %v3305_v38, 16  ;;  %v343_v41 = vshrl.u32 %v3305_v38, 16 }
  0x34   : > { %398 = vrot.lane.b32.xlu0 %v313_v45, %s3119_s4  ;;  %396 = vrot.lane.b32.xlu2 %v306_v44, %s3119_s4  ;;  %v394_v44 = vrot.slane %v392_v43, 1 }
  0x35   : > { %v347_v42 = vrot.slane %v345_v40, 1 }
  0x36   : > { %377 = vrot.lane.b32.xlu1 %v3246_v48, %s3118_s30  ;;  %v395_v45 = vor.u32 %v394_v44, %v390_v3 }
  0x37   : > { %v348_v2 = vor.u32 %v347_v42, %v343_v41 }
  0x3c   : > { %355 = vrot.lane.b32.xlu0 %v320_v62, %s3117_s29  ;;  %400 = vrot.lane.b32.xlu2 %v320_v62, %s3119_s4 }
  0x3e   : > { %379 = vrot.lane.b32.xlu1 %v3259_v59, %s3118_s30 }
  0x44   : > { %402 = vrot.lane.b32.xlu0 %v327_v19, %s3119_s4  ;;  %357 = vrot.lane.b32.xlu2 %v327_v19, %s3117_s29 }
  0x46   : > { %381 = vrot.lane.b32.xlu1 %v3273_v14, %s3118_s30 }
  0x4c   : > { %359 = vrot.lane.b32.xlu0 %v334_v30, %s3117_s29  ;;  %404 = vrot.lane.b32.xlu2 %v334_v30, %s3119_s4 }
  0x4e   : > { %383 = vrot.lane.b32.xlu1 %v3291_v29, %s3118_s30 }
  0x54   : > { %406 = vrot.lane.b32.xlu0 %v341_v39, %s3119_s4  ;;  %361 = vrot.lane.b32.xlu2 %v341_v39, %s3117_s29 }
  0x56   : > { %385 = vrot.lane.b32.xlu1 %v3305_v38, %s3118_s30 }
  0x5c   : > { %363 = vrot.lane.b32.xlu0 %v348_v2, %s3117_s29  ;;  %408 = vrot.lane.b32.xlu2 %v348_v2, %s3119_s4 }
  0x5e   : > { %387 = vrot.lane.b32.xlu1 %v3284_v24, %s3118_s30 }
  0x64   : > { %734 = vrot.lane.b32.xlu0 %v395_v45, %s3117_s29  ;;  %410 = vrot.lane.b32.xlu2 %v395_v45, %s3119_s4  ;;  %s2800_s29 = sshll.u32 %s3448_s24, 4  ;;  %s2801_s29 = int_to_ptr.vmem [resolvable:$true] %s2800_s29 }
  0x66   : > { %737 = vrot.lane.b32.xlu1 %v3204_v5, %s3118_s30 }
  0x6c   : > { %739 = vrot.lane.b32.xlu2 %v3216_v15, %s3119_s4  ;;  %s2802_s4 = sshll.u32 %s2799_s28, 4  ;;  %s2803_s4 = int_to_ptr.hbm [resolvable:$true] %s2802_s4 }
  0x6d   : > { %s3034_s6 = sshra.s32 %s2803_s4, 4  ;;  %s3035_s6 = int_to_ptr.hbm [resolvable:$true] %s3034_s6 }
  0x6e   : > { %s3036_s7 = scalar_lea.hbm %s3035_s6, 256  ;;  %p3041_p0 = scmp.lt.s32.totalorder %s3035_s6, %s4657_s2 }
  0x6f   : > { %p3037_p11 = scmp.ne.s32.totalorder %s3035_s6, %s3036_s7  ;;  %p3042_p1 = scmp.lt.s32.totalorder %s3040_s10, %s3036_s7 }
  0x71   : > { %p3038_p12 = pnand %p3037_p11, %p3179_p5  ;;  %p3043_p2 = por %p3042_p1, %p3041_p0 }
  0x73   : > { %p3039_p13 = pneg %p3038_p12 }
  0x75   : > { %p3044_p3 = pnand %p3043_p2, %p3039_p13 }
  0x86   : > { %v354_v49 = vpop.permute.xlu2 %353 }
  0x87   : > { %v418_v10 = vsel %vm412_vm6, %v3231_v32, %v354_v49 }
  0x8e   : > { %v397_v52 = vpop.permute.xlu2 %396 }
  0x92   : > { %v350_v51 = vpop.permute.xlu0 %349 }
  0x93   : > { %v414_v15 = vsel %vm412_vm6, %v3204_v5, %v350_v51 }
  0x96   : > { %v401_v61 = vpop.permute.xlu2 %400 }
  0x98   : > { %v374_v54 = vpop.permute.xlu1 %373 }
  0x99   : > { %v431_v55 = vsel %vm429_vm7, %v414_v15, %v374_v54 }
  0x9a   : > { %v448_v56 = vsel %vm446_vm8, %v431_v55, %v397_v52 }
  0x9b   : > { %v473_v57 = vunpack.c.l.b16 %v448_v56  ;;  %v533_v1 = vunpack.c.h.b16 %v448_v56 }
  0x9d   : > { %v541_v58 = vpack.c.b16 %v473_v57, %v473_v57  ;;  %v542_v11 = vpack.c.b16 %v533_v1, %v533_v1 }
  0x9e   : > { %v352_v60 = vpop.permute.xlu0 %351 }
  0x9f   : > { %v561_v63 = vshrl.u32 %v541_v58, 16  ;;  %v564_v5 = vshll.u32 %v541_v58, 16  ;;  %v416_v0 = vsel %vm412_vm6, %v3227_v31, %v352_v60  ;;  %v358_v31 = vpop.permute.xlu2 %357  ;;  %v570_v26 = vshll.u32 %v542_v11, 16 }
  0xa0   : > { %v376_v62 = vpop.permute.xlu1 %375  ;;  %v422_v60 = vsel %vm412_vm6, %v3259_v59, %v358_v31 }
  0xa1   : > { %v563_v4 = vrot.slane %v561_v63, 4  ;;  %v566_v6 = vrot.slane %v564_v5, 5  ;;  %v433_v7 = vsel %vm429_vm7, %v416_v0, %v376_v62  ;;  %v572_v2 = vrot.slane %v570_v26, 5 }
  0xa3   : > { %v567_v17 = vor.u32 %v566_v6, %v563_v4 }
  0xa5   : > { %v568_v34 = vrot.slane %v567_v17, 4 }
  0xa6   : > { %v399_v8 = vpop.permute.xlu0 %398 }
  0xa7   : > { %v450_v9 = vsel %vm446_vm8, %v433_v7, %v399_v8  ;;  %v573_v50 = vsel %vm3352_vm12, %v568_v34, %v572_v2  ;;  %v405_v15 = vpop.permute.xlu2 %404 }
  0xa8   : > { %v474_v12 = vunpack.c.l.b16 %v450_v9  ;;  %v534_v13 = vunpack.c.h.b16 %v450_v9  ;;  %v378_v16 = vpop.permute.xlu1 %377  ;;  %v675_v56 = vunpack.c.l.b16 %v573_v50 }
  0xa9   : > { %v435_v18 = vsel %vm429_vm7, %v418_v10, %v378_v16 }
  0xaa   : > { %v543_v19 = vpack.c.b16 %v474_v12, %v474_v12  ;;  %v544_v20 = vpack.c.b16 %v534_v13, %v534_v13  ;;  %v452_v21 = vsel %vm446_vm8, %v435_v18, %v401_v61  ;;  %v481_v22 = vpack.c.b16 %v474_v12, %v473_v57 }
  0xab   : > { %v475_v23 = vunpack.c.l.b16 %v452_v21  ;;  %v535_v25 = vunpack.c.h.b16 %v452_v21 }
  0xac   : > { %v575_v27 = vshrl.u32 %v543_v19, 16  ;;  %v578_v32 = vshll.u32 %v543_v19, 16  ;;  %2924 = vmatmul.msk.bf16.vlgmr.msra.gmra.mxu0 %vm491_vm9, %v481_v22  ;;  %v584_v37 = vshll.u32 %v544_v20, 16 }
  0xad   : > { %v545_v28 = vpack.c.b16 %v475_v23, %v475_v23  ;;  %v546_v30 = vpack.c.b16 %v535_v25, %v535_v25  ;;  %v752_v33 = vpack.c.b16 %v475_v23, %v474_v12 }
  0xae   : > { %v577_v35 = vrot.slane %v575_v27, 4  ;;  %v580_v36 = vrot.slane %v578_v32, 5  ;;  %v356_v39 = vpop.permute.xlu0 %355  ;;  %v586_v49 = vrot.slane %v584_v37, 5 }
  0xaf   : > { %v589_v40 = vshrl.u32 %v545_v28, 16  ;;  %v592_v41 = vshll.u32 %v545_v28, 16  ;;  %2944 = vmatmul.msk.bf16.vlgmr.msra.gmra.mxu2 %vm491_vm9, %v752_v33  ;;  %v598_v46 = vshll.u32 %v546_v30, 16  ;;  %v420_v47 = vsel %vm412_vm6, %v3246_v48, %v356_v39  ;;  %v362_v20 = vpop.permute.xlu2 %361 }
  0xb0   : > { %v380_v43 = vpop.permute.xlu1 %379  ;;  %v581_v3 = vor.u32 %v580_v36, %v577_v35 }
  0xb1   : > { %v591_v44 = vrot.slane %v589_v40, 4  ;;  %v594_v45 = vrot.slane %v592_v41, 5  ;;  %v437_v53 = vsel %vm429_vm7, %v420_v47, %v380_v43  ;;  %v600_v55 = vrot.slane %v598_v46, 5 }
  0xb2   : > { %v582_v51 = vrot.slane %v581_v3, 4  ;;  %v426_v3 = vsel %vm412_vm6, %v3291_v29, %v362_v20 }
  0xb3   : > { %v595_v52 = vor.u32 %v594_v45, %v591_v44 }
  0xb4   : > { %v587_v54 = vsel %vm3352_vm12, %v582_v51, %v586_v49 }
  0xb5   : > { %v676_v57 = vunpack.c.l.b16 %v587_v54  ;;  %v596_v58 = vrot.slane %v595_v52, 4 }
  0xb6   : > { %v403_v48 = vpop.permute.xlu0 %402 }
  0xb7   : > { %v454_v61 = vsel %vm446_vm8, %v437_v53, %v403_v48  ;;  %v683_v62 = vpack.c.b16 %v676_v57, %v675_v56  ;;  %v601_v63 = vsel %vm3352_vm12, %v596_v58, %v600_v55  ;;  %v409_v47 = vpop.permute.xlu2 %408 }
  0xb8   : > { %v476_v5 = vunpack.c.l.b16 %v454_v61  ;;  %v536_v0 = vunpack.c.h.b16 %v454_v61  ;;  %v382_v1 = vpop.permute.xlu1 %381  ;;  %v677_v4 = vunpack.c.l.b16 %v601_v63 }
  0xb9   : > { %v439_v6 = vsel %vm429_vm7, %v422_v60, %v382_v1  ;;  %2934 = vmatmul.msk.bf16.vlgmr.msra.gmra.mxu1 %vm491_vm9, %v683_v62 }
  0xba   : > { %v547_v7 = vpack.c.b16 %v476_v5, %v476_v5  ;;  %v548_v8 = vpack.c.b16 %v536_v0, %v536_v0  ;;  %v456_v9 = vsel %vm446_vm8, %v439_v6, %v405_v15  ;;  %v482_v59 = vpack.c.b16 %v476_v5, %v475_v23 }
  0xbb   : > { %v477_v10 = vunpack.c.l.b16 %v456_v9  ;;  %v537_v11 = vunpack.c.h.b16 %v456_v9  ;;  %v824_v12 = vpack.c.b16 %v677_v4, %v676_v57 }
  0xbc   : > { %v603_v13 = vshrl.u32 %v547_v7, 16  ;;  %v606_v16 = vshll.u32 %v547_v7, 16  ;;  %v612_v17 = vshll.u32 %v548_v8, 16  ;;  %2925 = vmatmul.msk.bf16.gmra.mxu0 %vm491_vm9, %v482_v59 }
  0xbd   : > { %v549_v18 = vpack.c.b16 %v477_v10, %v477_v10  ;;  %v550_v31 = vpack.c.b16 %v537_v11, %v537_v11  ;;  %2954 = vmatmul.msk.bf16.vlgmr.msra.gmra.mxu3 %vm491_vm9, %v824_v12  ;;  %v753_v19 = vpack.c.b16 %v477_v10, %v476_v5 }
  0xbe   : > { %v605_v21 = vrot.slane %v603_v13, 4  ;;  %v608_v22 = vrot.slane %v606_v16, 5  ;;  %v360_v25 = vpop.permute.xlu0 %359  ;;  %v614_v32 = vrot.slane %v612_v17, 5 }
  0xbf   : > { %v617_v26 = vshrl.u32 %v549_v18, 16  ;;  %v620_v27 = vshll.u32 %v549_v18, 16  ;;  %v626_v23 = vshll.u32 %v550_v31, 16  ;;  %2945 = vmatmul.msk.bf16.gmra.mxu2 %vm491_vm9, %v753_v19  ;;  %v424_v35 = vsel %vm412_vm6, %v3273_v14, %v360_v25  ;;  %v411_v9 = vpop.permute.xlu2 %410 }
  0xc0   : > { %v384_v28 = vpop.permute.xlu1 %383  ;;  %v609_v30 = vor.u32 %v608_v22, %v605_v21 }
  0xc1   : > { %v619_v33 = vrot.slane %v617_v26, 4  ;;  %v622_v34 = vrot.slane %v620_v27, 5  ;;  %v628_v37 = vrot.slane %v626_v23, 5  ;;  %v441_v40 = vsel %vm429_vm7, %v424_v35, %v384_v28 }
  0xc2   : > { %v610_v36 = vrot.slane %v609_v30, 4 }
  0xc3   : > { %v623_v39 = vor.u32 %v622_v34, %v619_v33 }
  0xc4   : > { %v615_v41 = vsel %vm3352_vm12, %v610_v36, %v614_v32 }
  0xc5   : > { %v678_v2 = vunpack.c.l.b16 %v615_v41  ;;  %v624_v43 = vrot.slane %v623_v39, 4 }
  0xc6   : > { %v407_v44 = vpop.permute.xlu0 %406 }
  0xc7   : > { %v458_v45 = vsel %vm446_vm8, %v441_v40, %v407_v44  ;;  %v684_v46 = vpack.c.b16 %v678_v2, %v677_v4  ;;  %v629_v14 = vsel %vm3352_vm12, %v624_v43, %v628_v37  ;;  %v740_v40 = vpop.permute.xlu2 %739 }
  0xc8   : > { %v478_v49 = vunpack.c.l.b16 %v458_v45  ;;  %v538_v50 = vunpack.c.h.b16 %v458_v45  ;;  %v386_v51 = vpop.permute.xlu1 %385  ;;  %v679_v15 = vunpack.c.l.b16 %v629_v14 }
  0xc9   : > { %v443_v52 = vsel %vm429_vm7, %v426_v3, %v386_v51  ;;  %2935 = vmatmul.msk.bf16.gmra.mxu1 %vm491_vm9, %v684_v46 }
  0xca   : > { %v551_v53 = vpack.c.b16 %v478_v49, %v478_v49  ;;  %v552_v54 = vpack.c.b16 %v538_v50, %v538_v50  ;;  %v460_v29 = vsel %vm446_vm8, %v443_v52, %v409_v47  ;;  %v483_v55 = vpack.c.b16 %v478_v49, %v477_v10 }
  0xcb   : > { %v479_v56 = vunpack.c.l.b16 %v460_v29  ;;  %v539_v57 = vunpack.c.h.b16 %v460_v29  ;;  %v825_v58 = vpack.c.b16 %v679_v15, %v678_v2 }
  0xcc   : > { %v631_v60 = vshrl.u32 %v551_v53, 16  ;;  %v634_v48 = vshll.u32 %v551_v53, 16  ;;  %v640_v61 = vshll.u32 %v552_v54, 16  ;;  %2926 = vmatmul.msk.bf16.gmra.mxu0 %vm491_vm9, %v483_v55 }
  0xcd   : > { %v553_v62 = vpack.c.b16 %v479_v56, %v479_v56  ;;  %v554_v63 = vpack.c.b16 %v539_v57, %v539_v57  ;;  %2955 = vmatmul.msk.bf16.gmra.mxu3 %vm491_vm9, %v825_v58  ;;  %v754_v5 = vpack.c.b16 %v479_v56, %v478_v49 }
  0xce   : > { %v633_v0 = vrot.slane %v631_v60, 4  ;;  %v636_v1 = vrot.slane %v634_v48, 5  ;;  %v364_v4 = vpop.permute.xlu0 %363  ;;  %v642_v59 = vrot.slane %v640_v61, 5 }
  0xcf   : > { %v645_v6 = vshrl.u32 %v553_v62, 16  ;;  %v648_v7 = vshll.u32 %v553_v62, 16  ;;  %v428_v8 = vsel %vm412_vm6, %v3305_v38, %v364_v4  ;;  %2946 = vmatmul.msk.bf16.gmra.mxu2 %vm491_vm9, %v754_v5  ;;  %v654_v10 = vshll.u32 %v554_v63, 16 }
  0xd0   : > { %v388_v11 = vpop.permute.xlu1 %387  ;;  %v637_v12 = vor.u32 %v636_v1, %v633_v0 }
  0xd1   : > { %v647_v13 = vrot.slane %v645_v6, 4  ;;  %v650_v16 = vrot.slane %v648_v7, 5  ;;  %v445_v17 = vsel %vm429_vm7, %v428_v8, %v388_v11  ;;  %v656_v22 = vrot.slane %v654_v10, 5 }
  0xd2   : > { %v462_v18 = vsel %vm446_vm8, %v445_v17, %v411_v9  ;;  %v638_v31 = vrot.slane %v637_v12, 4 }
  0xd3   : > { %v480_v19 = vunpack.c.l.b16 %v462_v18  ;;  %v540_v20 = vunpack.c.h.b16 %v462_v18  ;;  %v651_v21 = vor.u32 %v650_v16, %v647_v13 }
  0xd4   : > { %v643_v38 = vsel %vm3352_vm12, %v638_v31, %v642_v59 }
  0xd5   : > { %v555_v25 = vpack.c.b16 %v480_v19, %v480_v19  ;;  %v556_v26 = vpack.c.b16 %v540_v20, %v540_v20  ;;  %v680_v27 = vunpack.c.l.b16 %v643_v38  ;;  %v652_v23 = vrot.slane %v651_v21, 4 }
  0xd6   : > { %v735_v32 = vpop.permute.xlu0 %734  ;;  %v484_v36 = vpack.c.b16 %v480_v19, %v479_v56 }
  0xd7   : > { %v659_v28 = vshrl.u32 %v555_v25, 16  ;;  %v662_v30 = vshll.u32 %v555_v25, 16  ;;  %v668_v33 = vshll.u32 %v556_v26, 16  ;;  %v685_v34 = vpack.c.b16 %v680_v27, %v679_v15 }
  0xd8   : > { %v657_v35 = vsel %vm3352_vm12, %v652_v23, %v656_v22  ;;  %v742_v37 = vsel %vm412_vm6, %v3284_v24, %v735_v32  ;;  %v738_v39 = vpop.permute.xlu1 %737 }
  0xd9   : > { %v661_v41 = vrot.slane %v659_v28, 4  ;;  %v664_v2 = vrot.slane %v662_v30, 5  ;;  %2936 = vmatmul.msk.bf16.gmra.mxu1 %vm491_vm9, %v685_v34  ;;  %v681_v43 = vunpack.c.l.b16 %v657_v35  ;;  %v744_v3 = vsel %vm429_vm7, %v742_v37, %v738_v39 }
  0xda   : > { %v670_v44 = vrot.slane %v668_v33, 5  ;;  %v746_v47 = vsel %vm446_vm8, %v744_v3, %v740_v40 }
  0xdb   : > { %v826_v45 = vpack.c.b16 %v681_v43, %v680_v27  ;;  %v665_v46 = vor.u32 %v664_v2, %v661_v41  ;;  %v751_v14 = vunpack.c.l.b16 %v746_v47  ;;  %v803_v49 = vunpack.c.h.b16 %v746_v47 }
  0xdc   : > { %2927 = vmatmul.msk.bf16.gmra.mxu0 %vm491_vm9, %v484_v36 }
  0xdd   : > { %2956 = vmatmul.msk.bf16.gmra.mxu3 %vm491_vm9, %v826_v45  ;;  %v666_v24 = vrot.slane %v665_v46, 4  ;;  %v804_v50 = vpack.c.b16 %v751_v14, %v751_v14  ;;  %v805_v51 = vpack.c.b16 %v803_v49, %v803_v49  ;;  %v755_v15 = vpack.c.b16 %v751_v14, %v480_v19 }
  0xdf   : > { %v671_v52 = vsel %vm3352_vm12, %v666_v24, %v670_v44  ;;  %v807_v53 = vshrl.u32 %v804_v50, 16  ;;  %v810_v54 = vshll.u32 %v804_v50, 16  ;;  %v816_v29 = vshll.u32 %v805_v51, 16  ;;  %2947 = vmatmul.msk.bf16.gmra.mxu2 %vm491_vm9, %v755_v15 }
  0xe0   : > { %v682_v55 = vunpack.c.l.b16 %v671_v52 }
  0xe1   : > { %v809_v56 = vrot.slane %v807_v53, 4  ;;  %v812_v57 = vrot.slane %v810_v54, 5  ;;  %v818_v60 = vrot.slane %v816_v29, 5 }
  0xe2   : > { %v686_v48 = vpack.c.b16 %v682_v55, %v681_v43 }
  0xe3   : > { %v813_v58 = vor.u32 %v812_v57, %v809_v56 }
  0xe5   : > { %v814_v61 = vrot.slane %v813_v58, 4 }
  0xe7   : > { %v819_v62 = vsel %vm3352_vm12, %v814_v61, %v818_v60 }
  0xe8   : > { %v823_v63 = vunpack.c.l.b16 %v819_v62 }
  0xe9   : > { %2937 = vmatmul.msk.bf16.gmra.mxu1 %vm491_vm9, %v686_v48 }
  0xea   : > { %v827_v5 = vpack.c.b16 %v823_v63, %v682_v55 }
  0xed   : > { %2957 = vmatmul.msk.bf16.gmra.mxu3 %vm491_vm9, %v827_v5 }
 0x129   : > { %v513_v0 = vpop.f32.mrf.mxu0 }
 0x12a   : > { %v883_v1 = vrot.slane %v513_v0, 1  ;;  %v884_v4 = vrot.slane %v513_v0, 2  ;;  %v885_v6 = vrot.slane %v513_v0, 3  ;;  %v886_v7 = vrot.slane %v513_v0, 4 }
 0x12b   : > { %v887_v20 = vrot.slane %v513_v0, 5  ;;  %v888_v32 = vrot.slane %v513_v0, 6  ;;  %v889_v30 = vrot.slane %v513_v0, 7 }
 0x132   : > { %v783_v37 = vpop.f32.mrf.mxu2 }
 0x133   : > { %v1260_v40 = vrot.slane %v783_v37, 1  ;;  %v1261_v2 = vrot.slane %v783_v37, 2  ;;  %v1262_v15 = vrot.slane %v783_v37, 3  ;;  %v1263_v52 = vrot.slane %v783_v37, 4 }
 0x134   : > { %v1264_v58 = vrot.slane %v783_v37, 5  ;;  %v1265_v62 = vrot.slane %v783_v37, 6  ;;  %v1266_v5 = vrot.slane %v783_v37, 7 }
 0x136   : > { %v714_v8 = vpop.f32.mrf.mxu1 }
 0x137   : > { %v1003_v9 = vrot.slane %v714_v8, 1  ;;  %v1004_v59 = vrot.slane %v714_v8, 2  ;;  %v1005_v10 = vrot.slane %v714_v8, 3  ;;  %v1006_v11 = vrot.slane %v714_v8, 4 }
 0x138   : > { %v1007_v12 = vrot.slane %v714_v8, 5  ;;  %v1008_v13 = vrot.slane %v714_v8, 6  ;;  %v1009_v42 = vrot.slane %v714_v8, 7  ;;  %v1059_v16 = vperm.slane %v714_v8, 0 }
 0x139   : > { %v1060_v17 = vperm.slane %v1003_v9, 0  ;;  %v1061_v18 = vperm.slane %v1004_v59, 0  ;;  %v1062_v31 = vperm.slane %v1005_v10, 0  ;;  %v1063_v19 = vperm.slane %v1006_v11, 0  ;;  %v515_v9 = vpop.f32.mrf.mxu0 }
 0x13a   : > { %v1064_v21 = vperm.slane %v1007_v12, 0  ;;  %v1065_v22 = vperm.slane %v1008_v13, 0  ;;  %v3413_v38 = vsel %vm269_vm0, %v513_v0, %v1059_v16  ;;  %v1066_v25 = vperm.slane %v1009_v42, 0 }
 0x13b   : > { %v3416_v26 = vsel %vm269_vm0, %v883_v1, %v1060_v17  ;;  %v3419_v27 = vsel %vm269_vm0, %v884_v4, %v1061_v18  ;;  %v3422_v23 = vsel %vm269_vm0, %v885_v6, %v1062_v31  ;;  %1756 = vst [vmem:[#allocation1] ss:$4 sm:$0xff] %v3413_v38  ;;  %v3426_v28 = vsel %vm269_vm0, %v886_v7, %v1063_v19 }
 0x13c   : > { %1758 = vst [vmem:[#allocation1 + $0x1] ss:$4 sm:$0xff] %v3416_v26  ;;  %v3430_v33 = vsel %vm269_vm0, %v887_v20, %v1064_v21  ;;  %v3437_v34 = vsel %vm269_vm0, %v888_v32, %v1065_v22  ;;  %v3441_v35 = vsel %vm269_vm0, %v889_v30, %v1066_v25  ;;  %v890_v16 = vrot.slane %v515_v9, 1 }
 0x13d   : > { %1760 = vst [vmem:[#allocation1 + $0x2] ss:$4 sm:$0xff] %v3419_v27  ;;  %v891_v31 = vrot.slane %v515_v9, 2  ;;  %v892_v22 = vrot.slane %v515_v9, 3 }
 0x13e   : > { %1762 = vst [vmem:[#allocation1 + $0x3] ss:$4 sm:$0xff] %v3422_v23  ;;  %v716_v60 = vpop.f32.mrf.mxu1 }
 0x13f   : > { %1764 = vst [vmem:[#allocation1 + $0x20] ss:$4 sm:$0xff] %v3426_v28  ;;  %v1010_v1 = vrot.slane %v716_v60, 1  ;;  %v1011_v6 = vrot.slane %v716_v60, 2  ;;  %v1012_v8 = vrot.slane %v716_v60, 3  ;;  %v1013_v59 = vrot.slane %v716_v60, 4 }
 0x140   : > { %1766 = vst [vmem:[#allocation1 + $0x21] ss:$4 sm:$0xff] %v3430_v33  ;;  %v855_v39 = vpop.f32.mrf.mxu3  ;;  %v1067_v10 = vperm.slane %v716_v60, 0  ;;  %v1014_v11 = vrot.slane %v716_v60, 5  ;;  %v1015_v13 = vrot.slane %v716_v60, 6  ;;  %v1016_v17 = vrot.slane %v716_v60, 7 }
 0x141   : > { %1768 = vst [vmem:[#allocation1 + $0x22] ss:$4 sm:$0xff] %v3437_v34  ;;  %v1380_v43 = vrot.slane %v855_v39, 1  ;;  %v1381_v3 = vrot.slane %v855_v39, 2  ;;  %v1382_v44 = vrot.slane %v855_v39, 3  ;;  %v1383_v45 = vrot.slane %v855_v39, 4 }
 0x142   : > { %1770 = vst [vmem:[#allocation1 + $0x23] ss:$4 sm:$0xff] %v3441_v35  ;;  %v1384_v46 = vrot.slane %v855_v39, 5  ;;  %v1385_v47 = vrot.slane %v855_v39, 6  ;;  %v1386_v14 = vrot.slane %v855_v39, 7  ;;  %v1436_v49 = vperm.slane %v855_v39, 0 }
 0x143   : > { %v1437_v24 = vperm.slane %v1380_v43, 0  ;;  %v1438_v50 = vperm.slane %v1381_v3, 0  ;;  %v1439_v51 = vperm.slane %v1382_v44, 0  ;;  %v1440_v53 = vperm.slane %v1383_v45, 0 }
 0x144   : > { %v1441_v54 = vperm.slane %v1384_v46, 0  ;;  %v1442_v29 = vperm.slane %v1385_v47, 0  ;;  %v3455_v55 = vsel %vm269_vm0, %v783_v37, %v1436_v49  ;;  %v1443_v48 = vperm.slane %v1386_v14, 0 }
 0x145   : > { %v1771_v36 = vld.sshfl [vmem:[#allocation1] sm:$0xff pattern:$0x73625140]  ;;  %v3458_v56 = vsel %vm269_vm0, %v1260_v40, %v1437_v24  ;;  %v3461_v57 = vsel %vm269_vm0, %v1261_v2, %v1438_v50  ;;  %v3464_v61 = vsel %vm269_vm0, %v1262_v15, %v1439_v51  ;;  %v3468_v63 = vsel %vm269_vm0, %v1263_v52, %v1440_v53  ;;  %v785_v50 = vpop.f32.mrf.mxu2 }
 0x146   : > { %1955 = vst.msk [vmem:[%s3448_s24] sm:$0xff] %vm491_vm9, %v1771_v36  ;;  %v3472_v0 = vsel %vm269_vm0, %v1264_v58, %v1441_v54  ;;  %v3476_v4 = vsel %vm269_vm0, %v1265_v62, %v1442_v29  ;;  %v3480_v7 = vsel %vm269_vm0, %v1266_v5, %v1443_v48  ;;  %v1068_v12 = vperm.slane %v1010_v1, 0 }
 0x147   : > { %1773 = vst [vmem:[#allocation1] ss:$4 sm:$0xff] %v3455_v55  ;;  %v1069_v42 = vperm.slane %v1011_v6, 0  ;;  %v1070_v18 = vperm.slane %v1012_v8, 0  ;;  %v1071_v19 = vperm.slane %v1013_v59, 0  ;;  %v3487_v20 = vsel %vm269_vm0, %v515_v9, %v1067_v10  ;;  %v719_v59 = vpop.f32.mrf.mxu1 }
 0x148   : > { %1774 = vst [vmem:[#allocation1 + $0x1] ss:$4 sm:$0xff] %v3458_v56  ;;  %v1072_v25 = vperm.slane %v1014_v11, 0  ;;  %v3490_v32 = vsel %vm269_vm0, %v890_v16, %v1068_v12  ;;  %v857_v30 = vpop.f32.mrf.mxu3  ;;  %v893_v36 = vrot.slane %v515_v9, 4  ;;  %v1073_v37 = vperm.slane %v1015_v13, 0 }
 0x149   : > { %v1772_v41 = vld.sshfl [vmem:[#allocation1 + $0x20] sm:$0xff pattern:$0x73625140]  ;;  %1775 = vst [vmem:[#allocation1 + $0x2] ss:$4 sm:$0xff] %v3461_v57  ;;  %v3494_v39 = vsel %vm269_vm0, %v891_v31, %v1069_v42  ;;  %v894_v40 = vrot.slane %v515_v9, 5  ;;  %v3498_v43 = vsel %vm269_vm0, %v892_v22, %v1070_v18 }
 0x14a   : > { %1956 = vst.msk [vmem:[%s3448_s24 + $0x8] sm:$0xff] %vm491_vm9, %v1772_v41  ;;  %v895_v41 = vrot.slane %v515_v9, 6  ;;  %v1074_v2 = vperm.slane %v1016_v17, 0  ;;  %v3502_v3 = vsel %vm269_vm0, %v893_v36, %v1071_v19  ;;  %v1387_v45 = vrot.slane %v857_v30, 1 }
 0x14b   : > { %1776 = vst [vmem:[#allocation1 + $0x3] ss:$4 sm:$0xff] %v3464_v61  ;;  %v896_v46 = vrot.slane %v515_v9, 7  ;;  %v3506_v47 = vsel %vm269_vm0, %v894_v40, %v1072_v25  ;;  %v1388_v14 = vrot.slane %v857_v30, 2  ;;  %v1389_v24 = vrot.slane %v857_v30, 3 }
 0x14c   : > { %1777 = vst [vmem:[#allocation1 + $0x20] ss:$4 sm:$0xff] %v3468_v63  ;;  %v3510_v49 = vsel %vm269_vm0, %v895_v41, %v1073_v37  ;;  %v1390_v15 = vrot.slane %v857_v30, 4  ;;  %v1444_v52 = vperm.slane %v857_v30, 0  ;;  %v1391_v53 = vrot.slane %v857_v30, 5  ;;  %v518_v41 = vpop.f32.mrf.mxu0 }
 0x14d   : > { %1778 = vst [vmem:[#allocation1 + $0x21] ss:$4 sm:$0xff] %v3472_v0  ;;  %v3514_v51 = vsel %vm269_vm0, %v896_v46, %v1074_v2  ;;  %v1445_v54 = vperm.slane %v1387_v45, 0  ;;  %v1392_v29 = vrot.slane %v857_v30, 6  ;;  %v1446_v58 = vperm.slane %v1388_v14, 0 }
 0x14e   : > { %1779 = vst [vmem:[#allocation1 + $0x22] ss:$4 sm:$0xff] %v3476_v4  ;;  %v1267_v60 = vrot.slane %v785_v50, 1  ;;  %v1393_v48 = vrot.slane %v857_v30, 7  ;;  %v1447_v62 = vperm.slane %v1389_v24, 0  ;;  %v1268_v5 = vrot.slane %v785_v50, 2 }
 0x14f   : > { %1780 = vst [vmem:[#allocation1 + $0x23] ss:$4 sm:$0xff] %v3480_v7  ;;  %v1448_v6 = vperm.slane %v1390_v15, 0  ;;  %v3523_v8 = vsel %vm269_vm0, %v785_v50, %v1444_v52  ;;  %v1269_v9 = vrot.slane %v785_v50, 3  ;;  %v1449_v10 = vperm.slane %v1391_v53, 0 }
 0x150   : > { %v3526_v11 = vsel %vm269_vm0, %v1267_v60, %v1445_v54  ;;  %v1270_v12 = vrot.slane %v785_v50, 4  ;;  %v1450_v13 = vperm.slane %v1392_v29, 0  ;;  %v3530_v42 = vsel %vm269_vm0, %v1268_v5, %v1446_v58 }
 0x151   : > { %v1271_v16 = vrot.slane %v785_v50, 5  ;;  %v1272_v17 = vrot.slane %v785_v50, 6  ;;  %v1451_v18 = vperm.slane %v1393_v48, 0  ;;  %v3534_v31 = vsel %vm269_vm0, %v1269_v9, %v1447_v62 }
 0x152   : > { %v1781_v21 = vld.sshfl [vmem:[#allocation1] sm:$0xff pattern:$0x73625140]  ;;  %v3538_v22 = vsel %vm269_vm0, %v1270_v12, %v1448_v6  ;;  %v1273_v25 = vrot.slane %v785_v50, 7  ;;  %v1018_v30 = vrot.slane %v719_v59, 2  ;;  %v1019_v37 = vrot.slane %v719_v59, 3  ;;  %v860_v6 = vpop.f32.mrf.mxu3 }
 0x153   : > { %1783 = vst [vmem:[#allocation1] ss:$4 sm:$0xff] %v3487_v20  ;;  %v3542_v36 = vsel %vm269_vm0, %v1271_v16, %v1449_v10  ;;  %v3546_v40 = vsel %vm269_vm0, %v1272_v17, %v1450_v13  ;;  %v1020_v2 = vrot.slane %v719_v59, 4  ;;  %v1021_v46 = vrot.slane %v719_v59, 5 }
 0x154   : > { %1784 = vst [vmem:[#allocation1 + $0x1] ss:$4 sm:$0xff] %v3490_v32  ;;  %v3550_v45 = vsel %vm269_vm0, %v1273_v25, %v1451_v18  ;;  %v1022_v24 = vrot.slane %v719_v59, 6  ;;  %v1077_v50 = vperm.slane %v1018_v30, 0  ;;  %v897_v15 = vrot.slane %v518_v41, 1 }
 0x155   : > { %1785 = vst [vmem:[#allocation1 + $0x2] ss:$4 sm:$0xff] %v3494_v39  ;;  %v1023_v52 = vrot.slane %v719_v59, 7  ;;  %v1078_v53 = vperm.slane %v1019_v37, 0  ;;  %v898_v54 = vrot.slane %v518_v41, 2  ;;  %v1079_v29 = vperm.slane %v1020_v2, 0 }
 0x156   : > { %v1782_v44 = vld.sshfl [vmem:[#allocation1 + $0x20] sm:$0xff pattern:$0x73625140]  ;;  %1786 = vst [vmem:[#allocation1 + $0x3] ss:$4 sm:$0xff] %v3498_v43  ;;  %v899_v48 = vrot.slane %v518_v41, 3 }
 0x157   : > { %1787 = vst [vmem:[#allocation1 + $0x20] ss:$4 sm:$0xff] %v3502_v3  ;;  %v1080_v62 = vperm.slane %v1021_v46, 0  ;;  %v1081_v9 = vperm.slane %v1022_v24, 0  ;;  %v901_v10 = vrot.slane %v518_v41, 5  ;;  %v902_v12 = vrot.slane %v518_v41, 6 }
 0x158   : > { %1788 = vst [vmem:[#allocation1 + $0x21] ss:$4 sm:$0xff] %v3506_v47  ;;  %v1082_v13 = vperm.slane %v1023_v52, 0  ;;  %v3570_v16 = vsel %vm269_vm0, %v899_v48, %v1078_v53  ;;  %v1395_v30 = vrot.slane %v860_v6, 2  ;;  %v1396_v2 = vrot.slane %v860_v6, 3 }
 0x159   : > { %1789 = vst [vmem:[#allocation1 + $0x22] ss:$4 sm:$0xff] %v3510_v49  ;;  %v3578_v25 = vsel %vm269_vm0, %v901_v10, %v1080_v62  ;;  %v3582_v37 = vsel %vm269_vm0, %v902_v12, %v1081_v9  ;;  %v1452_v46 = vperm.slane %v860_v6, 0  ;;  %v721_v12 = vpop.f32.mrf.mxu1 }
 0x15a   : > { %1790 = vst [vmem:[#allocation1 + $0x23] ss:$4 sm:$0xff] %v3514_v51  ;;  %v1454_v52 = vperm.slane %v1395_v30, 0 }
 0x15b   : > { %1957 = vst.msk [vmem:[%s3448_s24 + $0x10] sm:$0xff] %vm491_vm9, %v1781_v21  ;;  %v1017_v21 = vrot.slane %v719_v59, 1 }
 0x15c   : > { %1958 = vst.msk [vmem:[%s3448_s24 + $0x18] sm:$0xff] %vm491_vm9, %v1782_v44  ;;  %v1075_v44 = vperm.slane %v719_v59, 0  ;;  %v3566_v59 = vsel %vm269_vm0, %v898_v54, %v1077_v50  ;;  %v788_v50 = vpop.f32.mrf.mxu2  ;;  %v1400_v54 = vrot.slane %v860_v6, 7 }
 0x15d   : > { %v1791_v1 = vld.sshfl [vmem:[#allocation1] sm:$0xff pattern:$0x73625140]  ;;  %v1076_v14 = vperm.slane %v1017_v21, 0  ;;  %v903_v21 = vrot.slane %v518_v41, 7  ;;  %v1274_v53 = vrot.slane %v788_v50, 1  ;;  %v3595_v9 = vsel %vm269_vm0, %v788_v50, %v1452_v46 }
 0x15e   : > { %1793 = vst [vmem:[#allocation1] ss:$4 sm:$0xff] %v3523_v8  ;;  %v3559_v58 = vsel %vm269_vm0, %v518_v41, %v1075_v44  ;;  %v1275_v48 = vrot.slane %v788_v50, 2  ;;  %v1276_v10 = vrot.slane %v788_v50, 3  ;;  %v1279_v30 = vrot.slane %v788_v50, 6 }
 0x15f   : > { %1794 = vst [vmem:[#allocation1 + $0x1] ss:$4 sm:$0xff] %v3526_v11  ;;  %v3562_v5 = vsel %vm269_vm0, %v897_v15, %v1076_v14  ;;  %v3586_v44 = vsel %vm269_vm0, %v903_v21, %v1082_v13  ;;  %v1398_v14 = vrot.slane %v860_v6, 5  ;;  %v1399_v15 = vrot.slane %v860_v6, 6 }
 0x160   : > { %1795 = vst [vmem:[#allocation1 + $0x2] ss:$4 sm:$0xff] %v3530_v42 }
 0x161   : > { %v1792_v19 = vld.sshfl [vmem:[#allocation1 + $0x20] sm:$0xff pattern:$0x73625140]  ;;  %1796 = vst [vmem:[#allocation1 + $0x3] ss:$4 sm:$0xff] %v3534_v31  ;;  %v1457_v13 = vperm.slane %v1398_v14, 0 }
 0x162   : > { %1797 = vst [vmem:[#allocation1 + $0x20] ss:$4 sm:$0xff] %v3538_v22  ;;  %v1458_v21 = vperm.slane %v1399_v15, 0  ;;  %v1024_v14 = vrot.slane %v721_v12, 1  ;;  %v1280_v15 = vrot.slane %v788_v50, 7 }
 0x163   : > { %1798 = vst [vmem:[#allocation1 + $0x21] ss:$4 sm:$0xff] %v3542_v36 }
 0x164   : > { %1799 = vst [vmem:[#allocation1 + $0x22] ss:$4 sm:$0xff] %v3546_v40 }
 0x165   : > { %1800 = vst [vmem:[#allocation1 + $0x23] ss:$4 sm:$0xff] %v3550_v45 }
 0x166   : > { %1959 = vst.msk [vmem:[%s3448_s24 + $0x20] sm:$0xff] %vm491_vm9, %v1791_v1  ;;  %v900_v1 = vrot.slane %v518_v41, 4  ;;  %v1397_v41 = vrot.slane %v860_v6, 4 }
 0x167   : > { %1960 = vst.msk [vmem:[%s3448_s24 + $0x28] sm:$0xff] %vm491_vm9, %v1792_v19  ;;  %v1394_v19 = vrot.slane %v860_v6, 1  ;;  %v3602_v6 = vsel %vm269_vm0, %v1275_v48, %v1454_v52  ;;  %v1025_v52 = vrot.slane %v721_v12, 2  ;;  %v520_v48 = vpop.f32.mrf.mxu0 }
 0x168   : > { %v1801_v60 = vld.sshfl [vmem:[#allocation1] sm:$0xff pattern:$0x73625140]  ;;  %v3574_v17 = vsel %vm269_vm0, %v900_v1, %v1079_v29  ;;  %4834 = vst [vmem:[#allocation8_spill] sm:$0xff] %v3586_v44  ;;  %v1455_v29 = vperm.slane %v1396_v2, 0  ;;  %v1456_v1 = vperm.slane %v1397_v41, 0 }
 0x169   : > { %1803 = vst [vmem:[#allocation1] ss:$4 sm:$0xff] %v3559_v58  ;;  %v1453_v24 = vperm.slane %v1394_v19, 0  ;;  %v1459_v2 = vperm.slane %v1400_v54, 0  ;;  %v1026_v54 = vrot.slane %v721_v12, 3 }
 0x16a   : > { %1804 = vst [vmem:[#allocation1 + $0x1] ss:$4 sm:$0xff] %v3562_v5  ;;  %v3606_v41 = vsel %vm269_vm0, %v1276_v10, %v1455_v29  ;;  %v3618_v29 = vsel %vm269_vm0, %v1279_v30, %v1458_v21  ;;  %v1083_v10 = vperm.slane %v721_v12, 0  ;;  %v904_v21 = vrot.slane %v520_v48, 1 }
 0x16b   : > { %1805 = vst [vmem:[#allocation1 + $0x2] ss:$4 sm:$0xff] %v3566_v59  ;;  %v3598_v19 = vsel %vm269_vm0, %v1274_v53, %v1453_v24  ;;  %v1030_v30 = vrot.slane %v721_v12, 7 }
 0x16c   : > { %v1802_v18 = vld.sshfl [vmem:[#allocation1 + $0x20] sm:$0xff pattern:$0x73625140]  ;;  %1806 = vst [vmem:[#allocation1 + $0x3] ss:$4 sm:$0xff] %v3570_v16 }
 0x16d   : > { %1807 = vst [vmem:[#allocation1 + $0x20] ss:$4 sm:$0xff] %v3574_v17 }
 0x16e   : > { %1808 = vst [vmem:[#allocation1 + $0x21] ss:$4 sm:$0xff] %v3578_v25 }
 0x16f   : > { %1809 = vst [vmem:[#allocation1 + $0x22] ss:$4 sm:$0xff] %v3582_v37 }
 0x170   : > { %1810 = vst [vmem:[#allocation1 + $0x23] ss:$4 sm:$0xff] %v3586_v44 }
 0x171   : > { %1961 = vst.msk [vmem:[%s3448_s24 + $0x30] sm:$0xff] %vm491_vm9, %v1801_v60  ;;  %v1277_v60 = vrot.slane %v788_v50, 4 }
 0x172   : > { %1962 = vst.msk [vmem:[%s3448_s24 + $0x38] sm:$0xff] %vm491_vm9, %v1802_v18  ;;  %v1278_v18 = vrot.slane %v788_v50, 5  ;;  %v1028_v50 = vrot.slane %v721_v12, 5 }
 0x173   : > { %v1811_v62 = vld.sshfl [vmem:[#allocation1] sm:$0xff pattern:$0x73625140]  ;;  %4835 = vst [vmem:[#allocation9_spill] sm:$0xff] %v3595_v9  ;;  %v3610_v24 = vsel %vm269_vm0, %v1277_v60, %v1456_v1  ;;  %v1027_v1 = vrot.slane %v721_v12, 4  ;;  %v3622_v60 = vsel %vm269_vm0, %v1280_v15, %v1459_v2  ;;  %v3631_v2 = vsel %vm269_vm0, %v520_v48, %v1083_v10 }
 0x174   : > { %4836 = vst [vmem:[#allocation10_spill] sm:$0xff] %v3598_v19  ;;  %v3614_v53 = vsel %vm269_vm0, %v1278_v18, %v1457_v13  ;;  %v1084_v13 = vperm.slane %v1024_v14, 0  ;;  %v1029_v18 = vrot.slane %v721_v12, 6 }
 0x175   : > { %1813 = vst [vmem:[#allocation1] ss:$4 sm:$0xff] %v3595_v9 }
 0x176   : > { %4837 = vst [vmem:[#allocation11_spill] sm:$0xff] %v3602_v6  ;;  %v3634_v14 = vsel %vm269_vm0, %v904_v21, %v1084_v13  ;;  %v910_v21 = vrot.slane %v520_v48, 7 }
 0x177   : > { %1814 = vst [vmem:[#allocation1 + $0x1] ss:$4 sm:$0xff] %v3598_v19  ;;  %v1812_v46 = vld.sshfl [vmem:[#allocation1 + $0x20] sm:$0xff pattern:$0x73625140]  ;;  %v1088_v19 = vperm.slane %v1028_v50, 0 }
 0x178   : > { %4838 = vst [vmem:[#allocation12_spill] sm:$0xff] %v3606_v41 }
 0x179   : > { %1815 = vst [vmem:[#allocation1 + $0x2] ss:$4 sm:$0xff] %v3602_v6  ;;  %v1087_v6 = vperm.slane %v1027_v1, 0  ;;  %v1090_v1 = vperm.slane %v1030_v30, 0 }
 0x17a   : > { %4839 = vst [vmem:[#allocation13_spill] sm:$0xff] %v3610_v24 }
 0x17b   : > { %1816 = vst [vmem:[#allocation1 + $0x3] ss:$4 sm:$0xff] %v3606_v41  ;;  %v1086_v41 = vperm.slane %v1026_v54, 0  ;;  %v909_v54 = vrot.slane %v520_v48, 6  ;;  %v3658_v30 = vsel %vm269_vm0, %v910_v21, %v1090_v1 }
 0x17c   : > { %4840 = vst [vmem:[#allocation14_spill] sm:$0xff] %v3614_v53 }
 0x17d   : > { %1817 = vst [vmem:[#allocation1 + $0x20] ss:$4 sm:$0xff] %v3610_v24  ;;  %v1085_v24 = vperm.slane %v1025_v52, 0  ;;  %v862_v52 = vpop.f32.mrf.mxu3 }
 0x17e   : > { %4841 = vst [vmem:[#allocation15_spill] sm:$0xff] %v3618_v29 }
 0x17f   : > { %1818 = vst [vmem:[#allocation1 + $0x21] ss:$4 sm:$0xff] %v3614_v53  ;;  %v905_v53 = vrot.slane %v520_v48, 2 }
 0x180   : > { %4842 = vst [vmem:[#allocation16_spill] sm:$0xff] %v3622_v60 }
 0x181   : > { %1819 = vst [vmem:[#allocation1 + $0x22] ss:$4 sm:$0xff] %v3618_v29  ;;  %v906_v29 = vrot.slane %v520_v48, 3  ;;  %v3638_v12 = vsel %vm269_vm0, %v905_v53, %v1085_v24  ;;  %v1402_v53 = vrot.slane %v862_v52, 2 }
 0x182   : > { %1820 = vst [vmem:[#allocation1 + $0x23] ss:$4 sm:$0xff] %v3622_v60  ;;  %v1821_v15 = vld.sshfl [vmem:[#allocation1] sm:$0xff pattern:$0x73625140]  ;;  %v1089_v60 = vperm.slane %v1029_v18, 0 }
 0x183   : > { %1963 = vst.msk [vmem:[%s3448_s24 + $0x40] sm:$0xff] %vm491_vm9, %v1811_v62  ;;  %v907_v62 = vrot.slane %v520_v48, 4  ;;  %v3642_v10 = vsel %vm269_vm0, %v906_v29, %v1086_v41  ;;  %v1401_v18 = vrot.slane %v862_v52, 1  ;;  %v790_v29 = vpop.f32.mrf.mxu2 }
 0x184   : > { %1964 = vst.msk [vmem:[%s3448_s24 + $0x48] sm:$0xff] %vm491_vm9, %v1812_v46  ;;  %v908_v46 = vrot.slane %v520_v48, 5  ;;  %v3654_v41 = vsel %vm269_vm0, %v909_v54, %v1089_v60  ;;  %v1404_v48 = vrot.slane %v862_v52, 4  ;;  %v1281_v60 = vrot.slane %v790_v29, 1 }
 0x185   : > { %4843 = vst [vmem:[#allocation17_spill] sm:$0xff] %v3631_v2  ;;  %v3646_v50 = vsel %vm269_vm0, %v907_v62, %v1087_v6  ;;  %v1403_v6 = vrot.slane %v862_v52, 3  ;;  %v1405_v62 = vrot.slane %v862_v52, 5  ;;  %v1407_v54 = vrot.slane %v862_v52, 7 }
 0x186   : > { %4844 = vst [vmem:[#allocation18_spill] sm:$0xff] %v3634_v14  ;;  %v3650_v24 = vsel %vm269_vm0, %v908_v46, %v1088_v19  ;;  %v1460_v19 = vperm.slane %v862_v52, 0  ;;  %v1461_v46 = vperm.slane %v1401_v18, 0  ;;  %v1464_v21 = vperm.slane %v1404_v48, 0 }
 0x187   : > { %1823 = vst [vmem:[#allocation1] ss:$4 sm:$0xff] %v3631_v2  ;;  %v724_v2 = vpop.f32.mrf.mxu1  ;;  %v1467_v48 = vperm.slane %v1407_v54, 0 }
 0x188   : > { %4845 = vst [vmem:[#allocation19_spill] sm:$0xff] %v3638_v12  ;;  %v3670_v18 = vsel %vm269_vm0, %v1281_v60, %v1461_v46  ;;  %v1031_v46 = vrot.slane %v724_v2, 1  ;;  %v1033_v54 = vrot.slane %v724_v2, 3 }
 0x189   : > { %1824 = vst [vmem:[#allocation1 + $0x1] ss:$4 sm:$0xff] %v3634_v14  ;;  %v1822_v13 = vld.sshfl [vmem:[#allocation1 + $0x20] sm:$0xff pattern:$0x73625140]  ;;  %v1283_v14 = vrot.slane %v790_v29, 3 }
 0x18a   : > { %4846 = vst [vmem:[#allocation20_spill] sm:$0xff] %v3642_v10 }
 0x18b   : > { %1825 = vst [vmem:[#allocation1 + $0x2] ss:$4 sm:$0xff] %v3638_v12  ;;  %v1282_v12 = vrot.slane %v790_v29, 2 }
 0x18c   : > { %4847 = vst [vmem:[#allocation21_spill] sm:$0xff] %v3646_v50 }
 0x18d   : > { %1826 = vst [vmem:[#allocation1 + $0x3] ss:$4 sm:$0xff] %v3642_v10  ;;  %v1462_v10 = vperm.slane %v1402_v53, 0 }
 0x18e   : > { %4848 = vst [vmem:[#allocation22_spill] sm:$0xff] %v3650_v24 }
 0x18f   : > { %1827 = vst [vmem:[#allocation1 + $0x20] ss:$4 sm:$0xff] %v3646_v50  ;;  %v1406_v50 = vrot.slane %v862_v52, 6  ;;  %v3674_v52 = vsel %vm269_vm0, %v1282_v12, %v1462_v10  ;;  %v1032_v12 = vrot.slane %v724_v2, 2 }
 0x190   : > { %4849 = vst [vmem:[#allocation23_spill] sm:$0xff] %v3654_v41 }
 0x191   : > { %1828 = vst [vmem:[#allocation1 + $0x21] ss:$4 sm:$0xff] %v3650_v24  ;;  %v1463_v24 = vperm.slane %v1403_v6, 0  ;;  %v1466_v53 = vperm.slane %v1406_v50, 0  ;;  %v1286_v6 = vrot.slane %v790_v29, 6  ;;  %v1287_v50 = vrot.slane %v790_v29, 7 }
 0x192   : > { %4850 = vst [vmem:[#allocation24_spill] sm:$0xff] %v3658_v30 }
 0x193   : > { %1829 = vst [vmem:[#allocation1 + $0x22] ss:$4 sm:$0xff] %v3654_v41  ;;  %v3667_v41 = vsel %vm269_vm0, %v790_v29, %v1460_v19  ;;  %v3678_v19 = vsel %vm269_vm0, %v1283_v14, %v1463_v24  ;;  %v3690_v14 = vsel %vm269_vm0, %v1286_v6, %v1466_v53  ;;  %v523_v24 = vpop.f32.mrf.mxu0  ;;  %v1037_v6 = vrot.slane %v724_v2, 7 }
 0x194   : > { %1830 = vst [vmem:[#allocation1 + $0x23] ss:$4 sm:$0xff] %v3658_v30  ;;  %v1831_v1 = vld.sshfl [vmem:[#allocation1] sm:$0xff pattern:$0x73625140]  ;;  %v1465_v30 = vperm.slane %v1405_v62, 0 }
 0x195   : > { %1965 = vst.msk [vmem:[%s3448_s24 + $0x50] sm:$0xff] %vm491_vm9, %v1821_v15  ;;  %v1284_v15 = vrot.slane %v790_v29, 4  ;;  %v911_v53 = vrot.slane %v523_v24, 1 }
 0x196   : > { %1966 = vst.msk [vmem:[%s3448_s24 + $0x58] sm:$0xff] %vm491_vm9, %v1822_v13  ;;  %v1285_v13 = vrot.slane %v790_v29, 5  ;;  %v1035_v29 = vrot.slane %v724_v2, 5 }
 0x197   : > { %4851 = vst [vmem:[#allocation25_spill] sm:$0xff] %v3667_v41  ;;  %v3682_v60 = vsel %vm269_vm0, %v1284_v15, %v1464_v21  ;;  %v1034_v21 = vrot.slane %v724_v2, 4  ;;  %v1091_v15 = vperm.slane %v724_v2, 0 }
 0x198   : > { %4852 = vst [vmem:[#allocation26_spill] sm:$0xff] %v3670_v18  ;;  %v3686_v10 = vsel %vm269_vm0, %v1285_v13, %v1465_v30  ;;  %v1092_v30 = vperm.slane %v1031_v46, 0  ;;  %v1036_v13 = vrot.slane %v724_v2, 6 }
 0x199   : > { %1833 = vst [vmem:[#allocation1] ss:$4 sm:$0xff] %v3667_v41  ;;  %v1096_v41 = vperm.slane %v1035_v29, 0  ;;  %v865_v29 = vpop.f32.mrf.mxu3 }
 0x19a   : > { %4853 = vst [vmem:[#allocation27_spill] sm:$0xff] %v3674_v52  ;;  %v3706_v46 = vsel %vm269_vm0, %v911_v53, %v1092_v30 }
 0x19b   : > { %1834 = vst [vmem:[#allocation1 + $0x1] ss:$4 sm:$0xff] %v3670_v18  ;;  %v1832_v62 = vld.sshfl [vmem:[#allocation1 + $0x20] sm:$0xff pattern:$0x73625140]  ;;  %v1095_v18 = vperm.slane %v1034_v21, 0 }
 0x19c   : > { %4854 = vst [vmem:[#allocation28_spill] sm:$0xff] %v3678_v19  ;;  %v1098_v21 = vperm.slane %v1037_v6, 0  ;;  %v1409_v6 = vrot.slane %v865_v29, 2 }
 0x19d   : > { %1835 = vst [vmem:[#allocation1 + $0x2] ss:$4 sm:$0xff] %v3674_v52  ;;  %v1094_v52 = vperm.slane %v1033_v54, 0  ;;  %v916_v54 = vrot.slane %v523_v24, 6 }
 0x19e   : > { %4855 = vst [vmem:[#allocation29_spill] sm:$0xff] %v3682_v60 }
 0x19f   : > { %1836 = vst [vmem:[#allocation1 + $0x3] ss:$4 sm:$0xff] %v3678_v19  ;;  %v3694_v19 = vsel %vm269_vm0, %v1287_v50, %v1467_v48  ;;  %v3703_v48 = vsel %vm269_vm0, %v523_v24, %v1091_v15 }
 0x1a0   : > { %4856 = vst [vmem:[#allocation30_spill] sm:$0xff] %v3686_v10 }
 0x1a1   : > { %1837 = vst [vmem:[#allocation1 + $0x20] ss:$4 sm:$0xff] %v3682_v60  ;;  %v1093_v60 = vperm.slane %v1032_v12, 0  ;;  %v914_v12 = vrot.slane %v523_v24, 4 }
 0x1a2   : > { %4857 = vst [vmem:[#allocation31_spill] sm:$0xff] %v3690_v14 }
 0x1a3   : > { %1838 = vst [vmem:[#allocation1 + $0x21] ss:$4 sm:$0xff] %v3686_v10  ;;  %v912_v10 = vrot.slane %v523_v24, 2  ;;  %v3718_v30 = vsel %vm269_vm0, %v914_v12, %v1095_v18  ;;  %v1468_v12 = vperm.slane %v865_v29, 0 }
 0x1a4   : > { %4858 = vst [vmem:[#allocation32_spill] sm:$0xff] %v3694_v19 }
 0x1a5   : > { %1839 = vst [vmem:[#allocation1 + $0x22] ss:$4 sm:$0xff] %v3690_v14  ;;  %v913_v14 = vrot.slane %v523_v24, 3  ;;  %v3710_v2 = vsel %vm269_vm0, %v912_v10, %v1093_v60  ;;  %v917_v60 = vrot.slane %v523_v24, 7 }
 0x1a6   : > { %1840 = vst [vmem:[#allocation1 + $0x23] ss:$4 sm:$0xff] %v3694_v19  ;;  %v1841_v50 = vld.sshfl [vmem:[#allocation1] sm:$0xff pattern:$0x73625140] }
 0x1a7   : > { %1967 = vst.msk [vmem:[%s3448_s24 + $0x60] sm:$0xff] %vm491_vm9, %v1831_v1  ;;  %v1097_v1 = vperm.slane %v1036_v13, 0  ;;  %v3714_v15 = vsel %vm269_vm0, %v913_v14, %v1094_v52  ;;  %v1408_v13 = vrot.slane %v865_v29, 1  ;;  %v1410_v14 = vrot.slane %v865_v29, 3 }
 0x1a8   : > { %1968 = vst.msk [vmem:[%s3448_s24 + $0x68] sm:$0xff] %vm491_vm9, %v1832_v62  ;;  %v915_v62 = vrot.slane %v523_v24, 5  ;;  %v3730_v18 = vsel %vm269_vm0, %v917_v60, %v1098_v21  ;;  %v1411_v24 = vrot.slane %v865_v29, 4 }
 0x1a9   : > { %4859 = vst [vmem:[#allocation33_spill] sm:$0xff] %v3703_v48  ;;  %v3726_v52 = vsel %vm269_vm0, %v916_v54, %v1097_v1  ;;  %v1470_v1 = vperm.slane %v1409_v6, 0 }
 0x1aa   : > { %4860 = vst [vmem:[#allocation34_spill] sm:$0xff] %v3706_v46  ;;  %v3722_v10 = vsel %vm269_vm0, %v915_v62, %v1096_v41  ;;  %v793_v41 = vpop.f32.mrf.mxu2  ;;  %v1412_v62 = vrot.slane %v865_v29, 5 }
 0x1ab   : > { %1843 = vst [vmem:[#allocation1] ss:$4 sm:$0xff] %v3703_v48  ;;  %v1289_v54 = vrot.slane %v793_v41, 2  ;;  %v1290_v21 = vrot.slane %v793_v41, 3  ;;  %v1291_v48 = vrot.slane %v793_v41, 4  ;;  %v3739_v19 = vsel %vm269_vm0, %v793_v41, %v1468_v12 }
 0x1ac   : > { %4861 = vst [vmem:[#allocation35_spill] sm:$0xff] %v3710_v2  ;;  %v1473_v9 = vperm.slane %v1412_v62, 0 }
 0x1ad   : > { %1844 = vst [vmem:[#allocation1 + $0x1] ss:$4 sm:$0xff] %v3706_v46  ;;  %v1842_v53 = vld.sshfl [vmem:[#allocation1 + $0x20] sm:$0xff pattern:$0x73625140]  ;;  %v1471_v46 = vperm.slane %v1410_v14, 0  ;;  %v3746_v6 = vsel %vm269_vm0, %v1289_v54, %v1470_v1 }
 0x1ae   : > { %4862 = vst [vmem:[#allocation36_spill] sm:$0xff] %v3714_v15  ;;  %v1294_v14 = vrot.slane %v793_v41, 7 }
 0x1af   : > { %1845 = vst [vmem:[#allocation1 + $0x2] ss:$4 sm:$0xff] %v3710_v2  ;;  %v1413_v2 = vrot.slane %v865_v29, 6 }
 0x1b0   : > { %4863 = vst [vmem:[#allocation37_spill] sm:$0xff] %v3718_v30 }
 0x1b1   : > { %1846 = vst [vmem:[#allocation1 + $0x3] ss:$4 sm:$0xff] %v3714_v15  ;;  %v1288_v15 = vrot.slane %v793_v41, 1 }
 0x1b2   : > { %4864 = vst [vmem:[#allocation38_spill] sm:$0xff] %v3722_v10 }
 0x1b3   : > { %1847 = vst [vmem:[#allocation1 + $0x20] ss:$4 sm:$0xff] %v3718_v30  ;;  %v1469_v30 = vperm.slane %v1408_v13, 0  ;;  %v1292_v13 = vrot.slane %v793_v41, 5 }
 0x1b4   : > { %4865 = vst [vmem:[#allocation39_spill] sm:$0xff] %v3726_v52 }
 0x1b5   : > { %1848 = vst [vmem:[#allocation1 + $0x21] ss:$4 sm:$0xff] %v3722_v10  ;;  %v1414_v10 = vrot.slane %v865_v29, 7  ;;  %v3742_v44 = vsel %vm269_vm0, %v1288_v15, %v1469_v30  ;;  %v1293_v29 = vrot.slane %v793_v41, 6  ;;  %v3758_v30 = vsel %vm269_vm0, %v1292_v13, %v1473_v9  ;;  %v525_v41 = vpop.f32.mrf.mxu0 }
 0x1b6   : > { %4866 = vst [vmem:[#allocation40_spill] sm:$0xff] %v3730_v18 }
 0x1b7   : > { %1849 = vst [vmem:[#allocation1 + $0x22] ss:$4 sm:$0xff] %v3726_v52  ;;  %v1472_v52 = vperm.slane %v1411_v24, 0  ;;  %v3750_v24 = vsel %vm269_vm0, %v1290_v21, %v1471_v46 }
 0x1b8   : > { %1850 = vst [vmem:[#allocation1 + $0x23] ss:$4 sm:$0xff] %v3730_v18  ;;  %v1851_v60 = vld.sshfl [vmem:[#allocation1] sm:$0xff pattern:$0x73625140]  ;;  %v726_v18 = vpop.f32.mrf.mxu1 }
 0x1b9   : > { %1969 = vst.msk [vmem:[%s3448_s24 + $0x70] sm:$0xff] %vm491_vm9, %v1841_v50  ;;  %v1474_v50 = vperm.slane %v1413_v2, 0  ;;  %v1038_v62 = vrot.slane %v726_v18, 1  ;;  %v3754_v15 = vsel %vm269_vm0, %v1291_v48, %v1472_v52  ;;  %v1039_v2 = vrot.slane %v726_v18, 2 }
 0x1ba   : > { %1970 = vst.msk [vmem:[%s3448_s24 + $0x78] sm:$0xff] %vm491_vm9, %v1842_v53  ;;  %v1475_v53 = vperm.slane %v1414_v10, 0  ;;  %v1040_v10 = vrot.slane %v726_v18, 3  ;;  %v1041_v1 = vrot.slane %v726_v18, 4  ;;  %v1099_v48 = vperm.slane %v726_v18, 0 }
 0x1bb   : > { %4867 = vst [vmem:[#allocation41_spill] sm:$0xff] %v3739_v19  ;;  %v3762_v46 = vsel %vm269_vm0, %v1293_v29, %v1474_v50  ;;  %v1042_v54 = vrot.slane %v726_v18, 5  ;;  %v1100_v9 = vperm.slane %v1038_v62, 0  ;;  %v1043_v21 = vrot.slane %v726_v18, 6 }
 0x1bc   : > { %4868 = vst [vmem:[#allocation42_spill] sm:$0xff] %v3742_v44  ;;  %v3766_v52 = vsel %vm269_vm0, %v1294_v14, %v1475_v53  ;;  %v1101_v13 = vperm.slane %v1039_v2, 0  ;;  %v918_v50 = vrot.slane %v525_v41, 1  ;;  %v1044_v29 = vrot.slane %v726_v18, 7  ;;  %v867_v2 = vpop.f32.mrf.mxu3 }
 0x1bd   : > { %1853 = vst [vmem:[#allocation1] ss:$4 sm:$0xff] %v3739_v19  ;;  %v3775_v53 = vsel %vm269_vm0, %v525_v41, %v1099_v48 }
 0x1be   : > { %4869 = vst [vmem:[#allocation43_spill] sm:$0xff] %v3746_v6  ;;  %v3778_v62 = vsel %vm269_vm0, %v918_v50, %v1100_v9  ;;  %v924_v50 = vrot.slane %v525_v41, 7 }
 0x1bf   : > { %1854 = vst [vmem:[#allocation1 + $0x1] ss:$4 sm:$0xff] %v3742_v44  ;;  %v1852_v12 = vld.sshfl [vmem:[#allocation1 + $0x20] sm:$0xff pattern:$0x73625140] }
 0x1c0   : > { %4870 = vst [vmem:[#allocation44_spill] sm:$0xff] %v3750_v24 }
 0x1c1   : > { %1855 = vst [vmem:[#allocation1 + $0x2] ss:$4 sm:$0xff] %v3746_v6  ;;  %v1104_v6 = vperm.slane %v1042_v54, 0 }
 0x1c2   : > { %4871 = vst [vmem:[#allocation45_spill] sm:$0xff] %v3754_v15 }
 0x1c3   : > { %1856 = vst [vmem:[#allocation1 + $0x3] ss:$4 sm:$0xff] %v3750_v24  ;;  %v1103_v24 = vperm.slane %v1041_v1, 0  ;;  %v1106_v1 = vperm.slane %v1044_v29, 0  ;;  %v795_v29 = vpop.f32.mrf.mxu2 }
 0x1c4   : > { %4872 = vst [vmem:[#allocation46_spill] sm:$0xff] %v3758_v30 }
 0x1c5   : > { %1857 = vst [vmem:[#allocation1 + $0x20] ss:$4 sm:$0xff] %v3754_v15  ;;  %v1102_v15 = vperm.slane %v1040_v10, 0  ;;  %v923_v10 = vrot.slane %v525_v41, 6 }
 0x1c6   : > { %4873 = vst [vmem:[#allocation47_spill] sm:$0xff] %v3762_v46 }
 0x1c7   : > { %1858 = vst [vmem:[#allocation1 + $0x21] ss:$4 sm:$0xff] %v3758_v30  ;;  %v919_v30 = vrot.slane %v525_v41, 2 }
 0x1c8   : > { %4874 = vst [vmem:[#allocation48_spill] sm:$0xff] %v3766_v52 }
 0x1c9   : > { %1859 = vst [vmem:[#allocation1 + $0x22] ss:$4 sm:$0xff] %v3762_v46  ;;  %v920_v46 = vrot.slane %v525_v41, 3  ;;  %v3782_v18 = vsel %vm269_vm0, %v919_v30, %v1101_v13  ;;  %v1416_v13 = vrot.slane %v867_v2, 2 }
 0x1ca   : > { %1860 = vst [vmem:[#allocation1 + $0x23] ss:$4 sm:$0xff] %v3766_v52  ;;  %v1861_v14 = vld.sshfl [vmem:[#allocation1] sm:$0xff pattern:$0x73625140]  ;;  %v1105_v52 = vperm.slane %v1043_v21, 0 }
 0x1cb   : > { %1971 = vst.msk [vmem:[%s3448_s24 + $0x80] sm:$0xff] %vm491_vm9, %v1851_v60  ;;  %v921_v60 = vrot.slane %v525_v41, 4  ;;  %v3786_v48 = vsel %vm269_vm0, %v920_v46, %v1102_v15  ;;  %v1415_v21 = vrot.slane %v867_v2, 1  ;;  %v3802_v46 = vsel %vm269_vm0, %v924_v50, %v1106_v1 }
 0x1cc   : > { %1972 = vst.msk [vmem:[%s3448_s24 + $0x88] sm:$0xff] %vm491_vm9, %v1852_v12  ;;  %v922_v12 = vrot.slane %v525_v41, 5  ;;  %v3798_v15 = vsel %vm269_vm0, %v923_v10, %v1105_v52  ;;  %v1418_v41 = vrot.slane %v867_v2, 4  ;;  %v1296_v52 = vrot.slane %v795_v29, 2 }
 0x1cd   : > { %4875 = vst [vmem:[#allocation49_spill] sm:$0xff] %v3775_v53  ;;  %v3790_v54 = vsel %vm269_vm0, %v921_v60, %v1103_v24  ;;  %v1417_v24 = vrot.slane %v867_v2, 3  ;;  %v1419_v60 = vrot.slane %v867_v2, 5  ;;  %v1421_v10 = vrot.slane %v867_v2, 7 }
 0x1ce   : > { %4876 = vst [vmem:[#allocation50_spill] sm:$0xff] %v3778_v62  ;;  %v3794_v30 = vsel %vm269_vm0, %v922_v12, %v1104_v6  ;;  %v1476_v6 = vperm.slane %v867_v2, 0  ;;  %v1477_v12 = vperm.slane %v1415_v21, 0  ;;  %v1480_v50 = vperm.slane %v1418_v41, 0 }
 0x1cf   : > { %1863 = vst [vmem:[#allocation1] ss:$4 sm:$0xff] %v3775_v53  ;;  %v1481_v44 = vperm.slane %v1419_v60, 0  ;;  %v1299_v21 = vrot.slane %v795_v29, 5 }
 0x1d0   : > { %4877 = vst [vmem:[#allocation51_spill] sm:$0xff] %v3782_v18  ;;  %v3811_v53 = vsel %vm269_vm0, %v795_v29, %v1476_v6 }
 0x1d1   : > { %1864 = vst [vmem:[#allocation1 + $0x1] ss:$4 sm:$0xff] %v3778_v62  ;;  %v1862_v9 = vld.sshfl [vmem:[#allocation1 + $0x20] sm:$0xff pattern:$0x73625140]  ;;  %v1297_v62 = vrot.slane %v795_v29, 3 }
 0x1d2   : > { %4878 = vst [vmem:[#allocation52_spill] sm:$0xff] %v3786_v48 }
 0x1d3   : > { %1865 = vst [vmem:[#allocation1 + $0x2] ss:$4 sm:$0xff] %v3782_v18  ;;  %v1478_v18 = vperm.slane %v1416_v13, 0 }
 0x1d4   : > { %4879 = vst [vmem:[#allocation53_spill] sm:$0xff] %v3790_v54 }
 0x1d5   : > { %1866 = vst [vmem:[#allocation1 + $0x3] ss:$4 sm:$0xff] %v3786_v48  ;;  %v1420_v48 = vrot.slane %v867_v2, 6  ;;  %v1300_v2 = vrot.slane %v795_v29, 6  ;;  %v3818_v13 = vsel %vm269_vm0, %v1296_v52, %v1478_v18  ;;  %v3830_v18 = vsel %vm269_vm0, %v1299_v21, %v1481_v44  ;;  %v528_v44 = vpop.f32.mrf.mxu0 }
 0x1d6   : > { %4880 = vst [vmem:[#allocation54_spill] sm:$0xff] %v3794_v30 }
 0x1d7   : > { %1867 = vst [vmem:[#allocation1 + $0x20] ss:$4 sm:$0xff] %v3790_v54  ;;  %v1295_v54 = vrot.slane %v795_v29, 1 }
 0x1d8   : > { %4881 = vst [vmem:[#allocation55_spill] sm:$0xff] %v3798_v15 }
 0x1d9   : > { %1868 = vst [vmem:[#allocation1 + $0x21] ss:$4 sm:$0xff] %v3794_v30  ;;  %v1479_v30 = vperm.slane %v1417_v24, 0  ;;  %v3814_v19 = vsel %vm269_vm0, %v1295_v54, %v1477_v12  ;;  %v1301_v24 = vrot.slane %v795_v29, 7 }
 0x1da   : > { %4882 = vst [vmem:[#allocation56_spill] sm:$0xff] %v3802_v46 }
 0x1db   : > { %1869 = vst [vmem:[#allocation1 + $0x22] ss:$4 sm:$0xff] %v3798_v15  ;;  %v1298_v15 = vrot.slane %v795_v29, 4  ;;  %v3822_v41 = vsel %vm269_vm0, %v1297_v62, %v1479_v30 }
 0x1dc   : > { %1870 = vst [vmem:[#allocation1 + $0x23] ss:$4 sm:$0xff] %v3802_v46  ;;  %v1871_v1 = vld.sshfl [vmem:[#allocation1] sm:$0xff pattern:$0x73625140]  ;;  %v729_v46 = vpop.f32.mrf.mxu1 }
 0x1dd   : > { %1973 = vst.msk [vmem:[%s3448_s24 + $0x90] sm:$0xff] %vm491_vm9, %v1861_v14  ;;  %v1482_v14 = vperm.slane %v1420_v48, 0  ;;  %v1045_v60 = vrot.slane %v729_v46, 1  ;;  %v3826_v54 = vsel %vm269_vm0, %v1298_v15, %v1480_v50  ;;  %v1046_v48 = vrot.slane %v729_v46, 2 }
 0x1de   : > { %1974 = vst.msk [vmem:[%s3448_s24 + $0x98] sm:$0xff] %vm491_vm9, %v1862_v9  ;;  %v1483_v9 = vperm.slane %v1421_v10, 0  ;;  %v1047_v29 = vrot.slane %v729_v46, 3  ;;  %v1048_v30 = vrot.slane %v729_v46, 4  ;;  %v1107_v12 = vperm.slane %v729_v46, 0 }
 0x1df   : > { %4883 = vst [vmem:[#allocation57_spill] sm:$0xff] %v3811_v53  ;;  %v3834_v62 = vsel %vm269_vm0, %v1300_v2, %v1482_v14  ;;  %v1049_v52 = vrot.slane %v729_v46, 5  ;;  %v1108_v10 = vperm.slane %v1045_v60, 0  ;;  %v1050_v50 = vrot.slane %v729_v46, 6 }
 0x1e0   : > { %4884 = vst [vmem:[#allocation58_spill] sm:$0xff] %v3814_v19  ;;  %v3838_v15 = vsel %vm269_vm0, %v1301_v24, %v1483_v9  ;;  %v1109_v21 = vperm.slane %v1046_v48, 0  ;;  %v925_v14 = vrot.slane %v528_v44, 1  ;;  %v1051_v2 = vrot.slane %v729_v46, 7 }
 0x1e1   : > { %1873 = vst [vmem:[#allocation1] ss:$4 sm:$0xff] %v3811_v53  ;;  %v3847_v9 = vsel %vm269_vm0, %v528_v44, %v1107_v12  ;;  %v1112_v60 = vperm.slane %v1049_v52, 0  ;;  %v928_v48 = vrot.slane %v528_v44, 4  ;;  %v870_v52 = vpop.f32.mrf.mxu3 }
 0x1e2   : > { %4885 = vst [vmem:[#allocation59_spill] sm:$0xff] %v3818_v13 }
 0x1e3   : > { %1874 = vst [vmem:[#allocation1 + $0x1] ss:$4 sm:$0xff] %v3814_v19  ;;  %v1872_v6 = vld.sshfl [vmem:[#allocation1 + $0x20] sm:$0xff pattern:$0x73625140] }
 0x1e4   : > { %4886 = vst [vmem:[#allocation60_spill] sm:$0xff] %v3822_v41 }
 0x1e5   : > { %1875 = vst [vmem:[#allocation1 + $0x2] ss:$4 sm:$0xff] %v3818_v13 }
 0x1e6   : > { %4887 = vst [vmem:[#allocation61_spill] sm:$0xff] %v3826_v54 }
 0x1e7   : > { %1876 = vst [vmem:[#allocation1 + $0x3] ss:$4 sm:$0xff] %v3822_v41  ;;  %v1111_v41 = vperm.slane %v1048_v30, 0  ;;  %v1114_v30 = vperm.slane %v1051_v2, 0  ;;  %v1423_v2 = vrot.slane %v870_v52, 2 }
 0x1e8   : > { %4888 = vst [vmem:[#allocation62_spill] sm:$0xff] %v3830_v18 }
 0x1e9   : > { %1877 = vst [vmem:[#allocation1 + $0x20] ss:$4 sm:$0xff] %v3826_v54  ;;  %v1110_v54 = vperm.slane %v1047_v29, 0  ;;  %v930_v29 = vrot.slane %v528_v44, 6 }
 0x1ea   : > { %4889 = vst [vmem:[#allocation63_spill] sm:$0xff] %v3834_v62 }
 0x1eb   : > { %1878 = vst [vmem:[#allocation1 + $0x21] ss:$4 sm:$0xff] %v3830_v18  ;;  %v926_v18 = vrot.slane %v528_v44, 2 }
 0x1ec   : > { %4890 = vst [vmem:[#allocation64_spill] sm:$0xff] %v3838_v15 }
 0x1ed   : > { %1879 = vst [vmem:[#allocation1 + $0x22] ss:$4 sm:$0xff] %v3834_v62  ;;  %v927_v62 = vrot.slane %v528_v44, 3  ;;  %v3854_v46 = vsel %vm269_vm0, %v926_v18, %v1109_v21  ;;  %v931_v18 = vrot.slane %v528_v44, 7 }
 0x1ee   : > { %1880 = vst [vmem:[#allocation1 + $0x23] ss:$4 sm:$0xff] %v3838_v15  ;;  %v1881_v24 = vld.sshfl [vmem:[#allocation1] sm:$0xff pattern:$0x73625140]  ;;  %v3850_v15 = vsel %vm269_vm0, %v925_v14, %v1108_v10  ;;  %v3862_v10 = vsel %vm269_vm0, %v928_v48, %v1111_v41  ;;  %v1484_v48 = vperm.slane %v870_v52, 0 }
 0x1ef   : > { %1975 = vst.msk [vmem:[%s3448_s24 + $0xa0] sm:$0xff] %vm491_vm9, %v1871_v1  ;;  %v1113_v1 = vperm.slane %v1050_v50, 0  ;;  %v3858_v12 = vsel %vm269_vm0, %v927_v62, %v1110_v54  ;;  %v1422_v50 = vrot.slane %v870_v52, 1  ;;  %v1424_v62 = vrot.slane %v870_v52, 3 }
 0x1f0   : > { %1976 = vst.msk [vmem:[%s3448_s24 + $0xa8] sm:$0xff] %vm491_vm9, %v1872_v6  ;;  %v929_v6 = vrot.slane %v528_v44, 5  ;;  %v3874_v41 = vsel %vm269_vm0, %v931_v18, %v1114_v30  ;;  %v1425_v44 = vrot.slane %v870_v52, 4 }
 0x1f1   : > { %4891 = vst [vmem:[#allocation65_spill] sm:$0xff] %v3847_v9  ;;  %v3870_v54 = vsel %vm269_vm0, %v930_v29, %v1113_v1  ;;  %v1486_v1 = vperm.slane %v1423_v2, 0 }
 0x1f2   : > { %4892 = vst [vmem:[#allocation66_spill] sm:$0xff] %v3850_v15  ;;  %v3866_v21 = vsel %vm269_vm0, %v929_v6, %v1112_v60  ;;  %v798_v60 = vpop.f32.mrf.mxu2  ;;  %v1426_v6 = vrot.slane %v870_v52, 5 }
 0x1f3   : > { %1883 = vst [vmem:[#allocation1] ss:$4 sm:$0xff] %v3847_v9  ;;  %v1303_v29 = vrot.slane %v798_v60, 2  ;;  %v1304_v30 = vrot.slane %v798_v60, 3  ;;  %v1305_v9 = vrot.slane %v798_v60, 4  ;;  %v3883_v13 = vsel %vm269_vm0, %v798_v60, %v1484_v48 }
 0x1f4   : > { %4893 = vst [vmem:[#allocation67_spill] sm:$0xff] %v3854_v46  ;;  %v1489_v19 = vperm.slane %v1426_v6, 0 }
 0x1f5   : > { %1884 = vst [vmem:[#allocation1 + $0x1] ss:$4 sm:$0xff] %v3850_v15  ;;  %v1882_v14 = vld.sshfl [vmem:[#allocation1 + $0x20] sm:$0xff pattern:$0x73625140]  ;;  %v1487_v15 = vperm.slane %v1424_v62, 0  ;;  %v3890_v2 = vsel %vm269_vm0, %v1303_v29, %v1486_v1 }
 0x1f6   : > { %4894 = vst [vmem:[#allocation68_spill] sm:$0xff] %v3858_v12  ;;  %v1308_v62 = vrot.slane %v798_v60, 7 }
 0x1f7   : > { %1885 = vst [vmem:[#allocation1 + $0x2] ss:$4 sm:$0xff] %v3854_v46  ;;  %v1427_v46 = vrot.slane %v870_v52, 6 }
 0x1f8   : > { %4895 = vst [vmem:[#allocation69_spill] sm:$0xff] %v3862_v10 }
 0x1f9   : > { %1886 = vst [vmem:[#allocation1 + $0x3] ss:$4 sm:$0xff] %v3858_v12  ;;  %v1302_v12 = vrot.slane %v798_v60, 1 }
 0x1fa   : > { %4896 = vst [vmem:[#allocation70_spill] sm:$0xff] %v3866_v21 }
 0x1fb   : > { %1887 = vst [vmem:[#allocation1 + $0x20] ss:$4 sm:$0xff] %v3862_v10  ;;  %v1485_v10 = vperm.slane %v1422_v50, 0  ;;  %v1306_v50 = vrot.slane %v798_v60, 5 }
 0x1fc   : > { %4897 = vst [vmem:[#allocation71_spill] sm:$0xff] %v3870_v54 }
 0x1fd   : > { %1888 = vst [vmem:[#allocation1 + $0x21] ss:$4 sm:$0xff] %v3866_v21  ;;  %v1428_v21 = vrot.slane %v870_v52, 7  ;;  %v3886_v53 = vsel %vm269_vm0, %v1302_v12, %v1485_v10  ;;  %v1307_v52 = vrot.slane %v798_v60, 6  ;;  %v3902_v10 = vsel %vm269_vm0, %v1306_v50, %v1489_v19  ;;  %v530_v60 = vpop.f32.mrf.mxu0 }
 0x1fe   : > { %4898 = vst [vmem:[#allocation72_spill] sm:$0xff] %v3874_v41 }
 0x1ff   : > { %1889 = vst [vmem:[#allocation1 + $0x22] ss:$4 sm:$0xff] %v3870_v54  ;;  %v1488_v54 = vperm.slane %v1425_v44, 0  ;;  %v3894_v44 = vsel %vm269_vm0, %v1304_v30, %v1487_v15 }
 0x200   : > { %1890 = vst [vmem:[#allocation1 + $0x23] ss:$4 sm:$0xff] %v3874_v41  ;;  %v1891_v18 = vld.sshfl [vmem:[#allocation1] sm:$0xff pattern:$0x73625140]  ;;  %v731_v41 = vpop.f32.mrf.mxu1 }
 0x201   : > { %1977 = vst.msk [vmem:[%s3448_s24 + $0xb0] sm:$0xff] %vm491_vm9, %v1881_v24  ;;  %v1490_v24 = vperm.slane %v1427_v46, 0  ;;  %v1052_v6 = vrot.slane %v731_v41, 1  ;;  %v3898_v12 = vsel %vm269_vm0, %v1305_v9, %v1488_v54  ;;  %v1053_v46 = vrot.slane %v731_v41, 2 }
 0x202   : > { %1978 = vst.msk [vmem:[%s3448_s24 + $0xb8] sm:$0xff] %vm491_vm9, %v1882_v14  ;;  %v1491_v14 = vperm.slane %v1428_v21, 0  ;;  %v1054_v21 = vrot.slane %v731_v41, 3  ;;  %v1055_v1 = vrot.slane %v731_v41, 4  ;;  %v1115_v9 = vperm.slane %v731_v41, 0 }
 0x203   : > { %4899 = vst [vmem:[#allocation73_spill] sm:$0xff] %v3883_v13  ;;  %v3906_v15 = vsel %vm269_vm0, %v1307_v52, %v1490_v24  ;;  %v1056_v29 = vrot.slane %v731_v41, 5  ;;  %v1116_v19 = vperm.slane %v1052_v6, 0  ;;  %v1057_v30 = vrot.slane %v731_v41, 6 }
 0x204   : > { %4900 = vst [vmem:[#allocation74_spill] sm:$0xff] %v3886_v53  ;;  %v3910_v54 = vsel %vm269_vm0, %v1308_v62, %v1491_v14  ;;  %v1117_v50 = vperm.slane %v1053_v46, 0  ;;  %v932_v24 = vrot.slane %v530_v60, 1  ;;  %v1058_v52 = vrot.slane %v731_v41, 7  ;;  %v872_v46 = vpop.f32.mrf.mxu3 }
 0x205   : > { %1893 = vst [vmem:[#allocation1] ss:$4 sm:$0xff] %v3883_v13  ;;  %v3919_v14 = vsel %vm269_vm0, %v530_v60, %v1115_v9 }
 0x206   : > { %4901 = vst [vmem:[#allocation75_spill] sm:$0xff] %v3890_v2  ;;  %v3922_v6 = vsel %vm269_vm0, %v932_v24, %v1116_v19  ;;  %v938_v24 = vrot.slane %v530_v60, 7 }
 0x207   : > { %1894 = vst [vmem:[#allocation1 + $0x1] ss:$4 sm:$0xff] %v3886_v53  ;;  %v1892_v48 = vld.sshfl [vmem:[#allocation1 + $0x20] sm:$0xff pattern:$0x73625140] }
 0x208   : > { %4902 = vst [vmem:[#allocation76_spill] sm:$0xff] %v3894_v44 }
 0x209   : > { %1895 = vst [vmem:[#allocation1 + $0x2] ss:$4 sm:$0xff] %v3890_v2  ;;  %v1120_v2 = vperm.slane %v1056_v29, 0 }
 0x20a   : > { %4903 = vst [vmem:[#allocation77_spill] sm:$0xff] %v3898_v12 }
 0x20b   : > { %1896 = vst [vmem:[#allocation1 + $0x3] ss:$4 sm:$0xff] %v3894_v44  ;;  %v1119_v44 = vperm.slane %v1055_v1, 0  ;;  %v1122_v1 = vperm.slane %v1058_v52, 0  ;;  %v800_v52 = vpop.f32.mrf.mxu2 }
 0x20c   : > { %4904 = vst [vmem:[#allocation78_spill] sm:$0xff] %v3902_v10  ;;  %v1313_v53 = vrot.slane %v800_v52, 5 }
 0x20d   : > { %1897 = vst [vmem:[#allocation1 + $0x20] ss:$4 sm:$0xff] %v3898_v12  ;;  %v1118_v12 = vperm.slane %v1054_v21, 0  ;;  %v937_v21 = vrot.slane %v530_v60, 6 }
 0x20e   : > { %4905 = vst [vmem:[#allocation79_spill] sm:$0xff] %v3906_v15 }
 0x20f   : > { %1898 = vst [vmem:[#allocation1 + $0x21] ss:$4 sm:$0xff] %v3902_v10  ;;  %v933_v10 = vrot.slane %v530_v60, 2 }
 0x210   : > { %4906 = vst [vmem:[#allocation80_spill] sm:$0xff] %v3910_v54 }
 0x211   : > { %1899 = vst [vmem:[#allocation1 + $0x22] ss:$4 sm:$0xff] %v3906_v15  ;;  %v934_v15 = vrot.slane %v530_v60, 3  ;;  %v3926_v41 = vsel %vm269_vm0, %v933_v10, %v1117_v50  ;;  %v1430_v50 = vrot.slane %v872_v46, 2 }
 0x212   : > { %1900 = vst [vmem:[#allocation1 + $0x23] ss:$4 sm:$0xff] %v3910_v54  ;;  %v1901_v62 = vld.sshfl [vmem:[#allocation1] sm:$0xff pattern:$0x73625140]  ;;  %v1121_v54 = vperm.slane %v1057_v30, 0 }
 0x213   : > { %1979 = vst.msk [vmem:[%s3448_s24 + $0xc0] sm:$0xff] %vm491_vm9, %v1891_v18  ;;  %v935_v18 = vrot.slane %v530_v60, 4  ;;  %v3930_v9 = vsel %vm269_vm0, %v934_v15, %v1118_v12  ;;  %v1429_v30 = vrot.slane %v872_v46, 1  ;;  %v3946_v15 = vsel %vm269_vm0, %v938_v24, %v1122_v1 }
 0x214   : > { %1980 = vst.msk [vmem:[%s3448_s24 + $0xc8] sm:$0xff] %vm491_vm9, %v1892_v48  ;;  %v936_v48 = vrot.slane %v530_v60, 5  ;;  %v3942_v12 = vsel %vm269_vm0, %v937_v21, %v1121_v54  ;;  %v1432_v60 = vrot.slane %v872_v46, 4  ;;  %v1310_v54 = vrot.slane %v800_v52, 2 }
 0x215   : > { %4907 = vst [vmem:[#allocation81_spill] sm:$0xff] %v3919_v14  ;;  %v3934_v29 = vsel %vm269_vm0, %v935_v18, %v1119_v44  ;;  %v1431_v44 = vrot.slane %v872_v46, 3  ;;  %v1433_v18 = vrot.slane %v872_v46, 5  ;;  %v1435_v21 = vrot.slane %v872_v46, 7 }
 0x216   : > { %4908 = vst [vmem:[#allocation82_spill] sm:$0xff] %v3922_v6  ;;  %v3938_v10 = vsel %vm269_vm0, %v936_v48, %v1120_v2  ;;  %v1492_v2 = vperm.slane %v872_v46, 0  ;;  %v1493_v48 = vperm.slane %v1429_v30, 0  ;;  %v1496_v24 = vperm.slane %v1432_v60, 0 }
 0x217   : > { %1903 = vst [vmem:[#allocation1] ss:$4 sm:$0xff] %v3919_v14 }
 0x218   : > { %4909 = vst [vmem:[#allocation83_spill] sm:$0xff] %v3926_v41  ;;  %v3955_v14 = vsel %vm269_vm0, %v800_v52, %v1492_v2 }
 0x219   : > { %1904 = vst [vmem:[#allocation1 + $0x1] ss:$4 sm:$0xff] %v3922_v6  ;;  %v1902_v19 = vld.sshfl [vmem:[#allocation1 + $0x20] sm:$0xff pattern:$0x73625140]  ;;  %v1311_v6 = vrot.slane %v800_v52, 3 }
 0x21a   : > { %4910 = vst [vmem:[#allocation84_spill] sm:$0xff] %v3930_v9 }
 0x21b   : > { %1905 = vst [vmem:[#allocation1 + $0x2] ss:$4 sm:$0xff] %v3926_v41  ;;  %v1494_v41 = vperm.slane %v1430_v50, 0 }
 0x21c   : > { %4911 = vst [vmem:[#allocation85_spill] sm:$0xff] %v3934_v29 }
 0x21d   : > { %1906 = vst [vmem:[#allocation1 + $0x3] ss:$4 sm:$0xff] %v3930_v9  ;;  %v1434_v9 = vrot.slane %v872_v46, 6  ;;  %v3962_v46 = vsel %vm269_vm0, %v1310_v54, %v1494_v41 }
 0x21e   : > { %4912 = vst [vmem:[#allocation86_spill] sm:$0xff] %v3938_v10 }
 0x21f   : > { %1907 = vst [vmem:[#allocation1 + $0x20] ss:$4 sm:$0xff] %v3934_v29  ;;  %v1309_v29 = vrot.slane %v800_v52, 1  ;;  %v1498_v50 = vperm.slane %v1434_v9, 0 }
 0x220   : > { %4913 = vst [vmem:[#allocation87_spill] sm:$0xff] %v3942_v12 }
 0x221   : > { %1908 = vst [vmem:[#allocation1 + $0x21] ss:$4 sm:$0xff] %v3938_v10  ;;  %v1495_v10 = vperm.slane %v1431_v44, 0  ;;  %v3958_v30 = vsel %vm269_vm0, %v1309_v29, %v1493_v48  ;;  %v1315_v44 = vrot.slane %v800_v52, 7 }
 0x222   : > { %4914 = vst [vmem:[#allocation88_spill] sm:$0xff] %v3946_v15 }
 0x223   : > { %1909 = vst [vmem:[#allocation1 + $0x22] ss:$4 sm:$0xff] %v3942_v12  ;;  %v1312_v12 = vrot.slane %v800_v52, 4  ;;  %v3966_v60 = vsel %vm269_vm0, %v1311_v6, %v1495_v10 }
 0x224   : > { %1910 = vst [vmem:[#allocation1 + $0x23] ss:$4 sm:$0xff] %v3946_v15  ;;  %v1911_v1 = vld.sshfl [vmem:[#allocation1] sm:$0xff pattern:$0x73625140]  ;;  %v1497_v15 = vperm.slane %v1433_v18, 0 }
 0x225   : > { %1981 = vst.msk [vmem:[%s3448_s24 + $0xd0] sm:$0xff] %vm491_vm9, %v1901_v62  ;;  %v1314_v62 = vrot.slane %v800_v52, 6  ;;  %v3970_v2 = vsel %vm269_vm0, %v1312_v12, %v1496_v24  ;;  %v4929_v24 = vld [vmem:[#allocation8_spill] sm:$0xff] }
 0x226   : > { %1982 = vst.msk [vmem:[%s3448_s24 + $0xd8] sm:$0xff] %vm491_vm9, %v1902_v19  ;;  %v1499_v19 = vperm.slane %v1435_v21, 0  ;;  %v3974_v41 = vsel %vm269_vm0, %v1313_v53, %v1497_v15 }
 0x227   : > { %4915 = vst [vmem:[#allocation89_spill] sm:$0xff] %v3955_v14  ;;  %v3978_v9 = vsel %vm269_vm0, %v1314_v62, %v1498_v50  ;;  %v4931_v62 = vld [vmem:[#allocation9_spill] sm:$0xff] }
 0x228   : > { %4916 = vst [vmem:[#allocation90_spill] sm:$0xff] %v3958_v30  ;;  %v3982_v6 = vsel %vm269_vm0, %v1315_v44, %v1499_v19  ;;  %v4932_v19 = vld [vmem:[#allocation10_spill] sm:$0xff]  ;;  %v4933_v44 = vld [vmem:[#allocation11_spill] sm:$0xff] }
 0x229   : > { %1913 = vst [vmem:[#allocation1] ss:$4 sm:$0xff] %v3955_v14 }
 0x22a   : > { %4917 = vst [vmem:[#allocation91_spill] sm:$0xff] %v3962_v46 }
 0x22b   : > { %1914 = vst [vmem:[#allocation1 + $0x1] ss:$4 sm:$0xff] %v3958_v30  ;;  %v1912_v29 = vld.sshfl [vmem:[#allocation1 + $0x20] sm:$0xff pattern:$0x73625140] }
 0x22c   : > { %1915 = vst [vmem:[#allocation1 + $0x2] ss:$4 sm:$0xff] %v3962_v46 }
 0x22d   : > { %4918 = vst [vmem:[#allocation92_spill] sm:$0xff] %v3970_v2 }
 0x22e   : > { %1916 = vst [vmem:[#allocation1 + $0x3] ss:$4 sm:$0xff] %v3966_v60 }
 0x22f   : > { %1917 = vst [vmem:[#allocation1 + $0x20] ss:$4 sm:$0xff] %v3970_v2 }
 0x230   : > { %4919 = vst [vmem:[#allocation93_spill] sm:$0xff] %v3978_v9 }
 0x231   : > { %1918 = vst [vmem:[#allocation1 + $0x21] ss:$4 sm:$0xff] %v3974_v41 }
 0x232   : > { %4920 = vst [vmem:[#allocation94_spill] sm:$0xff] %v3982_v6 }
 0x233   : > { %1919 = vst [vmem:[#allocation1 + $0x22] ss:$4 sm:$0xff] %v3978_v9 }
 0x234   : > { %1920 = vst [vmem:[#allocation1 + $0x23] ss:$4 sm:$0xff] %v3982_v6 }
 0x235   : > { %1983 = vst.msk [vmem:[%s3448_s24 + $0xe0] sm:$0xff] %vm491_vm9, %v1911_v1  ;;  %v1921_v53 = vld.sshfl [vmem:[#allocation1] sm:$0xff pattern:$0x73625140] }
 0x236   : > { %1984 = vst.msk [vmem:[%s3448_s24 + $0xe8] sm:$0xff] %vm491_vm9, %v1912_v29 }
 0x237   : > { %1987 = vst [vmem:[#allocation1] ss:$4 sm:$0xff] %v3413_v38 }
 0x238   : > { %1989 = vst [vmem:[#allocation1 + $0x1] ss:$4 sm:$0xff] %v3416_v26 }
 0x239   : > { %1991 = vst [vmem:[#allocation1 + $0x2] ss:$4 sm:$0xff] %v3419_v27 }
 0x23a   : > { %1993 = vst [vmem:[#allocation1 + $0x3] ss:$4 sm:$0xff] %v3422_v23 }
 0x23b   : > { %v1922_v10 = vld.sshfl [vmem:[#allocation1 + $0x20] sm:$0xff pattern:$0x73625140]  ;;  %1985 = vst.msk [vmem:[%s3448_s24 + $0xf0] sm:$0xff] %vm491_vm9, %v1921_v53  ;;  %v4935_v53 = vld [vmem:[#allocation12_spill] sm:$0xff] }
 0x23c   : > { %1995 = vst [vmem:[#allocation1 + $0x20] ss:$4 sm:$0xff] %v3426_v28 }
 0x23d   : > { %1997 = vst [vmem:[#allocation1 + $0x21] ss:$4 sm:$0xff] %v3430_v33 }
 0x23e   : > { %1999 = vst [vmem:[#allocation1 + $0x22] ss:$4 sm:$0xff] %v3437_v34 }
 0x23f   : > { %2001 = vst [vmem:[#allocation1 + $0x23] ss:$4 sm:$0xff] %v3441_v35 }
 0x240   : > { %1986 = vst.msk [vmem:[%s3448_s24 + $0xf8] sm:$0xff] %vm491_vm9, %v1922_v10  ;;  %v4936_v10 = vld [vmem:[#allocation13_spill] sm:$0xff] }
 0x241   : > { %v4002_v52 = vld.sshfl [vmem:[#allocation1] sm:$0xff pattern:$0x73625140] }
 0x242   : > { %4921 = vst [vmem:[#allocation95_spill] sm:$0xff] %v4002_v52 }
 0x243   : > { %2004 = vst [vmem:[#allocation1] ss:$4 sm:$0xff] %v3455_v55 }
 0x244   : > { %2005 = vst [vmem:[#allocation1 + $0x1] ss:$4 sm:$0xff] %v3458_v56 }
 0x245   : > { %2006 = vst [vmem:[#allocation1 + $0x2] ss:$4 sm:$0xff] %v3461_v57 }
 0x246   : > { %v4007_v12 = vld.sshfl [vmem:[#allocation1 + $0x20] sm:$0xff pattern:$0x73625140]  ;;  %2007 = vst [vmem:[#allocation1 + $0x3] ss:$4 sm:$0xff] %v3464_v61 }
 0x247   : > { %4922 = vst [vmem:[#allocation96_spill] sm:$0xff] %v4007_v12  ;;  %v4945_v12 = vld [vmem:[#allocation20_spill] sm:$0xff] }
 0x248   : > { %2008 = vst [vmem:[#allocation1 + $0x20] ss:$4 sm:$0xff] %v3468_v63 }
 0x249   : > { %2009 = vst [vmem:[#allocation1 + $0x21] ss:$4 sm:$0xff] %v3472_v0 }
 0x24a   : > { %2010 = vst [vmem:[#allocation1 + $0x22] ss:$4 sm:$0xff] %v3476_v4 }
 0x24b   : > { %2011 = vst [vmem:[#allocation1 + $0x23] ss:$4 sm:$0xff] %v3480_v7 }
 0x24d   : > { %v4014_v15 = vld.sshfl [vmem:[#allocation1] sm:$0xff pattern:$0x73625140] }
 0x24e   : > { %4923 = vst [vmem:[#allocation97_spill] sm:$0xff] %v4014_v15 }
 0x24f   : > { %2014 = vst [vmem:[#allocation1] ss:$4 sm:$0xff] %v3487_v20 }
 0x250   : > { %2015 = vst [vmem:[#allocation1 + $0x1] ss:$4 sm:$0xff] %v3490_v32 }
 0x251   : > { %2016 = vst [vmem:[#allocation1 + $0x2] ss:$4 sm:$0xff] %v3494_v39 }
 0x252   : > { %v4019_v18 = vld.sshfl [vmem:[#allocation1 + $0x20] sm:$0xff pattern:$0x73625140]  ;;  %2017 = vst [vmem:[#allocation1 + $0x3] ss:$4 sm:$0xff] %v3498_v43 }
 0x253   : > { %4924 = vst [vmem:[#allocation98_spill] sm:$0xff] %v4019_v18  ;;  %v4942_v18 = vld [vmem:[#allocation18_spill] sm:$0xff] }
 0x254   : > { %2018 = vst [vmem:[#allocation1 + $0x20] ss:$4 sm:$0xff] %v3502_v3 }
 0x255   : > { %2019 = vst [vmem:[#allocation1 + $0x21] ss:$4 sm:$0xff] %v3506_v47 }
 0x256   : > { %2020 = vst [vmem:[#allocation1 + $0x22] ss:$4 sm:$0xff] %v3510_v49 }
 0x257   : > { %2021 = vst [vmem:[#allocation1 + $0x23] ss:$4 sm:$0xff] %v3514_v51 }
 0x259   : > { %v4026_v48 = vld.sshfl [vmem:[#allocation1] sm:$0xff pattern:$0x73625140] }
 0x25a   : > { %4925 = vst [vmem:[#allocation99_spill] sm:$0xff] %v4026_v48  ;;  %v4941_v48 = vld [vmem:[#allocation17_spill] sm:$0xff] }
 0x25b   : > { %2024 = vst [vmem:[#allocation1] ss:$4 sm:$0xff] %v3523_v8 }
 0x25c   : > { %2025 = vst [vmem:[#allocation1 + $0x1] ss:$4 sm:$0xff] %v3526_v11 }
 0x25d   : > { %2026 = vst [vmem:[#allocation1 + $0x2] ss:$4 sm:$0xff] %v3530_v42 }
 0x25e   : > { %v4031_v54 = vld.sshfl [vmem:[#allocation1 + $0x20] sm:$0xff pattern:$0x73625140]  ;;  %2027 = vst [vmem:[#allocation1 + $0x3] ss:$4 sm:$0xff] %v3534_v31 }
 0x25f   : > { %4926 = vst [vmem:[#allocation100_spill] sm:$0xff] %v4031_v54  ;;  %v4939_v54 = vld [vmem:[#allocation16_spill] sm:$0xff] }
 0x260   : > { %2028 = vst [vmem:[#allocation1 + $0x20] ss:$4 sm:$0xff] %v3538_v22 }
 0x261   : > { %2029 = vst [vmem:[#allocation1 + $0x21] ss:$4 sm:$0xff] %v3542_v36 }
 0x262   : > { %2030 = vst [vmem:[#allocation1 + $0x22] ss:$4 sm:$0xff] %v3546_v40 }
 0x263   : > { %2031 = vst [vmem:[#allocation1 + $0x23] ss:$4 sm:$0xff] %v3550_v45 }
 0x265   : > { %v4038_v21 = vld.sshfl [vmem:[#allocation1] sm:$0xff pattern:$0x73625140] }
 0x266   : > { %4927 = vst [vmem:[#allocation101_spill] sm:$0xff] %v4038_v21  ;;  %v4938_v21 = vld [vmem:[#allocation15_spill] sm:$0xff] }
 0x267   : > { %2034 = vst [vmem:[#allocation1] ss:$4 sm:$0xff] %v3559_v58 }
 0x268   : > { %2035 = vst [vmem:[#allocation1 + $0x1] ss:$4 sm:$0xff] %v3562_v5 }
 0x269   : > { %2036 = vst [vmem:[#allocation1 + $0x2] ss:$4 sm:$0xff] %v3566_v59 }
 0x26a   : > { %v4043_v1 = vld.sshfl [vmem:[#allocation1 + $0x20] sm:$0xff pattern:$0x73625140]  ;;  %2037 = vst [vmem:[#allocation1 + $0x3] ss:$4 sm:$0xff] %v3570_v16 }
 0x26b   : > { %4928 = vst [vmem:[#allocation102_spill] sm:$0xff] %v4043_v1  ;;  %v4937_v1 = vld [vmem:[#allocation14_spill] sm:$0xff] }
 0x26c   : > { %2038 = vst [vmem:[#allocation1 + $0x20] ss:$4 sm:$0xff] %v3574_v17 }
 0x26d   : > { %2039 = vst [vmem:[#allocation1 + $0x21] ss:$4 sm:$0xff] %v3578_v25 }
 0x26e   : > { %2040 = vst [vmem:[#allocation1 + $0x22] ss:$4 sm:$0xff] %v3582_v37 }
 0x26f   : > { %2041 = vst [vmem:[#allocation1 + $0x23] ss:$4 sm:$0xff] %v4929_v24 }
 0x271   : > { %v4050_v50 = vld.sshfl [vmem:[#allocation1] sm:$0xff pattern:$0x73625140] }
 0x272   : > { %4930 = vst [vmem:[#allocation8_spill] sm:$0xff] %v4050_v50 }
 0x273   : > { %2044 = vst [vmem:[#allocation1] ss:$4 sm:$0xff] %v4931_v62 }
 0x274   : > { %2045 = vst [vmem:[#allocation1 + $0x1] ss:$4 sm:$0xff] %v4932_v19 }
 0x275   : > { %2046 = vst [vmem:[#allocation1 + $0x2] ss:$4 sm:$0xff] %v4933_v44 }
 0x276   : > { %v4055_v29 = vld.sshfl [vmem:[#allocation1 + $0x20] sm:$0xff pattern:$0x73625140]  ;;  %2047 = vst [vmem:[#allocation1 + $0x3] ss:$4 sm:$0xff] %v4935_v53 }
 0x277   : > { %4934 = vst [vmem:[#allocation9_spill] sm:$0xff] %v4055_v29  ;;  %v4943_v29 = vld [vmem:[#allocation19_spill] sm:$0xff] }
 0x278   : > { %2048 = vst [vmem:[#allocation1 + $0x20] ss:$4 sm:$0xff] %v4936_v10 }
 0x279   : > { %2049 = vst [vmem:[#allocation1 + $0x21] ss:$4 sm:$0xff] %v4937_v1 }
 0x27a   : > { %2050 = vst [vmem:[#allocation1 + $0x22] ss:$4 sm:$0xff] %v4938_v21 }
 0x27b   : > { %2051 = vst [vmem:[#allocation1 + $0x23] ss:$4 sm:$0xff] %v4939_v54 }
 0x27d   : > { %v4062_v50 = vld.sshfl [vmem:[#allocation1] sm:$0xff pattern:$0x73625140] }
 0x27e   : > { %4940 = vst [vmem:[#allocation10_spill] sm:$0xff] %v4062_v50  ;;  %v4946_v50 = vld [vmem:[#allocation21_spill] sm:$0xff] }
 0x27f   : > { %2054 = vst [vmem:[#allocation1] ss:$4 sm:$0xff] %v4941_v48 }
 0x280   : > { %2055 = vst [vmem:[#allocation1 + $0x1] ss:$4 sm:$0xff] %v4942_v18 }
 0x281   : > { %2056 = vst [vmem:[#allocation1 + $0x2] ss:$4 sm:$0xff] %v4943_v29 }
 0x282   : > { %v4072_v15 = vld.sshfl [vmem:[#allocation1 + $0x20] sm:$0xff pattern:$0x73625140]  ;;  %2057 = vst [vmem:[#allocation1 + $0x3] ss:$4 sm:$0xff] %v4945_v12 }
 0x283   : > { %4944 = vst [vmem:[#allocation11_spill] sm:$0xff] %v4072_v15 }
 0x284   : > { %2058 = vst [vmem:[#allocation1 + $0x20] ss:$4 sm:$0xff] %v4946_v50 }
 0x285   : > { %3047 = shalt.err (!%p3044_p3)
}
 0x286   : > { %s3120_s20 = smov 128   ;;  %v4947_v15 = vld [vmem:[#allocation22_spill] sm:$0xff]  ;;  %v4948_v52 = vld [vmem:[#allocation23_spill] sm:$0xff]  ;;  %v4949_v50 = vld [vmem:[#allocation24_spill] sm:$0xff]  ;;  %s2962_s24 = sshll.u32 %s3162_s16, 1  ;;  %vm2780_vm13 = vcmask 123904  }
 0x287   : > { %2971 = dma.vmem_to_hbm [thread:$0]  (%p3179_p5), %s2801_s29, 4096, %s2803_s4, %s2783_s5, %s3120_s20, %s3120_s20, %s3118_s30   ;;  %2059 = vst [vmem:[#allocation1 + $0x21] ss:$4 sm:$0xff] %v4947_v15  ;;  %v4951_v29 = vld [vmem:[#allocation25_spill] sm:$0xff]  ;;  %v4952_v18 = vld [vmem:[#allocation26_spill] sm:$0xff]  ;;  %v4953_v48 = vld [vmem:[#allocation27_spill] sm:$0xff] }
 0x288   : > { %2060 = vst [vmem:[#allocation1 + $0x22] ss:$4 sm:$0xff] %v4948_v52  ;;  %v4955_v21 = vld [vmem:[#allocation28_spill] sm:$0xff]  ;;  %v4956_v1 = vld [vmem:[#allocation29_spill] sm:$0xff]  ;;  %v4957_v10 = vld [vmem:[#allocation30_spill] sm:$0xff]  ;;  %s2917_s30 = sshll.u32 %s3434_s19, 1  ;;  %s2815_s27 = scalar_lea.hbm %s4658_s3, %s2962_s24 }
 0x289   : > { %2061 = vst [vmem:[#allocation1 + $0x23] ss:$4 sm:$0xff] %v4949_v50  ;;  %v4091_v12 = vld.sshfl [vmem:[#allocation1] sm:$0xff pattern:$0x73625140]  ;;  %v4959_v52 = vld [vmem:[#allocation32_spill] sm:$0xff] }
 0x28a   : > { %4950 = vst [vmem:[#allocation12_spill] sm:$0xff] %v4091_v12  ;;  %v4958_v15 = vld [vmem:[#allocation31_spill] sm:$0xff]  ;;  %v4961_v12 = vld [vmem:[#allocation33_spill] sm:$0xff]  ;;  %s174_s28 = scalar_lea.vmem [#allocation4], %s2917_s30  ;;  %s2819_s4 = sshll.u32 %s2815_s27, 4  ;;  %s2820_s4 = int_to_ptr.hbm [resolvable:$true] %s2819_s4 }
 0x28b   : > { %2064 = vst [vmem:[#allocation1] ss:$4 sm:$0xff] %v4951_v29  ;;  %v4962_v29 = vld [vmem:[#allocation34_spill] sm:$0xff]  ;;  %s2817_s29 = sshll.u32 %s174_s28, 4  ;;  %s2788_s16 = scalar_lea.sflag [#allocation5], %s3434_s19  ;;  %s2818_s29 = int_to_ptr.vmem [resolvable:$true] %s2817_s29 }
 0x28c   : > { %2065 = vst [vmem:[#allocation1 + $0x1] ss:$4 sm:$0xff] %v4952_v18  ;;  %v4963_v18 = vld [vmem:[#allocation35_spill] sm:$0xff]  ;;  %s3062_s5 = sshra.s32 %s2820_s4, 4  ;;  %s3068_s9 = scalar_lea.hbm %s4658_s3, 4  ;;  %s3063_s5 = int_to_ptr.hbm [resolvable:$true] %s3062_s5 }
 0x28d   : > { %2066 = vst [vmem:[#allocation1 + $0x2] ss:$4 sm:$0xff] %v4953_v48  ;;  %s3064_s6 = scalar_lea.hbm %s3063_s5, 2  ;;  %p3069_p9 = scmp.lt.s32.totalorder %s3063_s5, %s4658_s3 }
 0x28e   : > { %2067 = vst [vmem:[#allocation1 + $0x3] ss:$4 sm:$0xff] %v4955_v21  ;;  %v4966_v21 = vld [vmem:[#allocation37_spill] sm:$0xff]  ;;  %p3065_p4 = scmp.ne.s32.totalorder %s3063_s5, %s3064_s6  ;;  %p3070_p10 = scmp.lt.s32.totalorder %s3068_s9, %s3064_s6 }
 0x290   : > { %v4096_v54 = vld.sshfl [vmem:[#allocation1 + $0x20] sm:$0xff pattern:$0x73625140]  ;;  %p3066_p7 = pnand %p3065_p4, %p3179_p5  ;;  %p3071_p11 = por %p3070_p10, %p3069_p9 }
 0x291   : > { %4954 = vst [vmem:[#allocation103_spill] sm:$0xff] %v4096_v54  ;;  %v4965_v54 = vld [vmem:[#allocation36_spill] sm:$0xff] }
 0x292   : > { %2068 = vst [vmem:[#allocation1 + $0x20] ss:$4 sm:$0xff] %v4956_v1  ;;  %v4967_v1 = vld [vmem:[#allocation38_spill] sm:$0xff]  ;;  %p3067_p8 = pneg %p3066_p7 }
 0x293   : > { %2069 = vst [vmem:[#allocation1 + $0x21] ss:$4 sm:$0xff] %v4957_v10  ;;  %v4968_v10 = vld [vmem:[#allocation39_spill] sm:$0xff] }
 0x294   : > { %2070 = vst [vmem:[#allocation1 + $0x22] ss:$4 sm:$0xff] %v4958_v15  ;;  %v4969_v15 = vld [vmem:[#allocation40_spill] sm:$0xff]  ;;  %p3072_p12 = pnand %p3071_p11, %p3067_p8 }
 0x295   : > { %2071 = vst [vmem:[#allocation1 + $0x23] ss:$4 sm:$0xff] %v4959_v52  ;;  %v4103_v50 = vld.sshfl [vmem:[#allocation1] sm:$0xff pattern:$0x73625140] }
 0x296   : > { %4960 = vst [vmem:[#allocation104_spill] sm:$0xff] %v4103_v50  ;;  %v4971_v50 = vld [vmem:[#allocation41_spill] sm:$0xff] }
 0x297   : > { %2074 = vst [vmem:[#allocation1] ss:$4 sm:$0xff] %v4961_v12  ;;  %v4972_v12 = vld [vmem:[#allocation42_spill] sm:$0xff] }
 0x298   : > { %2075 = vst [vmem:[#allocation1 + $0x1] ss:$4 sm:$0xff] %v4962_v29  ;;  %v4973_v29 = vld [vmem:[#allocation43_spill] sm:$0xff] }
 0x299   : > { %2076 = vst [vmem:[#allocation1 + $0x2] ss:$4 sm:$0xff] %v4963_v18 }
 0x29a   : > { %2077 = vst [vmem:[#allocation1 + $0x3] ss:$4 sm:$0xff] %v4965_v54  ;;  %v4976_v54 = vld [vmem:[#allocation45_spill] sm:$0xff] }
 0x29c   : > { %v4108_v48 = vld.sshfl [vmem:[#allocation1 + $0x20] sm:$0xff pattern:$0x73625140] }
 0x29d   : > { %4964 = vst [vmem:[#allocation105_spill] sm:$0xff] %v4108_v48  ;;  %v4975_v48 = vld [vmem:[#allocation44_spill] sm:$0xff] }
 0x29e   : > { %2078 = vst [vmem:[#allocation1 + $0x20] ss:$4 sm:$0xff] %v4966_v21  ;;  %v4977_v21 = vld [vmem:[#allocation46_spill] sm:$0xff] }
 0x29f   : > { %2079 = vst [vmem:[#allocation1 + $0x21] ss:$4 sm:$0xff] %v4967_v1  ;;  %v4978_v1 = vld [vmem:[#allocation47_spill] sm:$0xff] }
 0x2a0   : > { %2080 = vst [vmem:[#allocation1 + $0x22] ss:$4 sm:$0xff] %v4968_v10  ;;  %v4979_v10 = vld [vmem:[#allocation48_spill] sm:$0xff] }
 0x2a1   : > { %2081 = vst [vmem:[#allocation1 + $0x23] ss:$4 sm:$0xff] %v4969_v15  ;;  %v4115_v52 = vld.sshfl [vmem:[#allocation1] sm:$0xff pattern:$0x73625140] }
 0x2a2   : > { %4970 = vst [vmem:[#allocation106_spill] sm:$0xff] %v4115_v52  ;;  %v4981_v52 = vld [vmem:[#allocation49_spill] sm:$0xff] }
 0x2a3   : > { %2084 = vst [vmem:[#allocation1] ss:$4 sm:$0xff] %v4971_v50  ;;  %v4982_v50 = vld [vmem:[#allocation50_spill] sm:$0xff] }
 0x2a4   : > { %2085 = vst [vmem:[#allocation1 + $0x1] ss:$4 sm:$0xff] %v4972_v12  ;;  %v4983_v12 = vld [vmem:[#allocation51_spill] sm:$0xff] }
 0x2a5   : > { %2086 = vst [vmem:[#allocation1 + $0x2] ss:$4 sm:$0xff] %v4973_v29 }
 0x2a6   : > { %2087 = vst [vmem:[#allocation1 + $0x3] ss:$4 sm:$0xff] %v4975_v48  ;;  %v4986_v48 = vld [vmem:[#allocation53_spill] sm:$0xff] }
 0x2a8   : > { %v4120_v18 = vld.sshfl [vmem:[#allocation1 + $0x20] sm:$0xff pattern:$0x73625140] }
 0x2a9   : > { %4974 = vst [vmem:[#allocation107_spill] sm:$0xff] %v4120_v18  ;;  %v4985_v18 = vld [vmem:[#allocation52_spill] sm:$0xff] }
 0x2aa   : > { %2088 = vst [vmem:[#allocation1 + $0x20] ss:$4 sm:$0xff] %v4976_v54  ;;  %v4987_v54 = vld [vmem:[#allocation54_spill] sm:$0xff] }
 0x2ab   : > { %2089 = vst [vmem:[#allocation1 + $0x21] ss:$4 sm:$0xff] %v4977_v21  ;;  %v4988_v21 = vld [vmem:[#allocation55_spill] sm:$0xff] }
 0x2ac   : > { %2090 = vst [vmem:[#allocation1 + $0x22] ss:$4 sm:$0xff] %v4978_v1  ;;  %v4989_v1 = vld [vmem:[#allocation56_spill] sm:$0xff] }
 0x2ad   : > { %2091 = vst [vmem:[#allocation1 + $0x23] ss:$4 sm:$0xff] %v4979_v10  ;;  %v4127_v15 = vld.sshfl [vmem:[#allocation1] sm:$0xff pattern:$0x73625140] }
 0x2ae   : > { %4980 = vst [vmem:[#allocation108_spill] sm:$0xff] %v4127_v15  ;;  %v4991_v15 = vld [vmem:[#allocation57_spill] sm:$0xff] }
 0x2af   : > { %2094 = vst [vmem:[#allocation1] ss:$4 sm:$0xff] %v4981_v52  ;;  %v4992_v52 = vld [vmem:[#allocation58_spill] sm:$0xff] }
 0x2b0   : > { %2095 = vst [vmem:[#allocation1 + $0x1] ss:$4 sm:$0xff] %v4982_v50  ;;  %v4993_v50 = vld [vmem:[#allocation59_spill] sm:$0xff] }
 0x2b1   : > { %2096 = vst [vmem:[#allocation1 + $0x2] ss:$4 sm:$0xff] %v4983_v12 }
 0x2b2   : > { %2097 = vst [vmem:[#allocation1 + $0x3] ss:$4 sm:$0xff] %v4985_v18  ;;  %v4996_v18 = vld [vmem:[#allocation61_spill] sm:$0xff] }
 0x2b4   : > { %v4132_v29 = vld.sshfl [vmem:[#allocation1 + $0x20] sm:$0xff pattern:$0x73625140] }
 0x2b5   : > { %4984 = vst [vmem:[#allocation109_spill] sm:$0xff] %v4132_v29  ;;  %v4995_v29 = vld [vmem:[#allocation60_spill] sm:$0xff] }
 0x2b6   : > { %2098 = vst [vmem:[#allocation1 + $0x20] ss:$4 sm:$0xff] %v4986_v48  ;;  %v4997_v48 = vld [vmem:[#allocation62_spill] sm:$0xff] }
 0x2b7   : > { %2099 = vst [vmem:[#allocation1 + $0x21] ss:$4 sm:$0xff] %v4987_v54  ;;  %v4998_v54 = vld [vmem:[#allocation63_spill] sm:$0xff] }
 0x2b8   : > { %2100 = vst [vmem:[#allocation1 + $0x22] ss:$4 sm:$0xff] %v4988_v21  ;;  %v4999_v21 = vld [vmem:[#allocation64_spill] sm:$0xff] }
 0x2b9   : > { %2101 = vst [vmem:[#allocation1 + $0x23] ss:$4 sm:$0xff] %v4989_v1  ;;  %v4139_v10 = vld.sshfl [vmem:[#allocation1] sm:$0xff pattern:$0x73625140] }
 0x2ba   : > { %4990 = vst [vmem:[#allocation110_spill] sm:$0xff] %v4139_v10  ;;  %v5001_v10 = vld [vmem:[#allocation65_spill] sm:$0xff] }
 0x2bb   : > { %2104 = vst [vmem:[#allocation1] ss:$4 sm:$0xff] %v4991_v15  ;;  %v5002_v15 = vld [vmem:[#allocation66_spill] sm:$0xff] }
 0x2bc   : > { %2105 = vst [vmem:[#allocation1 + $0x1] ss:$4 sm:$0xff] %v4992_v52  ;;  %v5003_v52 = vld [vmem:[#allocation67_spill] sm:$0xff] }
 0x2bd   : > { %2106 = vst [vmem:[#allocation1 + $0x2] ss:$4 sm:$0xff] %v4993_v50 }
 0x2be   : > { %2107 = vst [vmem:[#allocation1 + $0x3] ss:$4 sm:$0xff] %v4995_v29  ;;  %v5006_v29 = vld [vmem:[#allocation69_spill] sm:$0xff] }
 0x2c0   : > { %v4144_v12 = vld.sshfl [vmem:[#allocation1 + $0x20] sm:$0xff pattern:$0x73625140] }
 0x2c1   : > { %4994 = vst [vmem:[#allocation111_spill] sm:$0xff] %v4144_v12  ;;  %v5005_v12 = vld [vmem:[#allocation68_spill] sm:$0xff] }
 0x2c2   : > { %2108 = vst [vmem:[#allocation1 + $0x20] ss:$4 sm:$0xff] %v4996_v18  ;;  %v5007_v18 = vld [vmem:[#allocation70_spill] sm:$0xff] }
 0x2c3   : > { %2109 = vst [vmem:[#allocation1 + $0x21] ss:$4 sm:$0xff] %v4997_v48  ;;  %v5008_v48 = vld [vmem:[#allocation71_spill] sm:$0xff] }
 0x2c4   : > { %2110 = vst [vmem:[#allocation1 + $0x22] ss:$4 sm:$0xff] %v4998_v54  ;;  %v5009_v54 = vld [vmem:[#allocation72_spill] sm:$0xff] }
 0x2c5   : > { %2111 = vst [vmem:[#allocation1 + $0x23] ss:$4 sm:$0xff] %v4999_v21  ;;  %v4151_v1 = vld.sshfl [vmem:[#allocation1] sm:$0xff pattern:$0x73625140] }
 0x2c6   : > { %5000 = vst [vmem:[#allocation112_spill] sm:$0xff] %v4151_v1  ;;  %v5011_v1 = vld [vmem:[#allocation74_spill] sm:$0xff] }
 0x2c7   : > { %2114 = vst [vmem:[#allocation1] ss:$4 sm:$0xff] %v5001_v10 }
 0x2c8   : > { %2115 = vst [vmem:[#allocation1 + $0x1] ss:$4 sm:$0xff] %v5002_v15  ;;  %v5012_v15 = vld [vmem:[#allocation75_spill] sm:$0xff] }
 0x2c9   : > { %2116 = vst [vmem:[#allocation1 + $0x2] ss:$4 sm:$0xff] %v5003_v52 }
 0x2ca   : > { %2117 = vst [vmem:[#allocation1 + $0x3] ss:$4 sm:$0xff] %v5005_v12  ;;  %v5015_v12 = vld [vmem:[#allocation77_spill] sm:$0xff] }
 0x2cc   : > { %v4156_v50 = vld.sshfl [vmem:[#allocation1 + $0x20] sm:$0xff pattern:$0x73625140] }
 0x2cd   : > { %5004 = vst [vmem:[#allocation65_spill] sm:$0xff] %v4156_v50  ;;  %v5014_v50 = vld [vmem:[#allocation76_spill] sm:$0xff] }
 0x2ce   : > { %2118 = vst [vmem:[#allocation1 + $0x20] ss:$4 sm:$0xff] %v5006_v29  ;;  %v5016_v29 = vld [vmem:[#allocation78_spill] sm:$0xff] }
 0x2cf   : > { %2119 = vst [vmem:[#allocation1 + $0x21] ss:$4 sm:$0xff] %v5007_v18  ;;  %v5017_v18 = vld [vmem:[#allocation79_spill] sm:$0xff] }
 0x2d0   : > { %2120 = vst [vmem:[#allocation1 + $0x22] ss:$4 sm:$0xff] %v5008_v48  ;;  %v5018_v48 = vld [vmem:[#allocation80_spill] sm:$0xff] }
 0x2d1   : > { %2121 = vst [vmem:[#allocation1 + $0x23] ss:$4 sm:$0xff] %v5009_v54  ;;  %v4163_v21 = vld.sshfl [vmem:[#allocation1] sm:$0xff pattern:$0x73625140] }
 0x2d2   : > { %5010 = vst [vmem:[#allocation113_spill] sm:$0xff] %v4163_v21  ;;  %v5019_v21 = vld [vmem:[#allocation81_spill] sm:$0xff] }
 0x2d3   : > { %2124 = vst [vmem:[#allocation1] ss:$4 sm:$0xff] %v3883_v13  ;;  %v5020_v13 = vld [vmem:[#allocation82_spill] sm:$0xff] }
 0x2d4   : > { %2125 = vst [vmem:[#allocation1 + $0x1] ss:$4 sm:$0xff] %v5011_v1  ;;  %v5021_v1 = vld [vmem:[#allocation83_spill] sm:$0xff] }
 0x2d5   : > { %2126 = vst [vmem:[#allocation1 + $0x2] ss:$4 sm:$0xff] %v5012_v15 }
 0x2d6   : > { %2127 = vst [vmem:[#allocation1 + $0x3] ss:$4 sm:$0xff] %v5014_v50  ;;  %v5023_v50 = vld [vmem:[#allocation85_spill] sm:$0xff] }
 0x2d8   : > { %v4168_v52 = vld.sshfl [vmem:[#allocation1 + $0x20] sm:$0xff pattern:$0x73625140] }
 0x2d9   : > { %5013 = vst [vmem:[#allocation114_spill] sm:$0xff] %v4168_v52  ;;  %v5022_v52 = vld [vmem:[#allocation84_spill] sm:$0xff] }
 0x2da   : > { %2128 = vst [vmem:[#allocation1 + $0x20] ss:$4 sm:$0xff] %v5015_v12  ;;  %v5024_v12 = vld [vmem:[#allocation86_spill] sm:$0xff] }
 0x2db   : > { %2129 = vst [vmem:[#allocation1 + $0x21] ss:$4 sm:$0xff] %v5016_v29  ;;  %v5025_v29 = vld [vmem:[#allocation87_spill] sm:$0xff] }
 0x2dc   : > { %2130 = vst [vmem:[#allocation1 + $0x22] ss:$4 sm:$0xff] %v5017_v18  ;;  %v5026_v18 = vld [vmem:[#allocation88_spill] sm:$0xff] }
 0x2dd   : > { %2131 = vst [vmem:[#allocation1 + $0x23] ss:$4 sm:$0xff] %v5018_v48  ;;  %v4175_v54 = vld.sshfl [vmem:[#allocation1] sm:$0xff pattern:$0x73625140] }
 0x2de   : > { %2134 = vst [vmem:[#allocation1] ss:$4 sm:$0xff] %v5019_v21 }
 0x2df   : > { %2135 = vst [vmem:[#allocation1 + $0x1] ss:$4 sm:$0xff] %v5020_v13 }
 0x2e0   : > { %2136 = vst [vmem:[#allocation1 + $0x2] ss:$4 sm:$0xff] %v5021_v1 }
 0x2e1   : > { %2137 = vst [vmem:[#allocation1 + $0x3] ss:$4 sm:$0xff] %v5022_v52 }
 0x2e4   : > { %v4180_v15 = vld.sshfl [vmem:[#allocation1 + $0x20] sm:$0xff pattern:$0x73625140] }
 0x2e5   : > { %2138 = vst [vmem:[#allocation1 + $0x20] ss:$4 sm:$0xff] %v5023_v50 }
 0x2e6   : > { %2139 = vst [vmem:[#allocation1 + $0x21] ss:$4 sm:$0xff] %v5024_v12 }
 0x2e7   : > { %2140 = vst [vmem:[#allocation1 + $0x22] ss:$4 sm:$0xff] %v5025_v29 }
 0x2e8   : > { %2141 = vst [vmem:[#allocation1 + $0x23] ss:$4 sm:$0xff] %v5026_v18  ;;  %v4187_v48 = vld.sshfl [vmem:[#allocation1] sm:$0xff pattern:$0x73625140]  ;;  %v2255_v18 = vmul.f32 %v3413_v38, %v3413_v38  ;;  %v2260_v38 = vmul.f32 %v3430_v33, %v3430_v33 }
 0x2e9   : > { %2144 = vst [vmem:[#allocation1] ss:$4 sm:$0xff] %v3955_v14 }
 0x2ea   : > { %2145 = vst [vmem:[#allocation1 + $0x1] ss:$4 sm:$0xff] %v3958_v30  ;;  %v2256_v30 = vmul.f32 %v3416_v26, %v3416_v26  ;;  %v2261_v26 = vmul.f32 %v3437_v34, %v3437_v34  ;;  %v2266_v34 = vmul.f32 %v3464_v61, %v3464_v61  ;;  %v2271_v61 = vmul.f32 %v3487_v20, %v3487_v20 }
 0x2eb   : > { %2146 = vst [vmem:[#allocation1 + $0x2] ss:$4 sm:$0xff] %v3962_v46  ;;  %v2257_v46 = vmul.f32 %v3419_v27, %v3419_v27  ;;  %v2262_v27 = vmul.f32 %v3441_v35, %v3441_v35  ;;  %v2267_v35 = vmul.f32 %v3468_v63, %v3468_v63  ;;  %v2272_v63 = vmul.f32 %v3490_v32, %v3490_v32 }
 0x2ec   : > { %2147 = vst [vmem:[#allocation1 + $0x3] ss:$4 sm:$0xff] %v3966_v60  ;;  %v2276_v20 = vmul.f32 %v3506_v47, %v3506_v47  ;;  %v2277_v32 = vmul.f32 %v3510_v49, %v3510_v49  ;;  %v2282_v49 = vmul.f32 %v3534_v31, %v3534_v31  ;;  %v2287_v31 = vmul.f32 %v3559_v58, %v3559_v58 }
 0x2ed   : > { %v2292_v58 = vmul.f32 %v3578_v25, %v3578_v25 }
 0x2ef   : > { %v4192_v1 = vld.sshfl [vmem:[#allocation1 + $0x20] sm:$0xff pattern:$0x73625140] }
 0x2f0   : > { %2148 = vst [vmem:[#allocation1 + $0x20] ss:$4 sm:$0xff] %v3970_v2  ;;  %v2258_v2 = vmul.f32 %v3422_v23, %v3422_v23  ;;  %v2263_v23 = vmul.f32 %v3455_v55, %v3455_v55  ;;  %v2268_v55 = vmul.f32 %v3472_v0, %v3472_v0 }
 0x2f1   : > { %2149 = vst [vmem:[#allocation1 + $0x21] ss:$4 sm:$0xff] %v3974_v41 }
 0x2f2   : > { %2150 = vst [vmem:[#allocation1 + $0x22] ss:$4 sm:$0xff] %v3978_v9  ;;  %v2259_v9 = vmul.f32 %v3426_v28, %v3426_v28  ;;  %v2264_v28 = vmul.f32 %v3458_v56, %v3458_v56  ;;  %v2269_v56 = vmul.f32 %v3476_v4, %v3476_v4  ;;  %v2274_v4 = vmul.f32 %v3498_v43, %v3498_v43 }
 0x2f3   : > { %2151 = vst [vmem:[#allocation1 + $0x23] ss:$4 sm:$0xff] %v3982_v6  ;;  %v4203_v14 = vld.sshfl [vmem:[#allocation1] sm:$0xff pattern:$0x73625140]  ;;  %v2279_v43 = vmul.f32 %v3523_v8, %v3523_v8  ;;  %v2284_v8 = vmul.f32 %v3542_v36, %v3542_v36 }
 0x2f4   : > { %2511 = vst [vmem:[#allocation1] ss:$4 sm:$0xff] %v2255_v18  ;;  %v2281_v18 = vmul.f32 %v3530_v42, %v3530_v42  ;;  %v2286_v42 = vmul.f32 %v3550_v45, %v3550_v45  ;;  %v2291_v45 = vmul.f32 %v3574_v17, %v3574_v17  ;;  %v2296_v17 = vmul.f32 %v4932_v19, %v4932_v19  ;;  %v5029_v19 = vld [vmem:[#allocation15_spill] sm:$0xff] }
 0x2f5   : > { %2513 = vst [vmem:[#allocation1 + $0x1] ss:$4 sm:$0xff] %v2256_v30  ;;  %v2265_v30 = vmul.f32 %v3461_v57, %v3461_v57  ;;  %v2270_v57 = vmul.f32 %v3480_v7, %v3480_v7  ;;  %v2275_v7 = vmul.f32 %v3502_v3, %v3502_v3  ;;  %v2280_v3 = vmul.f32 %v3526_v11, %v3526_v11 }
 0x2f6   : > { %2515 = vst [vmem:[#allocation1 + $0x2] ss:$4 sm:$0xff] %v2257_v46  ;;  %v2285_v11 = vmul.f32 %v3546_v40, %v3546_v40  ;;  %v2290_v40 = vmul.f32 %v3570_v16, %v3570_v16  ;;  %v2295_v16 = vmul.f32 %v4931_v62, %v4931_v62 }
 0x2f7   : > { %2517 = vst [vmem:[#allocation1 + $0x3] ss:$4 sm:$0xff] %v2258_v2  ;;  %v2273_v2 = vmul.f32 %v3494_v39, %v3494_v39  ;;  %v2278_v39 = vmul.f32 %v3514_v51, %v3514_v51  ;;  %v2283_v51 = vmul.f32 %v3538_v22, %v3538_v22  ;;  %v2288_v22 = vmul.f32 %v3562_v5, %v3562_v5 }
 0x2f8   : > { %v2293_v5 = vmul.f32 %v3582_v37, %v3582_v37  ;;  %v2298_v37 = vmul.f32 %v4935_v53, %v4935_v53  ;;  %v5031_v53 = vld [vmem:[#allocation17_spill] sm:$0xff] }
 0x2fa   : > { %v4213_v6 = vld.sshfl [vmem:[#allocation1 + $0x20] sm:$0xff pattern:$0x73625140] }
 0x2fb   : > { %2519 = vst [vmem:[#allocation1 + $0x20] ss:$4 sm:$0xff] %v2259_v9 }
 0x2fc   : > { %2521 = vst [vmem:[#allocation1 + $0x21] ss:$4 sm:$0xff] %v2260_v38 }
 0x2fd   : > { %2523 = vst [vmem:[#allocation1 + $0x22] ss:$4 sm:$0xff] %v2261_v26  ;;  %v2289_v26 = vmul.f32 %v3566_v59, %v3566_v59  ;;  %v2294_v59 = vmul.f32 %v4929_v24, %v4929_v24  ;;  %v5027_v24 = vld [vmem:[#allocation13_spill] sm:$0xff] }
 0x2fe   : > { %2525 = vst [vmem:[#allocation1 + $0x23] ss:$4 sm:$0xff] %v2262_v27  ;;  %v4223_v33 = vld.sshfl [vmem:[#allocation1] sm:$0xff pattern:$0x73625140] }
 0x2ff   : > { %2528 = vst [vmem:[#allocation1] ss:$4 sm:$0xff] %v2263_v23  ;;  %v2297_v23 = vmul.f32 %v4933_v44, %v4933_v44  ;;  %v5030_v44 = vld [vmem:[#allocation16_spill] sm:$0xff] }
 0x300   : > { %2529 = vst [vmem:[#allocation1 + $0x1] ss:$4 sm:$0xff] %v2264_v28  ;;  %v2299_v28 = vmul.f32 %v5027_v24, %v5027_v24  ;;  %v5045_v24 = vld [vmem:[#allocation97_spill] sm:$0xff] }
 0x301   : > { %2530 = vst [vmem:[#allocation1 + $0x2] ss:$4 sm:$0xff] %v2265_v30  ;;  %v5028_v30 = vld [vmem:[#allocation14_spill] sm:$0xff] }
 0x302   : > { %2531 = vst [vmem:[#allocation1 + $0x3] ss:$4 sm:$0xff] %v2266_v34  ;;  %v2300_v62 = vmul.f32 %v5028_v30, %v5028_v30  ;;  %v5046_v30 = vld [vmem:[#allocation29_spill] sm:$0xff] }
 0x305   : > { %v4233_v46 = vld.sshfl [vmem:[#allocation1 + $0x20] sm:$0xff pattern:$0x73625140] }
 0x306   : > { %2532 = vst [vmem:[#allocation1 + $0x20] ss:$4 sm:$0xff] %v2267_v35  ;;  %v2301_v35 = vmul.f32 %v5029_v19, %v5029_v19 }
 0x307   : > { %2533 = vst [vmem:[#allocation1 + $0x21] ss:$4 sm:$0xff] %v2268_v55  ;;  %v2302_v55 = vmul.f32 %v5030_v44, %v5030_v44 }
 0x308   : > { %2534 = vst [vmem:[#allocation1 + $0x22] ss:$4 sm:$0xff] %v2269_v56  ;;  %v2303_v56 = vmul.f32 %v5031_v53, %v5031_v53  ;;  %v5048_v53 = vld [vmem:[#allocation31_spill] sm:$0xff] }
 0x309   : > { %2535 = vst [vmem:[#allocation1 + $0x23] ss:$4 sm:$0xff] %v2270_v57  ;;  %v4243_v0 = vld.sshfl [vmem:[#allocation1] sm:$0xff pattern:$0x73625140] }
 0x30a   : > { %2538 = vst [vmem:[#allocation1] ss:$4 sm:$0xff] %v2271_v61  ;;  %v5032_v57 = vld [vmem:[#allocation18_spill] sm:$0xff] }
 0x30b   : > { %2539 = vst [vmem:[#allocation1 + $0x1] ss:$4 sm:$0xff] %v2272_v63  ;;  %v2304_v61 = vmul.f32 %v5032_v57, %v5032_v57 }
 0x30c   : > { %2540 = vst [vmem:[#allocation1 + $0x2] ss:$4 sm:$0xff] %v2273_v2  ;;  %v5033_v2 = vld [vmem:[#allocation19_spill] sm:$0xff] }
 0x30d   : > { %2541 = vst [vmem:[#allocation1 + $0x3] ss:$4 sm:$0xff] %v2274_v4  ;;  %v2305_v4 = vmul.f32 %v5033_v2, %v5033_v2 }
 0x310   : > { %v4253_v9 = vld.sshfl [vmem:[#allocation1 + $0x20] sm:$0xff pattern:$0x73625140] }
 0x311   : > { %2542 = vst [vmem:[#allocation1 + $0x20] ss:$4 sm:$0xff] %v2275_v7  ;;  %v5034_v7 = vld [vmem:[#allocation20_spill] sm:$0xff] }
 0x312   : > { %2543 = vst [vmem:[#allocation1 + $0x21] ss:$4 sm:$0xff] %v2276_v20  ;;  %v2306_v20 = vmul.f32 %v5034_v7, %v5034_v7 }
 0x313   : > { %2544 = vst [vmem:[#allocation1 + $0x22] ss:$4 sm:$0xff] %v2277_v32  ;;  %v5035_v32 = vld [vmem:[#allocation21_spill] sm:$0xff] }
 0x314   : > { %2545 = vst [vmem:[#allocation1 + $0x23] ss:$4 sm:$0xff] %v2278_v39  ;;  %v4263_v47 = vld.sshfl [vmem:[#allocation1] sm:$0xff pattern:$0x73625140]  ;;  %v2307_v39 = vmul.f32 %v5035_v32, %v5035_v32 }
 0x315   : > { %2548 = vst [vmem:[#allocation1] ss:$4 sm:$0xff] %v2279_v43  ;;  %v5036_v43 = vld [vmem:[#allocation22_spill] sm:$0xff] }
 0x316   : > { %2549 = vst [vmem:[#allocation1 + $0x1] ss:$4 sm:$0xff] %v2280_v3  ;;  %v2308_v3 = vmul.f32 %v5036_v43, %v5036_v43  ;;  %v5052_v43 = vld [vmem:[#allocation33_spill] sm:$0xff] }
 0x317   : > { %2550 = vst [vmem:[#allocation1 + $0x2] ss:$4 sm:$0xff] %v2281_v18 }
 0x318   : > { %2551 = vst [vmem:[#allocation1 + $0x3] ss:$4 sm:$0xff] %v2282_v49  ;;  %v5037_v49 = vld [vmem:[#allocation23_spill] sm:$0xff] }
 0x31b   : > { %v4273_v38 = vld.sshfl [vmem:[#allocation1 + $0x20] sm:$0xff pattern:$0x73625140] }
 0x31c   : > { %2552 = vst [vmem:[#allocation1 + $0x20] ss:$4 sm:$0xff] %v2283_v51  ;;  %v2309_v51 = vmul.f32 %v5037_v49, %v5037_v49  ;;  %v5053_v49 = vld [vmem:[#allocation34_spill] sm:$0xff] }
 0x31d   : > { %2553 = vst [vmem:[#allocation1 + $0x21] ss:$4 sm:$0xff] %v2284_v8  ;;  %v5038_v8 = vld [vmem:[#allocation24_spill] sm:$0xff] }
 0x31e   : > { %2554 = vst [vmem:[#allocation1 + $0x22] ss:$4 sm:$0xff] %v2285_v11  ;;  %v2310_v11 = vmul.f32 %v5038_v8, %v5038_v8 }
 0x31f   : > { %2555 = vst [vmem:[#allocation1 + $0x23] ss:$4 sm:$0xff] %v2286_v42  ;;  %v4283_v36 = vld.sshfl [vmem:[#allocation1] sm:$0xff pattern:$0x73625140]  ;;  %v5039_v42 = vld [vmem:[#allocation25_spill] sm:$0xff] }
 0x320   : > { %2558 = vst [vmem:[#allocation1] ss:$4 sm:$0xff] %v2287_v31  ;;  %v2311_v31 = vmul.f32 %v5039_v42, %v5039_v42  ;;  %v5054_v42 = vld [vmem:[#allocation35_spill] sm:$0xff] }
 0x321   : > { %2559 = vst [vmem:[#allocation1 + $0x1] ss:$4 sm:$0xff] %v2288_v22  ;;  %v5040_v22 = vld [vmem:[#allocation26_spill] sm:$0xff] }
 0x322   : > { %2560 = vst [vmem:[#allocation1 + $0x2] ss:$4 sm:$0xff] %v2289_v26  ;;  %v2312_v26 = vmul.f32 %v5040_v22, %v5040_v22  ;;  %v2710_v22 = vsel %vm491_vm9, %v4223_v33, 0.0  ;;  %v2713_v33 = vsel %vm491_vm9, %v4243_v0, 0.0  ;;  %v5062_v0 = vld [vmem:[#allocation102_spill] sm:$0xff] }
 0x323   : > { %2561 = vst [vmem:[#allocation1 + $0x3] ss:$4 sm:$0xff] %v2290_v40  ;;  %v5041_v40 = vld [vmem:[#allocation95_spill] sm:$0xff] }
 0x326   : > { %v4293_v27 = vld.sshfl [vmem:[#allocation1 + $0x20] sm:$0xff pattern:$0x73625140] }
 0x327   : > { %2562 = vst [vmem:[#allocation1 + $0x20] ss:$4 sm:$0xff] %v2291_v45  ;;  %v2186_v45 = vsel %vm491_vm9, %v5041_v40, 0.0  ;;  %v5055_v40 = vld [vmem:[#allocation36_spill] sm:$0xff] }
 0x328   : > { %2563 = vst [vmem:[#allocation1 + $0x21] ss:$4 sm:$0xff] %v2292_v58  ;;  %v5042_v58 = vld [vmem:[#allocation96_spill] sm:$0xff] }
 0x329   : > { %2564 = vst [vmem:[#allocation1 + $0x22] ss:$4 sm:$0xff] %v2293_v5  ;;  %v2187_v5 = vsel %vm491_vm9, %v5042_v58, 0.0  ;;  %v5056_v58 = vld [vmem:[#allocation37_spill] sm:$0xff] }
 0x32a   : > { %2565 = vst [vmem:[#allocation1 + $0x23] ss:$4 sm:$0xff] %v2294_v59  ;;  %v4303_v25 = vld.sshfl [vmem:[#allocation1] sm:$0xff pattern:$0x73625140]  ;;  %v2188_v19 = vadd.f32 %v2187_v5, %v2186_v45  ;;  %v2322_v45 = vmul.f32 %v5055_v40, %v5055_v40  ;;  %v2323_v5 = vmul.f32 %v5056_v58, %v5056_v58  ;;  %v5069_v58 = vld [vmem:[#allocation9_spill] sm:$0xff] }
 0x32b   : > { %2568 = vst [vmem:[#allocation1] ss:$4 sm:$0xff] %v2295_v16  ;;  %v5043_v16 = vld [vmem:[#allocation27_spill] sm:$0xff] }
 0x32c   : > { %2569 = vst [vmem:[#allocation1 + $0x1] ss:$4 sm:$0xff] %v2296_v17  ;;  %v2313_v17 = vmul.f32 %v5043_v16, %v5043_v16  ;;  %v5057_v16 = vld [vmem:[#allocation100_spill] sm:$0xff] }
 0x32d   : > { %2570 = vst [vmem:[#allocation1 + $0x2] ss:$4 sm:$0xff] %v2297_v23  ;;  %v5044_v23 = vld [vmem:[#allocation28_spill] sm:$0xff] }
 0x32e   : > { %2571 = vst [vmem:[#allocation1 + $0x3] ss:$4 sm:$0xff] %v2298_v37  ;;  %v2314_v37 = vmul.f32 %v5044_v23, %v5044_v23  ;;  %v5058_v23 = vld [vmem:[#allocation101_spill] sm:$0xff] }
 0x331   : > { %v4313_v34 = vld.sshfl [vmem:[#allocation1 + $0x20] sm:$0xff pattern:$0x73625140] }
 0x332   : > { %2572 = vst [vmem:[#allocation1 + $0x20] ss:$4 sm:$0xff] %v2299_v28  ;;  %v2189_v28 = vsel %vm491_vm9, %v5045_v24, 0.0  ;;  %v5059_v24 = vld [vmem:[#allocation38_spill] sm:$0xff] }
 0x333   : > { %2573 = vst [vmem:[#allocation1 + $0x21] ss:$4 sm:$0xff] %v2300_v62  ;;  %v2315_v62 = vmul.f32 %v5046_v30, %v5046_v30  ;;  %v2190_v57 = vadd.f32 %v2189_v28, %v2188_v19  ;;  %v5060_v19 = vld [vmem:[#allocation39_spill] sm:$0xff] }
 0x334   : > { %2574 = vst [vmem:[#allocation1 + $0x22] ss:$4 sm:$0xff] %v2301_v35  ;;  %v5047_v35 = vld [vmem:[#allocation30_spill] sm:$0xff] }
 0x335   : > { %2575 = vst [vmem:[#allocation1 + $0x23] ss:$4 sm:$0xff] %v2302_v55  ;;  %v4323_v63 = vld.sshfl [vmem:[#allocation1] sm:$0xff pattern:$0x73625140]  ;;  %v2316_v44 = vmul.f32 %v5047_v35, %v5047_v35  ;;  %v2325_v35 = vmul.f32 %v5060_v19, %v5060_v19 }
 0x336   : > { %2578 = vst [vmem:[#allocation1] ss:$4 sm:$0xff] %v2303_v56  ;;  %v2317_v56 = vmul.f32 %v5048_v53, %v5048_v53 }
 0x337   : > { %2579 = vst [vmem:[#allocation1 + $0x1] ss:$4 sm:$0xff] %v2304_v61  ;;  %v5049_v61 = vld [vmem:[#allocation32_spill] sm:$0xff] }
 0x338   : > { %2580 = vst [vmem:[#allocation1 + $0x2] ss:$4 sm:$0xff] %v2305_v4  ;;  %v2318_v2 = vmul.f32 %v5049_v61, %v5049_v61  ;;  %v5050_v4 = vld [vmem:[#allocation98_spill] sm:$0xff]  ;;  %v2199_v61 = vsel %vm491_vm9, %v5062_v0, 0.0 }
 0x339   : > { %2581 = vst [vmem:[#allocation1 + $0x3] ss:$4 sm:$0xff] %v2306_v20  ;;  %v2191_v7 = vsel %vm491_vm9, %v5050_v4, 0.0  ;;  %v5051_v20 = vld [vmem:[#allocation99_spill] sm:$0xff] }
 0x33a   : > { %v2193_v32 = vsel %vm491_vm9, %v5051_v20, 0.0  ;;  %v2717_v20 = vsel %vm491_vm9, %v4263_v47, 0.0  ;;  %v5068_v47 = vld [vmem:[#allocation45_spill] sm:$0xff] }
 0x33c   : > { %v4333_v18 = vld.sshfl [vmem:[#allocation1 + $0x20] sm:$0xff pattern:$0x73625140] }
 0x33d   : > { %2582 = vst [vmem:[#allocation1 + $0x20] ss:$4 sm:$0xff] %v2307_v39  ;;  %v2192_v39 = vadd.f32 %v2191_v7, %v2190_v57  ;;  %v2715_v7 = vsel %vm491_vm9, %v4253_v9, 0.0  ;;  %v5067_v9 = vld [vmem:[#allocation44_spill] sm:$0xff] }
 0x33e   : > { %2583 = vst [vmem:[#allocation1 + $0x21] ss:$4 sm:$0xff] %v2308_v3  ;;  %v2319_v3 = vmul.f32 %v5052_v43, %v5052_v43  ;;  %v2330_v40 = vmul.f32 %v5067_v9, %v5067_v9  ;;  %v5080_v9 = vld [vmem:[#allocation53_spill] sm:$0xff] }
 0x33f   : > { %2584 = vst [vmem:[#allocation1 + $0x22] ss:$4 sm:$0xff] %v2309_v51  ;;  %v2320_v51 = vmul.f32 %v5053_v49, %v5053_v49  ;;  %v2194_v8 = vadd.f32 %v2193_v32, %v2192_v39  ;;  %v5064_v32 = vld [vmem:[#allocation41_spill] sm:$0xff]  ;;  %v5065_v49 = vld [vmem:[#allocation42_spill] sm:$0xff] }
 0x340   : > { %2585 = vst [vmem:[#allocation1 + $0x23] ss:$4 sm:$0xff] %v2310_v11  ;;  %v4347_v59 = vld.sshfl [vmem:[#allocation1] sm:$0xff pattern:$0x73625140]  ;;  %v2327_v39 = vmul.f32 %v5064_v32, %v5064_v32 }
 0x341   : > { %2588 = vst [vmem:[#allocation1] ss:$4 sm:$0xff] %v2311_v31  ;;  %v2321_v31 = vmul.f32 %v5054_v42, %v5054_v42  ;;  %v5066_v42 = vld [vmem:[#allocation43_spill] sm:$0xff]  ;;  %v5077_v32 = vld [vmem:[#allocation50_spill] sm:$0xff] }
 0x342   : > { %2589 = vst [vmem:[#allocation1 + $0x1] ss:$4 sm:$0xff] %v2312_v26  ;;  %v2711_v26 = vsel %vm491_vm9, %v4233_v46, 0.0  ;;  %v2324_v46 = vmul.f32 %v5059_v24, %v5059_v24 }
 0x343   : > { %2590 = vst [vmem:[#allocation1 + $0x2] ss:$4 sm:$0xff] %v2313_v17  ;;  %v2195_v17 = vsel %vm491_vm9, %v5057_v16, 0.0  ;;  %v5070_v16 = vld [vmem:[#allocation10_spill] sm:$0xff] }
 0x344   : > { %2591 = vst [vmem:[#allocation1 + $0x3] ss:$4 sm:$0xff] %v2314_v37  ;;  %v2197_v37 = vsel %vm491_vm9, %v5058_v23, 0.0  ;;  %v2196_v28 = vadd.f32 %v2195_v17, %v2194_v8  ;;  %v2205_v17 = vsel %vm491_vm9, %v5070_v16, 0.0  ;;  %v2719_v23 = vsel %vm491_vm9, %v4273_v38, 0.0  ;;  %v5083_v16 = vld [vmem:[#allocation103_spill] sm:$0xff] }
 0x347   : > { %v4359_v55 = vld.sshfl [vmem:[#allocation1 + $0x20] sm:$0xff pattern:$0x73625140] }
 0x348   : > { %2592 = vst [vmem:[#allocation1 + $0x20] ss:$4 sm:$0xff] %v2315_v62  ;;  %v2712_v62 = vadd.f32 %v2711_v26, %v2710_v22 }
 0x349   : > { %2593 = vst [vmem:[#allocation1 + $0x21] ss:$4 sm:$0xff] %v2316_v44  ;;  %v5061_v44 = vld [vmem:[#allocation40_spill] sm:$0xff] }
 0x34a   : > { %2594 = vst [vmem:[#allocation1 + $0x22] ss:$4 sm:$0xff] %v2317_v56  ;;  %v2326_v53 = vmul.f32 %v5061_v44, %v5061_v44  ;;  %v2198_v56 = vadd.f32 %v2197_v37, %v2196_v28  ;;  %v2714_v57 = vadd.f32 %v2713_v33, %v2712_v62  ;;  %v5071_v37 = vld [vmem:[#allocation46_spill] sm:$0xff]  ;;  %v5072_v28 = vld [vmem:[#allocation47_spill] sm:$0xff]  ;;  %v5073_v44 = vld [vmem:[#allocation48_spill] sm:$0xff] }
 0x34b   : > { %2595 = vst [vmem:[#allocation1 + $0x23] ss:$4 sm:$0xff] %v2318_v2  ;;  %v4373_v11 = vld.sshfl [vmem:[#allocation1] sm:$0xff pattern:$0x73625140]  ;;  %v5063_v2 = vld [vmem:[#allocation8_spill] sm:$0xff]  ;;  %v2332_v33 = vmul.f32 %v5071_v37, %v5071_v37  ;;  %v2333_v62 = vmul.f32 %v5072_v28, %v5072_v28 }
 0x34c   : > { %2598 = vst [vmem:[#allocation1] ss:$4 sm:$0xff] %v2319_v3  ;;  %v2201_v4 = vsel %vm491_vm9, %v5063_v2, 0.0  ;;  %v2200_v43 = vadd.f32 %v2199_v61, %v2198_v56  ;;  %v2716_v3 = vadd.f32 %v2715_v7, %v2714_v57  ;;  %v5074_v57 = vld [vmem:[#allocation49_spill] sm:$0xff]  ;;  %v5075_v61 = vld [vmem:[#allocation11_spill] sm:$0xff]  ;;  %v5076_v2 = vld [vmem:[#allocation12_spill] sm:$0xff] }
 0x34d   : > { %2599 = vst [vmem:[#allocation1 + $0x1] ss:$4 sm:$0xff] %v2320_v51  ;;  %v2328_v51 = vmul.f32 %v5065_v49, %v5065_v49  ;;  %v2335_v0 = vmul.f32 %v5074_v57, %v5074_v57  ;;  %v2723_v7 = vsel %vm491_vm9, %v4293_v27, 0.0  ;;  %v5085_v28 = vld [vmem:[#allocation56_spill] sm:$0xff]  ;;  %v5087_v57 = vld [vmem:[#allocation105_spill] sm:$0xff] }
 0x34e   : > { %2600 = vst [vmem:[#allocation1 + $0x2] ss:$4 sm:$0xff] %v2321_v31  ;;  %v2329_v31 = vmul.f32 %v5066_v42, %v5066_v42  ;;  %v2202_v22 = vadd.f32 %v2201_v4, %v2200_v43  ;;  %v2718_v26 = vadd.f32 %v2717_v20, %v2716_v3  ;;  %v2209_v4 = vsel %vm491_vm9, %v5076_v2, 0.0 }
 0x34f   : > { %2601 = vst [vmem:[#allocation1 + $0x3] ss:$4 sm:$0xff] %v2322_v45  ;;  %v2331_v45 = vmul.f32 %v5068_v47, %v5068_v47  ;;  %v2725_v20 = vsel %vm491_vm9, %v4303_v25, 0.0  ;;  %v2339_v25 = vmul.f32 %v5080_v9, %v5080_v9  ;;  %v5094_v9 = vld [vmem:[#allocation63_spill] sm:$0xff] }
 0x352   : > { %v4393_v30 = vld.sshfl [vmem:[#allocation1 + $0x20] sm:$0xff pattern:$0x73625140] }
 0x353   : > { %2602 = vst [vmem:[#allocation1 + $0x20] ss:$4 sm:$0xff] %v2323_v5  ;;  %v2203_v5 = vsel %vm491_vm9, %v5069_v58, 0.0 }
 0x354   : > { %2603 = vst [vmem:[#allocation1 + $0x21] ss:$4 sm:$0xff] %v2324_v46  ;;  %v2721_v46 = vsel %vm491_vm9, %v4283_v36, 0.0  ;;  %v2204_v19 = vadd.f32 %v2203_v5, %v2202_v22  ;;  %v2207_v36 = vsel %vm491_vm9, %v5075_v61, 0.0 }
 0x355   : > { %2604 = vst [vmem:[#allocation1 + $0x22] ss:$4 sm:$0xff] %v2325_v35  ;;  %v2720_v35 = vadd.f32 %v2719_v23, %v2718_v26  ;;  %v5084_v23 = vld [vmem:[#allocation104_spill] sm:$0xff] }
 0x356   : > { %2605 = vst [vmem:[#allocation1 + $0x23] ss:$4 sm:$0xff] %v2326_v53  ;;  %v4411_v8 = vld.sshfl [vmem:[#allocation1] sm:$0xff pattern:$0x73625140]  ;;  %v2334_v53 = vmul.f32 %v5073_v44, %v5073_v44  ;;  %v2206_v38 = vadd.f32 %v2205_v17, %v2204_v19  ;;  %v2211_v17 = vsel %vm491_vm9, %v5083_v16, 0.0 }
 0x357   : > { %2608 = vst [vmem:[#allocation1] ss:$4 sm:$0xff] %v2327_v39  ;;  %v2722_v56 = vadd.f32 %v2721_v46, %v2720_v35  ;;  %v2336_v39 = vmul.f32 %v5077_v32, %v5077_v32  ;;  %v2213_v37 = vsel %vm491_vm9, %v5084_v23, 0.0  ;;  %v2729_v46 = vsel %vm491_vm9, %v4323_v63, 0.0  ;;  %v5089_v63 = vld [vmem:[#allocation106_spill] sm:$0xff]  ;;  %v5097_v16 = vld [vmem:[#allocation108_spill] sm:$0xff] }
 0x358   : > { %2609 = vst [vmem:[#allocation1 + $0x1] ss:$4 sm:$0xff] %v2328_v51  ;;  %v2208_v43 = vadd.f32 %v2207_v36, %v2206_v38  ;;  %v5078_v51 = vld [vmem:[#allocation51_spill] sm:$0xff]  ;;  %v5086_v38 = vld [vmem:[#allocation57_spill] sm:$0xff]  ;;  %v2217_v36 = vsel %vm491_vm9, %v5089_v63, 0.0  ;;  %v2735_v23 = vsel %vm491_vm9, %v4359_v55, 0.0 }
 0x359   : > { %2610 = vst [vmem:[#allocation1 + $0x2] ss:$4 sm:$0xff] %v2329_v31  ;;  %v2724_v49 = vadd.f32 %v2723_v7, %v2722_v56  ;;  %v2337_v42 = vmul.f32 %v5078_v51, %v5078_v51  ;;  %v5079_v31 = vld [vmem:[#allocation52_spill] sm:$0xff]  ;;  %v2343_v56 = vmul.f32 %v5086_v38, %v5086_v38  ;;  %v2733_v7 = vsel %vm491_vm9, %v4347_v59, 0.0  ;;  %v5100_v55 = vld [vmem:[#allocation109_spill] sm:$0xff] }
 0x35a   : > { %2611 = vst [vmem:[#allocation1 + $0x3] ss:$4 sm:$0xff] %v2330_v40  ;;  %v2338_v22 = vmul.f32 %v5079_v31, %v5079_v31  ;;  %v2210_v26 = vadd.f32 %v2209_v4, %v2208_v43  ;;  %v5081_v40 = vld [vmem:[#allocation54_spill] sm:$0xff]  ;;  %v2731_v4 = vsel %vm491_vm9, %v4333_v18, 0.0 }
 0x35b   : > { %v2726_v27 = vadd.f32 %v2725_v20, %v2724_v49  ;;  %v2340_v47 = vmul.f32 %v5081_v40, %v5081_v40  ;;  %v5090_v20 = vld [vmem:[#allocation59_spill] sm:$0xff]  ;;  %v5091_v49 = vld [vmem:[#allocation60_spill] sm:$0xff]  ;;  %v5093_v18 = vld [vmem:[#allocation62_spill] sm:$0xff] }
 0x35c   : > { %v2212_v19 = vadd.f32 %v2211_v17, %v2210_v26  ;;  %v2345_v32 = vmul.f32 %v5090_v20, %v5090_v20  ;;  %v2346_v51 = vmul.f32 %v5091_v49, %v5091_v49  ;;  %v5095_v40 = vld [vmem:[#allocation64_spill] sm:$0xff]  ;;  %v2221_v17 = vsel %vm491_vm9, %v5097_v16, 0.0 }
 0x35d   : > { %v4427_v24 = vld.sshfl [vmem:[#allocation1 + $0x20] sm:$0xff pattern:$0x73625140] }
 0x35e   : > { %2612 = vst [vmem:[#allocation1 + $0x20] ss:$4 sm:$0xff] %v2331_v45  ;;  %v5082_v45 = vld [vmem:[#allocation55_spill] sm:$0xff]  ;;  %v2214_v44 = vadd.f32 %v2213_v37, %v2212_v19  ;;  %v2737_v37 = vsel %vm491_vm9, %v4373_v11, 0.0  ;;  %v2351_v19 = vmul.f32 %v5001_v10, %v5001_v10  ;;  %v5101_v11 = vld [vmem:[#allocation110_spill] sm:$0xff]  ;;  %v2741_v10 = vsel %vm491_vm9, %v4411_v8, 0.0 }
 0x35f   : > { %2613 = vst [vmem:[#allocation1 + $0x21] ss:$4 sm:$0xff] %v2332_v33  ;;  %v2341_v58 = vmul.f32 %v5082_v45, %v5082_v45  ;;  %v2727_v33 = vsel %vm491_vm9, %v4313_v34, 0.0  ;;  %v5088_v34 = vld [vmem:[#allocation58_spill] sm:$0xff]  ;;  %v5096_v45 = vld [vmem:[#allocation107_spill] sm:$0xff] }
 0x360   : > { %2614 = vst [vmem:[#allocation1 + $0x22] ss:$4 sm:$0xff] %v2333_v62  ;;  %v2342_v62 = vmul.f32 %v5085_v28, %v5085_v28  ;;  %v2728_v35 = vadd.f32 %v2727_v33, %v2726_v27  ;;  %v2344_v61 = vmul.f32 %v5088_v34, %v5088_v34  ;;  %v2348_v27 = vmul.f32 %v5093_v18, %v5093_v18  ;;  %v5108_v18 = vld [vmem:[#allocation112_spill] sm:$0xff] }
 0x361   : > { %2615 = vst [vmem:[#allocation1 + $0x23] ss:$4 sm:$0xff] %v2334_v53  ;;  %v4447_v3 = vld.sshfl [vmem:[#allocation1] sm:$0xff pattern:$0x73625140]  ;;  %v2739_v34 = vsel %vm491_vm9, %v4393_v30, 0.0 }
 0x362   : > { %2618 = vst [vmem:[#allocation1] ss:$4 sm:$0xff] %v2335_v0  ;;  %v2730_v53 = vadd.f32 %v2729_v46, %v2728_v35  ;;  %v2215_v0 = vsel %vm491_vm9, %v5087_v57, 0.0  ;;  %v5098_v35 = vld [vmem:[#allocation66_spill] sm:$0xff]  ;;  %v2223_v57 = vsel %vm491_vm9, %v5100_v55, 0.0  ;;  %v5115_v55 = vld [vmem:[#allocation77_spill] sm:$0xff] }
 0x363   : > { %2619 = vst [vmem:[#allocation1 + $0x1] ss:$4 sm:$0xff] %v2336_v39  ;;  %v2216_v39 = vadd.f32 %v2215_v0, %v2214_v44  ;;  %v2352_v44 = vmul.f32 %v5098_v35, %v5098_v35  ;;  %v2225_v0 = vsel %vm491_vm9, %v5101_v11, 0.0  ;;  %v5114_v35 = vld [vmem:[#allocation113_spill] sm:$0xff] }
 0x364   : > { %2620 = vst [vmem:[#allocation1 + $0x2] ss:$4 sm:$0xff] %v2337_v42  ;;  %v2732_v43 = vadd.f32 %v2731_v4, %v2730_v53  ;;  %v5092_v42 = vld [vmem:[#allocation61_spill] sm:$0xff]  ;;  %v5099_v53 = vld [vmem:[#allocation67_spill] sm:$0xff] }
 0x365   : > { %2621 = vst [vmem:[#allocation1 + $0x3] ss:$4 sm:$0xff] %v2338_v22  ;;  %v2347_v31 = vmul.f32 %v5092_v42, %v5092_v42  ;;  %v2218_v22 = vadd.f32 %v2217_v36, %v2216_v39  ;;  %v2353_v38 = vmul.f32 %v5099_v53, %v5099_v53  ;;  %v5106_v42 = vld [vmem:[#allocation72_spill] sm:$0xff] }
 0x366   : > { %v2734_v26 = vadd.f32 %v2733_v7, %v2732_v43  ;;  %v5103_v7 = vld [vmem:[#allocation69_spill] sm:$0xff] }
 0x367   : > { %v2355_v20 = vmul.f32 %v5103_v7, %v5103_v7  ;;  %v5118_v7 = vld [vmem:[#allocation80_spill] sm:$0xff] }
 0x368   : > { %v4459_v5 = vld.sshfl [vmem:[#allocation1 + $0x20] sm:$0xff pattern:$0x73625140]  ;;  %v2736_v46 = vadd.f32 %v2735_v23, %v2734_v26 }
 0x369   : > { %2622 = vst [vmem:[#allocation1 + $0x20] ss:$4 sm:$0xff] %v2339_v25  ;;  %v2349_v25 = vmul.f32 %v5094_v9, %v5094_v9  ;;  %v2743_v9 = vsel %vm491_vm9, %v4427_v24, 0.0  ;;  %v5110_v23 = vld [vmem:[#allocation74_spill] sm:$0xff]  ;;  %v2747_v53 = vsel %vm491_vm9, %v4459_v5, 0.0 }
 0x36a   : > { %2623 = vst [vmem:[#allocation1 + $0x21] ss:$4 sm:$0xff] %v2340_v47  ;;  %v2350_v47 = vmul.f32 %v5095_v40, %v5095_v40 }
 0x36b   : > { %2624 = vst [vmem:[#allocation1 + $0x22] ss:$4 sm:$0xff] %v2341_v58  ;;  %v2219_v58 = vsel %vm491_vm9, %v5096_v45, 0.0  ;;  %v5109_v45 = vld [vmem:[#allocation73_spill] sm:$0xff] }
 0x36c   : > { %2625 = vst [vmem:[#allocation1 + $0x23] ss:$4 sm:$0xff] %v2342_v62  ;;  %v4479_v2 = vld.sshfl [vmem:[#allocation1] sm:$0xff pattern:$0x73625140]  ;;  %v2220_v33 = vadd.f32 %v2219_v58, %v2218_v22  ;;  %v2738_v62 = vadd.f32 %v2737_v37, %v2736_v46  ;;  %v2359_v58 = vmul.f32 %v5109_v45, %v5109_v45  ;;  %v2360_v37 = vmul.f32 %v5110_v23, %v5110_v23 }
 0x36d   : > { %2628 = vst [vmem:[#allocation1] ss:$4 sm:$0xff] %v2343_v56  ;;  %v5107_v22 = vld [vmem:[#allocation111_spill] sm:$0xff] }
 0x36e   : > { %2629 = vst [vmem:[#allocation1 + $0x1] ss:$4 sm:$0xff] %v2344_v61  ;;  %v2222_v28 = vadd.f32 %v2221_v17, %v2220_v33  ;;  %v5102_v61 = vld [vmem:[#allocation68_spill] sm:$0xff]  ;;  %v2740_v4 = vadd.f32 %v2739_v34, %v2738_v62  ;;  %v2227_v26 = vsel %vm491_vm9, %v5107_v22, 0.0  ;;  %v5111_v46 = vld [vmem:[#allocation75_spill] sm:$0xff]  ;;  %v5116_v34 = vld [vmem:[#allocation78_spill] sm:$0xff] }
 0x36f   : > { %2630 = vst [vmem:[#allocation1 + $0x2] ss:$4 sm:$0xff] %v2345_v32  ;;  %v2354_v63 = vmul.f32 %v5102_v61, %v5102_v61  ;;  %v5104_v32 = vld [vmem:[#allocation70_spill] sm:$0xff]  ;;  %v5112_v62 = vld [vmem:[#allocation76_spill] sm:$0xff] }
 0x370   : > { %2631 = vst [vmem:[#allocation1 + $0x3] ss:$4 sm:$0xff] %v2346_v51  ;;  %v2224_v36 = vadd.f32 %v2223_v57, %v2222_v28  ;;  %v2356_v39 = vmul.f32 %v5104_v32, %v5104_v32  ;;  %v2742_v30 = vadd.f32 %v2741_v10, %v2740_v4  ;;  %v5105_v51 = vld [vmem:[#allocation71_spill] sm:$0xff]  ;;  %v2361_v28 = vmul.f32 %v5111_v46, %v5111_v46 }
 0x371   : > { %v2357_v8 = vmul.f32 %v5105_v51, %v5105_v51  ;;  %v2362_v24 = vmul.f32 %v5112_v62, %v5112_v62  ;;  %v2363_v57 = vmul.f32 %v5115_v55, %v5115_v55  ;;  %v2364_v10 = vmul.f32 %v5116_v34, %v5116_v34  ;;  %v5126_v34 = vld [vmem:[#allocation93_spill] sm:$0xff] }
 0x372   : > { %v2226_v43 = vadd.f32 %v2225_v0, %v2224_v36 }
 0x373   : > { %v4493_v59 = vld.sshfl [vmem:[#allocation1 + $0x20] sm:$0xff pattern:$0x73625140] }
 0x374   : > { %2632 = vst [vmem:[#allocation1 + $0x20] ss:$4 sm:$0xff] %v2347_v31  ;;  %v2358_v31 = vmul.f32 %v5106_v42, %v5106_v42  ;;  %v2228_v40 = vadd.f32 %v2227_v26, %v2226_v43  ;;  %v2751_v43 = vsel %vm491_vm9, %v4493_v59, 0.0  ;;  %v2367_v42 = vmul.f32 %v5019_v21, %v5019_v21 }
 0x375   : > { %2633 = vst [vmem:[#allocation1 + $0x21] ss:$4 sm:$0xff] %v2348_v27  ;;  %v2229_v27 = vsel %vm491_vm9, %v5108_v18, 0.0  ;;  %v2370_v59 = vmul.f32 %v5022_v52, %v5022_v52  ;;  %v2239_v21 = vsel %vm491_vm9, %v4180_v15, 0.0  ;;  %v5121_v15 = vld [vmem:[#allocation88_spill] sm:$0xff] }
 0x376   : > { %2634 = vst [vmem:[#allocation1 + $0x22] ss:$4 sm:$0xff] %v2349_v25  ;;  %v2745_v25 = vsel %vm491_vm9, %v4447_v3, 0.0  ;;  %v2230_v16 = vadd.f32 %v2229_v27, %v2228_v40  ;;  %v5113_v3 = vld [vmem:[#allocation65_spill] sm:$0xff]  ;;  %v5120_v27 = vld [vmem:[#allocation83_spill] sm:$0xff]  ;;  %v2372_v40 = vmul.f32 %v5024_v12, %v5024_v12  ;;  %v2245_v12 = vsel %vm491_vm9, %v4203_v14, 0.0 }
 0x377   : > { %2635 = vst [vmem:[#allocation1 + $0x23] ss:$4 sm:$0xff] %v2350_v47  ;;  %v2636_v56 = vld.sshfl [vmem:[#allocation1] sm:$0xff pattern:$0x73625140]  ;;  %v2744_v47 = vadd.f32 %v2743_v9, %v2742_v30  ;;  %v2378_v14 = vmul.f32 %v3966_v60, %v3966_v60  ;;  %v2381_v60 = vmul.f32 %v5126_v34, %v5126_v34 }
 0x378   : > { %2638 = vst [vmem:[#allocation1] ss:$4 sm:$0xff] %v2351_v19  ;;  %v2231_v19 = vsel %vm491_vm9, %v5113_v3, 0.0  ;;  %v2753_v30 = vsel %vm491_vm9, %v2636_v56, 0.0  ;;  %v2371_v56 = vmul.f32 %v5023_v50, %v5023_v50  ;;  %v2373_v50 = vmul.f32 %v5025_v29, %v5025_v29  ;;  %v5122_v29 = vld [vmem:[#allocation89_spill] sm:$0xff]  ;;  %v5124_v3 = vld [vmem:[#allocation91_spill] sm:$0xff] }
 0x379   : > { %2639 = vst [vmem:[#allocation1 + $0x1] ss:$4 sm:$0xff] %v2352_v44  ;;  %v2746_v17 = vadd.f32 %v2745_v25, %v2744_v47  ;;  %v2233_v44 = vsel %vm491_vm9, %v5114_v35, 0.0  ;;  %v2232_v11 = vadd.f32 %v2231_v19, %v2230_v16  ;;  %v2377_v19 = vmul.f32 %v5124_v3, %v5124_v3 }
 0x37a   : > { %2640 = vst [vmem:[#allocation1 + $0x2] ss:$4 sm:$0xff] %v2353_v38  ;;  %v2749_v38 = vsel %vm491_vm9, %v4479_v2, 0.0  ;;  %v2366_v2 = vmul.f32 %v5118_v7, %v5118_v7 }
 0x37b   : > { %2641 = vst [vmem:[#allocation1 + $0x3] ss:$4 sm:$0xff] %v2354_v63  ;;  %v2748_v0 = vadd.f32 %v2747_v53, %v2746_v17  ;;  %v5117_v63 = vld [vmem:[#allocation79_spill] sm:$0xff]  ;;  %v2234_v4 = vadd.f32 %v2233_v44, %v2232_v11  ;;  %v5125_v44 = vld [vmem:[#allocation92_spill] sm:$0xff] }
 0x37c   : > { %v2365_v36 = vmul.f32 %v5117_v63, %v5117_v63  ;;  %v2379_v53 = vmul.f32 %v5125_v44, %v5125_v44  ;;  %v5127_v63 = vld [vmem:[#allocation94_spill] sm:$0xff] }
 0x37d   : > { %v2750_v5 = vadd.f32 %v2749_v38, %v2748_v0  ;;  %v2247_v38 = vsel %vm491_vm9, %v4213_v6, 0.0 }
 0x37e   : > { %v2637_v49 = vld.sshfl [vmem:[#allocation1 + $0x20] sm:$0xff pattern:$0x73625140] }
 0x37f   : > { %2642 = vst [vmem:[#allocation1 + $0x20] ss:$4 sm:$0xff] %v2355_v20  ;;  %v5119_v20 = vld [vmem:[#allocation114_spill] sm:$0xff]  ;;  %v2755_v9 = vsel %vm491_vm9, %v2637_v49, 0.0  ;;  %v2243_v49 = vsel %vm491_vm9, %v4192_v1, 0.0 }
 0x380   : > { %2643 = vst [vmem:[#allocation1 + $0x21] ss:$4 sm:$0xff] %v2356_v39  ;;  %v2235_v32 = vsel %vm491_vm9, %v5119_v20, 0.0  ;;  %v2237_v39 = vsel %vm491_vm9, %v4175_v54, 0.0  ;;  %v2369_v54 = vmul.f32 %v5120_v27, %v5120_v27 }
 0x381   : > { %2644 = vst [vmem:[#allocation1 + $0x22] ss:$4 sm:$0xff] %v2357_v8  ;;  %v2236_v51 = vadd.f32 %v2235_v32, %v2234_v4  ;;  %v2752_v8 = vadd.f32 %v2751_v43, %v2750_v5 }
 0x382   : > { %2645 = vst [vmem:[#allocation1 + $0x23] ss:$4 sm:$0xff] %v2358_v31  ;;  %v2646_v33 = vld.sshfl [vmem:[#allocation1] sm:$0xff pattern:$0x73625140]  ;;  %v2368_v31 = vmul.f32 %v5020_v13, %v5020_v13  ;;  %v2241_v13 = vsel %vm491_vm9, %v4187_v48, 0.0 }
 0x383   : > { %2648 = vst [vmem:[#allocation1] ss:$4 sm:$0xff] %v2359_v58  ;;  %v2238_v22 = vadd.f32 %v2237_v39, %v2236_v51  ;;  %v2754_v18 = vadd.f32 %v2753_v30, %v2752_v8  ;;  %v2757_v25 = vsel %vm491_vm9, %v2646_v33, 0.0  ;;  %v2374_v58 = vmul.f32 %v5121_v15, %v5121_v15 }
 0x384   : > { %2649 = vst [vmem:[#allocation1 + $0x1] ss:$4 sm:$0xff] %v2360_v37  ;;  %v2375_v37 = vmul.f32 %v5122_v29, %v5122_v29 }
 0x385   : > { %2650 = vst [vmem:[#allocation1 + $0x2] ss:$4 sm:$0xff] %v2361_v28  ;;  %v2240_v47 = vadd.f32 %v2239_v21, %v2238_v22  ;;  %v2756_v45 = vadd.f32 %v2755_v9, %v2754_v18  ;;  %v5123_v28 = vld [vmem:[#allocation90_spill] sm:$0xff] }
 0x386   : > { %2651 = vst [vmem:[#allocation1 + $0x3] ss:$4 sm:$0xff] %v2362_v24  ;;  %v2376_v62 = vmul.f32 %v5123_v28, %v5123_v28 }
 0x387   : > { %v2242_v48 = vadd.f32 %v2241_v13, %v2240_v47  ;;  %v2758_v16 = vadd.f32 %v2757_v25, %v2756_v45 }
 0x389   : > { %v2647_v61 = vld.sshfl [vmem:[#allocation1 + $0x20] sm:$0xff pattern:$0x73625140]  ;;  %v2244_v33 = vadd.f32 %v2243_v49, %v2242_v48 }
 0x38a   : > { %2652 = vst [vmem:[#allocation1 + $0x20] ss:$4 sm:$0xff] %v2363_v57  ;;  %v2759_v17 = vsel %vm491_vm9, %v2647_v61, 0.0  ;;  %v2380_v57 = vmul.f32 %v3974_v41, %v3974_v41 }
 0x38b   : > { %2653 = vst [vmem:[#allocation1 + $0x21] ss:$4 sm:$0xff] %v2364_v10  ;;  %v2760_v46 = vadd.f32 %v2759_v17, %v2758_v16  ;;  %v2246_v1 = vadd.f32 %v2245_v12, %v2244_v33 }
 0x38c   : > { %2654 = vst [vmem:[#allocation1 + $0x22] ss:$4 sm:$0xff] %v2365_v36  ;;  %v2382_v36 = vmul.f32 %v5127_v63, %v5127_v63 }
 0x38d   : > { %2655 = vst [vmem:[#allocation1 + $0x23] ss:$4 sm:$0xff] %v2366_v2  ;;  %v2656_v26 = vld.sshfl [vmem:[#allocation1] sm:$0xff pattern:$0x73625140]  ;;  %v2248_v10 = vadd.f32 %v2247_v38, %v2246_v1 }
 0x38e   : > { %2658 = vst [vmem:[#allocation1] ss:$4 sm:$0xff] %v2367_v42  ;;  %v2761_v23 = vsel %vm491_vm9, %v2656_v26, 0.0 }
 0x38f   : > { %2659 = vst [vmem:[#allocation1 + $0x1] ss:$4 sm:$0xff] %v2368_v31  ;;  %v2762_v35 = vadd.f32 %v2761_v23, %v2760_v46  ;;  %v2249_v41 = vrot.slane %v2248_v10, 4 }
 0x390   : > { %2660 = vst [vmem:[#allocation1 + $0x2] ss:$4 sm:$0xff] %v2369_v54 }
 0x391   : > { %2661 = vst [vmem:[#allocation1 + $0x3] ss:$4 sm:$0xff] %v2370_v59  ;;  %v2250_v20 = vadd.f32 %v2249_v41, %v2248_v10 }
 0x393   : > { %v2251_v30 = vrot.slane %v2250_v20, 2 }
 0x394   : > { %v2657_v52 = vld.sshfl [vmem:[#allocation1 + $0x20] sm:$0xff pattern:$0x73625140] }
 0x395   : > { %2662 = vst [vmem:[#allocation1 + $0x20] ss:$4 sm:$0xff] %v2371_v56  ;;  %v2763_v55 = vsel %vm491_vm9, %v2657_v52, 0.0  ;;  %v2252_v42 = vadd.f32 %v2251_v30, %v2250_v20 }
 0x396   : > { %2663 = vst [vmem:[#allocation1 + $0x21] ss:$4 sm:$0xff] %v2372_v40  ;;  %v2764_v61 = vadd.f32 %v2763_v55, %v2762_v35 }
 0x397   : > { %2664 = vst [vmem:[#allocation1 + $0x22] ss:$4 sm:$0xff] %v2373_v50  ;;  %v2253_v26 = vrot.slane %v2252_v42, 1 }
 0x398   : > { %2665 = vst [vmem:[#allocation1 + $0x23] ss:$4 sm:$0xff] %v2374_v58  ;;  %v2666_v24 = vld.sshfl [vmem:[#allocation1] sm:$0xff pattern:$0x73625140] }
 0x399   : > { %2668 = vst [vmem:[#allocation1] ss:$4 sm:$0xff] %v2375_v37  ;;  %v2765_v0 = vsel %vm491_vm9, %v2666_v24, 0.0  ;;  %v2254_v54 = vadd.f32 %v2253_v26, %v2252_v42 }
 0x39a   : > { %2669 = vst [vmem:[#allocation1 + $0x1] ss:$4 sm:$0xff] %v2376_v62  ;;  %v2766_v6 = vadd.f32 %v2765_v0, %v2764_v61 }
 0x39b   : > { %2670 = vst [vmem:[#allocation1 + $0x2] ss:$4 sm:$0xff] %v2377_v19 }
 0x39c   : > { %2671 = vst [vmem:[#allocation1 + $0x3] ss:$4 sm:$0xff] %v2378_v14 }
 0x39f   : > { %v2667_v11 = vld.sshfl [vmem:[#allocation1 + $0x20] sm:$0xff pattern:$0x73625140] }
 0x3a0   : > { %2672 = vst [vmem:[#allocation1 + $0x20] ss:$4 sm:$0xff] %v2379_v53  ;;  %v2767_v4 = vsel %vm491_vm9, %v2667_v11, 0.0 }
 0x3a1   : > { %2673 = vst [vmem:[#allocation1 + $0x21] ss:$4 sm:$0xff] %v2380_v57  ;;  %v2768_v7 = vadd.f32 %v2767_v4, %v2766_v6 }
 0x3a2   : > { %2674 = vst [vmem:[#allocation1 + $0x22] ss:$4 sm:$0xff] %v2381_v60 }
 0x3a3   : > { %2675 = vst [vmem:[#allocation1 + $0x23] ss:$4 sm:$0xff] %v2382_v36  ;;  %v2676_v5 = vld.sshfl [vmem:[#allocation1] sm:$0xff pattern:$0x73625140] }
 0x3a4   : > { %v2769_v2 = vsel %vm491_vm9, %v2676_v5, 0.0 }
 0x3a5   : > { %v2770_v32 = vadd.f32 %v2769_v2, %v2768_v7 }
 0x3aa   : > { %v2677_v39 = vld.sshfl [vmem:[#allocation1 + $0x20] sm:$0xff pattern:$0x73625140] }
 0x3ab   : > { %v2771_v43 = vsel %vm491_vm9, %v2677_v39, 0.0 }
 0x3ac   : > { %v2772_v51 = vadd.f32 %v2771_v43, %v2770_v32 }
 0x3ae   : > { %v2773_v8 = vrot.slane %v2772_v51, 4 }
 0x3b0   : > { %v2774_v31 = vadd.f32 %v2773_v8, %v2772_v51 }
 0x3b2   : > { %v2775_v22 = vrot.slane %v2774_v31, 2 }
 0x3b4   : > { %v2776_v18 = vadd.f32 %v2775_v22, %v2774_v31 }
 0x3b6   : > { %v2777_v27 = vrot.slane %v2776_v18, 1 }
 0x3b8   : > { %v2778_v59 = vadd.f32 %v2777_v27, %v2776_v18 }
 0x3ba   : > { %v2779_v56 = vsel %vm269_vm0, %v2254_v54, %v2778_v59 }
 0x3bb   : > { %2781 = vst.msk [vmem:[%s174_s28] sm:$0x3] %vm2780_vm13, %v2779_v56 }
 0x3bc   : > { %3075 = shalt.err (!%p3072_p12)
}
 0x3bd   : > { %2972 = dma.vmem_to_hbm [thread:$0]  (%p3179_p5), %s2818_s29, 32, %s2820_s4, %s2788_s16  }
 0x3be PF: > { %p2982_p13 = scmp.ge.s32.totalorder %s3114_s15, 2  ;;  %s2831_s19 = sand.u32 1, %s3102_s12  }
 0x3bf   : > { %s2832_s17 = scalar_lea.sflag [#allocation3], %s2831_s19 }
 0x3c0   : > { %p2976_p0 = pnand %p2982_p13, %p3183_p6 }
 0x3c2   : > { %p2977_p1 = pneg %p2976_p0 }
 0x3c4   : > { %3093 = dma.done.wait (%p2977_p1), %s2832_s17, 4096  }
 0x3c5   : > { %3095 = vsyncadd (%p2977_p1), %s2832_s17, 4294963200  ;;  %s2842_s20 = scalar_lea.sflag [#allocation5], %s2831_s19 }
 0x3c6   : > { %3097 = dma.done.wait (%p2977_p1), %s2842_s20, 32  }
 0x3c7   : > { %3099 = vsyncadd (%p2977_p1), %s2842_s20, 4294967264  ;;  %p17_p5 = scmp.ge.s32.totalorder %s3166_s18, 4   ;;  %s5128_s12 = smov %s3106_s13 }
 0x3c8   : > { %s5129_s13 = smov %s3110_s14  ;;  %s5130_s14 = smov %s3177_s21 }
 0x3c9   : > { %s5131_s15 = smov %s3166_s18  ;;  %19 = sbr.rel (!%p17_p5) target bundleno = 5 (0x5), region = 104 }
 0x3ce   :  { %2848 = vsyncpa [#allocation3], 1 }
 0x3cf   :  { %2850 = vsyncpa [#allocation3 + $0x1], 1 }
 0x3d0   :  { %2851 = vsyncpa [#allocation5], 1 }
 0x3d1   :  { %2853 = vsyncpa [#allocation5 + $0x1], 1 }

</bundles_post_ra>
